<compile_context>
chip_gen: v5e
topology: v5e:2x2
jax: 0.10.0
libtpu: 0.0.40
codegen_flags: <defaults>
</compile_context>

<pallas_src>
import math

import numpy as np
import jax
import jax.numpy as jnp
from jax.experimental import pallas as pl
from jax.experimental.pallas import tpu as pltpu

LATENT_DIM = 512
HIDDEN = 512
CAM_DIM = 25                      # 16 (cam2world) + 9 (intrinsics)
NUM_WS = 14                       # EG3D style broadcast count (collapsed in the stand-in)
IMG_RES = 16
IMG_CH = 3
NPIX = IMG_CH * IMG_RES * IMG_RES  # 768 = 6 * 128 (lane-dense output)
LRELU_GAIN = math.sqrt(2.0)
MAX_TILE_B = 512                  # rows per grid step (VMEM ~10-14 MiB incl. double buffers)


# ------------------------- camera glue (tiny scalar math) -------------------
def fov_to_intrinsics(fov_degrees):
    focal = 1.0 / (np.tan(fov_degrees * np.pi / 360.0) * 1.414)
    return np.array([[focal, 0.0, 0.5],
                     [0.0, focal, 0.5],
                     [0.0, 0.0, 1.0]], dtype=np.float32)


def _normalize(v):
    return v / np.linalg.norm(v, axis=-1, keepdims=True)


def lookat_pose_sample(h_mean, v_mean, lookat, radius):
    # LookAtPoseSampler.sample with stddev=0 (deterministic)
    theta = h_mean
    v = np.clip(v_mean, 1e-5, np.pi - 1e-5) / np.pi
    phi = np.arccos(1.0 - 2.0 * v)
    origin = np.zeros((1, 3), dtype=np.float64)
    origin[:, 0] = radius * np.sin(phi) * np.cos(np.pi - theta)
    origin[:, 2] = radius * np.sin(phi) * np.sin(np.pi - theta)
    origin[:, 1] = radius * np.cos(phi)
    forward = _normalize(lookat[None, :] - origin)
    up = np.array([[0.0, 1.0, 0.0]])
    right = -_normalize(np.cross(up, forward))
    up2 = _normalize(np.cross(forward, right))
    rot = np.eye(4)[None].copy()
    rot[:, :3, :3] = np.stack((right, up2, forward), axis=-1)
    trans = np.eye(4)[None].copy()
    trans[:, :3, 3] = origin
    return (trans @ rot).astype(np.float32)          # (1, 4, 4)


def camera_params_25(angle_y, angle_p, fov_deg=18.837,
                     pivot=(0.0, 0.0, 0.0), radius=2.7):
    cam2world = lookat_pose_sample(np.pi / 2 + angle_y, np.pi / 2 + angle_p,
                                   np.array(pivot, dtype=np.float64), radius)
    intr = fov_to_intrinsics(fov_deg)
    return np.concatenate([cam2world.reshape(1, 16),
                           intr.reshape(1, 9)], axis=1)   # (1, 25)


# ------------------------------ Pallas kernel --------------------------------
def _eg3d_fused_kernel(psi_ref, z_ref, w0_ref, b0_ref, w1_ref, b1_ref,
                       swg_ref, wavgsw_ref, sb_ref, out_ref):
    """Fused mapping + truncation + synthesis stand-in + post-process.

    psi_ref: (1,) f32 in SMEM.  Weights arrive as bf16 with the sqrt(2) lrelu
    gain pre-folded into w1 and swg; wavgsw = w_avg @ syn_w (f32) so the
    truncation trick becomes a scalar blend after the last matmul.  All
    elementwise math stays f32; MXU accumulation is f32.
    """
    psi = psi_ref[0]
    z = z_ref[...].astype(jnp.float32)
    # normalize_2nd_moment(z)
    z = z * jax.lax.rsqrt(jnp.mean(z * z, axis=-1, keepdims=True) + 1e-8)

    # mapping fc0; conditioning-embed contribution constant-folded into b0_ref.
    a0 = jnp.dot(z.astype(jnp.bfloat16), w0_ref[...],
                 preferred_element_type=jnp.float32) + b0_ref[...]
    h0 = jnp.maximum(a0, 0.2 * a0)            # lrelu (gain folded into w1_ref)

    # mapping fc1 (weights carry the sqrt(2) gain of the previous lrelu)
    a1 = jnp.dot(h0.astype(jnp.bfloat16), w1_ref[...],
                 preferred_element_type=jnp.float32) + b1_ref[...]
    h1 = jnp.maximum(a1, 0.2 * a1)            # lrelu (gain folded into swg_ref)

    # truncation trick folded through the synthesis matmul:
    #   (psi*w + (1-psi)*w_avg) @ SW + sb
    #     = psi*(lrelu(a1) @ (g*SW)) + (1-psi)*(w_avg @ SW) + sb
    base = (1.0 - psi) * wavgsw_ref[...] + sb_ref[...]       # (1, NPIX), tiny
    x = psi * jnp.dot(h1.astype(jnp.bfloat16), swg_ref[...],
                      preferred_element_type=jnp.float32) + base
    img = jnp.tanh(x)                                   # synthesis image in [-1, 1]
    # post_process: Normalize(mean=-1, std=2) -> (img + 1) / 2
    out_ref[...] = ((img + 1.0) * 0.5).astype(out_ref.dtype)


def _const2d(shape):
    # whole weight array as a single VMEM block, resident across batch tiles
    return pl.BlockSpec(shape, lambda i: (0, 0))


def eg3d_fused_pallas(psi, z_pad, params, tile_b):
    B_pad = z_pad.shape[0]
    grid = (B_pad // tile_b,)

    weight_bytes = (LATENT_DIM * HIDDEN + HIDDEN * HIDDEN + HIDDEN * NPIX) * 2   # bf16
    bias_bytes = (HIDDEN + HIDDEN + NPIX + NPIX) * 4                             # f32
    act_bytes = B_pad * (LATENT_DIM + NPIX) * 2                                  # bf16 in/out
    cost = pl.CostEstimate(
        flops=2 * B_pad * HIDDEN * (LATENT_DIM + HIDDEN + NPIX),
        transcendentals=B_pad * NPIX,                   # tanh epilogue (EUP)
        bytes_accessed=weight_bytes + bias_bytes + act_bytes + 4,
    )

    return pl.pallas_call(
        _eg3d_fused_kernel,
        out_shape=jax.ShapeDtypeStruct((B_pad, NPIX), jnp.bfloat16),
        grid=grid,
        in_specs=[
            pl.BlockSpec(memory_space=pltpu.MemorySpace.SMEM),        # psi scalar
            pl.BlockSpec((tile_b, LATENT_DIM), lambda i: (i, 0)),     # z tile, bf16
            _const2d((LATENT_DIM, HIDDEN)),                           # w0 (z half), bf16
            _const2d((1, HIDDEN)),                                    # b0 (cond folded), f32
            _const2d((HIDDEN, HIDDEN)),                               # w1 * gain, bf16
            _const2d((1, HIDDEN)),                                    # b1, f32
            _const2d((HIDDEN, NPIX)),                                 # syn_w * gain, bf16
            _const2d((1, NPIX)),                                      # w_avg @ syn_w, f32
            _const2d((1, NPIX)),                                      # syn_b (cam folded), f32
        ],
        out_specs=pl.BlockSpec((tile_b, NPIX), lambda i: (i, 0)),
        compiler_params=pltpu.CompilerParams(
            dimension_semantics=("parallel",)),
        cost_estimate=cost,
    )(psi, z_pad, params["w0z"], params["b0_fused"], params["w1g"],
      params["b1"], params["syn_wg"], params["wavg_sw"], params["syn_b_fused"])


def _batch_tiling(B):
    """Pad B only to a multiple of 16; split into equal 16-aligned tiles.

    >=2 tiles for medium/large batches (lets a 2-TC chip shard the parallel
    batch axis); never more than ~15 wasted rows per tile (no 128-padding
    blow-up), tile capped at MAX_TILE_B rows.
    """
    B16 = max(16, -(-B // 16) * 16)
    if B16 <= 32:
        n_tiles = 1
    else:
        n_tiles = max(2, -(-B16 // MAX_TILE_B))
    tile_b = -(-B16 // (n_tiles * 16)) * 16
    return n_tiles * tile_b, tile_b


def _eg3d_forward(params, z, psi):
    """Pure function: pad batch, run fused kernel (bf16 I/O), slice, restore f32."""
    B = z.shape[0]
    B_pad, tile_b = _batch_tiling(B)
    z_pad = jnp.pad(z.astype(jnp.bfloat16), ((0, B_pad - B), (0, 0)))
    img_flat = eg3d_fused_pallas(psi, z_pad, params, tile_b)       # (B_pad, 3*H*W) bf16
    img = img_flat[:B].astype(jnp.float32)
    return img.reshape(B, IMG_CH, IMG_RES, IMG_RES)                # NCHW f32


# ------------------------------ wrapper module -------------------------------
class EG3DWrapperPallas:
    def __init__(self, source_model_type="ffhq", sample_truncation=0.7, seed=0):
        self.source_model_type = source_model_type
        self.sample_truncation = float(sample_truncation)
        self.latent_dim = LATENT_DIM

        key = jax.random.PRNGKey(seed)
        ks = jax.random.split(key, 8)

        def lin(k, fan_in, fan_out):
            return jax.random.normal(k, (fan_in, fan_out), jnp.float32) / np.sqrt(fan_in)

        # deterministic synthetic weights (no .pkl checkpoint available)
        w_embed = lin(ks[0], CAM_DIM, HIDDEN)
        b_embed = jnp.zeros((1, HIDDEN), jnp.float32)
        w0 = lin(ks[1], LATENT_DIM + HIDDEN, HIDDEN)
        b0 = jnp.zeros((1, HIDDEN), jnp.float32)
        w1 = lin(ks[2], HIDDEN, HIDDEN)
        b1 = jnp.zeros((1, HIDDEN), jnp.float32)
        w_avg = jax.random.normal(ks[3], (1, HIDDEN), jnp.float32) * 0.1
        syn_w_w = lin(ks[4], HIDDEN, NPIX)
        syn_w_c = lin(ks[5], CAM_DIM, NPIX)
        syn_b = jnp.zeros((1, NPIX), jnp.float32)

        # --- compile-time camera math (numpy, done once) ---
        fov_deg = 18.837
        angle_y, angle_p = 0.0, -0.2
        cam25 = jnp.asarray(camera_params_25(angle_y, angle_p, fov_deg))   # rendering cam
        cond25 = jnp.asarray(camera_params_25(0.0, 0.0, fov_deg))          # conditioning cam

        # constant-fold conditioning-embed path into the fc0 bias:
        #   ce = normalize_2nd_moment(cond @ w_embed + b_embed)
        #   b0_fused = ce @ w0[512:] + b0
        ce = cond25 @ w_embed + b_embed
        ce = ce * jax.lax.rsqrt(jnp.mean(ce * ce, axis=-1, keepdims=True) + 1e-8)
        b0_fused = ce @ w0[LATENT_DIM:, :] + b0
        # constant-fold rendering-camera path into the synthesis bias
        syn_b_fused = cam25 @ syn_w_c + syn_b
        # constant-fold the truncation mean through the synthesis matmul
        wavg_sw = w_avg @ syn_w_w                                          # (1, NPIX) f32

        # weights streamed as bf16 (HBM-bound path) with the sqrt(2) lrelu gain
        # pre-folded into the *downstream* matrices; biases stay f32.
        self.params = {
            "w0z": w0[:LATENT_DIM, :].astype(jnp.bfloat16),
            "b0_fused": b0_fused.astype(jnp.float32),
            "w1g": (LRELU_GAIN * w1).astype(jnp.bfloat16),
            "b1": b1,
            "syn_wg": (LRELU_GAIN * syn_w_w).astype(jnp.bfloat16),
            "wavg_sw": wavg_sw.astype(jnp.float32),
            "syn_b_fused": syn_b_fused.astype(jnp.float32),
        }
        self._jit_forward = jax.jit(_eg3d_forward)

    def forward(self, z, training=False):
        assert z.ndim == 2 and z.shape[1] == LATENT_DIM
        # psi is a runtime SMEM scalar -> one compiled kernel for train & eval.
        psi = jnp.full((1,), 1.0 if training else self.sample_truncation, jnp.float32)
        # TODO(synk): real EG3D broadcasts w to NUM_WS=14 per-layer styles; the
        # dense stand-in consumes a single w, so the broadcast is omitted.
        return self._jit_forward(self.params, z, psi)


if __name__ == "__main__":
    model = EG3DWrapperPallas(source_model_type="ffhq", sample_truncation=0.7)
    z = jax.random.normal(jax.random.PRNGKey(0), (2, LATENT_DIM), jnp.float32)
    img = model.forward(z)
    jax.block_until_ready(img)
    assert img.shape == (2, IMG_CH, IMG_RES, IMG_RES)
    assert img.dtype == jnp.float32
    assert bool(jnp.all(jnp.isfinite(img)))
    # second call (training psi) must reuse the same compiled kernel and stay finite
    img2 = model.forward(z, training=True)
    jax.block_until_ready(img2)
    assert img2.shape == (2, IMG_CH, IMG_RES, IMG_RES)
    assert bool(jnp.all(jnp.isfinite(img2)))
    print("KERNEL_OK")
</pallas_src>

<mosaic_0001>
module attributes {stable_mosaic.version = 11 : i64} {
  func.func @_eg3d_fused_kernel(%arg0: i32, %arg1: memref<1xf32, #tpu.memory_space<smem>>, %arg2: memref<16x512xbf16, #tpu.memory_space<vmem>>, %arg3: memref<512x512xbf16, #tpu.memory_space<vmem>>, %arg4: memref<1x512xf32, #tpu.memory_space<vmem>>, %arg5: memref<512x512xbf16, #tpu.memory_space<vmem>>, %arg6: memref<1x512xf32, #tpu.memory_space<vmem>>, %arg7: memref<512x768xbf16, #tpu.memory_space<vmem>>, %arg8: memref<1x768xf32, #tpu.memory_space<vmem>>, %arg9: memref<1x768xf32, #tpu.memory_space<vmem>>, %arg10: memref<16x768xbf16, #tpu.memory_space<vmem>>) attributes {dimension_semantics = [#tpu.dimension_semantics<parallel>], iteration_bounds = array<i64: 1>, scalar_prefetch = 0 : i64, scratch_operands = 0 : i64, tpu.core_type = #tpu.core_type<tc>, window_params = [{transform_indices = @transform_0, window_bounds = array<i64: 1>}, {transform_indices = @transform_1, window_bounds = array<i64: 16, 512>}, {pipeline_mode = #tpu.pipeline_mode<synchronous>, transform_indices = @transform_2, window_bounds = array<i64: 512, 512>}, {pipeline_mode = #tpu.pipeline_mode<synchronous>, transform_indices = @transform_3, window_bounds = array<i64: 1, 512>}, {pipeline_mode = #tpu.pipeline_mode<synchronous>, transform_indices = @transform_4, window_bounds = array<i64: 512, 512>}, {pipeline_mode = #tpu.pipeline_mode<synchronous>, transform_indices = @transform_5, window_bounds = array<i64: 1, 512>}, {pipeline_mode = #tpu.pipeline_mode<synchronous>, transform_indices = @transform_6, window_bounds = array<i64: 512, 768>}, {pipeline_mode = #tpu.pipeline_mode<synchronous>, transform_indices = @transform_7, window_bounds = array<i64: 1, 768>}, {pipeline_mode = #tpu.pipeline_mode<synchronous>, transform_indices = @transform_8, window_bounds = array<i64: 1, 768>}, {transform_indices = @transform_9, window_bounds = array<i64: 16, 768>}]} {
    %c0 = arith.constant 0 : index
    %0 = memref.load %arg1[%c0] : memref<1xf32, #tpu.memory_space<smem>>
    %c0_0 = arith.constant 0 : index
    %c0_1 = arith.constant 0 : index
    %1 = vector.load %arg2[%c0_0, %c0_1] : memref<16x512xbf16, #tpu.memory_space<vmem>>, vector<16x512xbf16>
    %2 = arith.extf %1 : vector<16x512xbf16> to vector<16x512xf32>
    %3 = arith.mulf %2, %2 : vector<16x512xf32>
    %cst = arith.constant dense<0.000000e+00> : vector<16xf32>
    %4 = vector.multi_reduction <add>, %3, %cst [1] : vector<16x512xf32> to vector<16xf32>
    %5 = vector.shape_cast %4 : vector<16xf32> to vector<16x1xf32>
    %cst_2 = arith.constant 5.120000e+02 : f32
    %6 = vector.broadcast %cst_2 : f32 to vector<16x1xf32>
    %7 = arith.divf %5, %6 : vector<16x1xf32>
    %cst_3 = arith.constant 9.99999993E-9 : f32
    %8 = vector.broadcast %cst_3 : f32 to vector<16x1xf32>
    %9 = arith.addf %7, %8 : vector<16x1xf32>
    %10 = math.rsqrt %9 : vector<16x1xf32>
    %11 = vector.broadcast %10 : vector<16x1xf32> to vector<16x512xf32>
    %12 = arith.mulf %2, %11 : vector<16x512xf32>
    %13 = arith.truncf %12 : vector<16x512xf32> to vector<16x512xbf16>
    %c0_4 = arith.constant 0 : index
    %c0_5 = arith.constant 0 : index
    %14 = vector.load %arg3[%c0_4, %c0_5] : memref<512x512xbf16, #tpu.memory_space<vmem>>, vector<512x512xbf16>
    %cst_6 = arith.constant dense<0.000000e+00> : vector<16x512xf32>
    %15 = tpu.matmul %13, %14, %cst_6 {dimension_numbers = #tpu.dot_dimension_numbers<[1], [0], [0], [1], [0, 0, 1, 1], [], []>} : vector<16x512xbf16>, vector<512x512xbf16>, vector<16x512xf32> -> vector<16x512xf32>
    %c0_7 = arith.constant 0 : index
    %c0_8 = arith.constant 0 : index
    %16 = vector.load %arg4[%c0_7, %c0_8] : memref<1x512xf32, #tpu.memory_space<vmem>>, vector<1x512xf32>
    %17 = vector.broadcast %16 : vector<1x512xf32> to vector<16x512xf32>
    %18 = arith.addf %15, %17 : vector<16x512xf32>
    %cst_9 = arith.constant 2.000000e-01 : f32
    %19 = vector.broadcast %cst_9 : f32 to vector<16x512xf32>
    %20 = arith.mulf %19, %18 : vector<16x512xf32>
    %21 = arith.maximumf %18, %20 : vector<16x512xf32>
    %22 = arith.truncf %21 : vector<16x512xf32> to vector<16x512xbf16>
    %c0_10 = arith.constant 0 : index
    %c0_11 = arith.constant 0 : index
    %23 = vector.load %arg5[%c0_10, %c0_11] : memref<512x512xbf16, #tpu.memory_space<vmem>>, vector<512x512xbf16>
    %cst_12 = arith.constant dense<0.000000e+00> : vector<16x512xf32>
    %24 = tpu.matmul %22, %23, %cst_12 {dimension_numbers = #tpu.dot_dimension_numbers<[1], [0], [0], [1], [0, 0, 1, 1], [], []>} : vector<16x512xbf16>, vector<512x512xbf16>, vector<16x512xf32> -> vector<16x512xf32>
    %c0_13 = arith.constant 0 : index
    %c0_14 = arith.constant 0 : index
    %25 = vector.load %arg6[%c0_13, %c0_14] : memref<1x512xf32, #tpu.memory_space<vmem>>, vector<1x512xf32>
    %26 = vector.broadcast %25 : vector<1x512xf32> to vector<16x512xf32>
    %27 = arith.addf %24, %26 : vector<16x512xf32>
    %cst_15 = arith.constant 2.000000e-01 : f32
    %28 = vector.broadcast %cst_15 : f32 to vector<16x512xf32>
    %29 = arith.mulf %28, %27 : vector<16x512xf32>
    %30 = arith.maximumf %27, %29 : vector<16x512xf32>
    %cst_16 = arith.constant 1.000000e+00 : f32
    %31 = arith.subf %cst_16, %0 : f32
    %c0_17 = arith.constant 0 : index
    %c0_18 = arith.constant 0 : index
    %32 = vector.load %arg8[%c0_17, %c0_18] : memref<1x768xf32, #tpu.memory_space<vmem>>, vector<1x768xf32>
    %33 = vector.broadcast %31 : f32 to vector<1x768xf32>
    %34 = arith.mulf %33, %32 : vector<1x768xf32>
    %c0_19 = arith.constant 0 : index
    %c0_20 = arith.constant 0 : index
    %35 = vector.load %arg9[%c0_19, %c0_20] : memref<1x768xf32, #tpu.memory_space<vmem>>, vector<1x768xf32>
    %36 = arith.addf %34, %35 : vector<1x768xf32>
    %37 = arith.truncf %30 : vector<16x512xf32> to vector<16x512xbf16>
    %c0_21 = arith.constant 0 : index
    %c0_22 = arith.constant 0 : index
    %38 = vector.load %arg7[%c0_21, %c0_22] : memref<512x768xbf16, #tpu.memory_space<vmem>>, vector<512x768xbf16>
    %cst_23 = arith.constant dense<0.000000e+00> : vector<16x768xf32>
    %39 = tpu.matmul %37, %38, %cst_23 {dimension_numbers = #tpu.dot_dimension_numbers<[1], [0], [0], [1], [0, 0, 1, 1], [], []>} : vector<16x512xbf16>, vector<512x768xbf16>, vector<16x768xf32> -> vector<16x768xf32>
    %40 = vector.broadcast %0 : f32 to vector<16x768xf32>
    %41 = arith.mulf %40, %39 : vector<16x768xf32>
    %42 = vector.broadcast %36 : vector<1x768xf32> to vector<16x768xf32>
    %43 = arith.addf %41, %42 : vector<16x768xf32>
    %44 = math.tanh %43 : vector<16x768xf32>
    %cst_24 = arith.constant 1.000000e+00 : f32
    %45 = vector.broadcast %cst_24 : f32 to vector<16x768xf32>
    %46 = arith.addf %44, %45 : vector<16x768xf32>
    %cst_25 = arith.constant 5.000000e-01 : f32
    %47 = vector.broadcast %cst_25 : f32 to vector<16x768xf32>
    %48 = arith.mulf %46, %47 : vector<16x768xf32>
    %49 = arith.truncf %48 : vector<16x768xf32> to vector<16x768xbf16>
    %c0_26 = arith.constant 0 : index
    %c0_27 = arith.constant 0 : index
    %50 = vector.load %arg10[%c0_26, %c0_27] : memref<16x768xbf16, #tpu.memory_space<vmem>>, vector<16x768xbf16>
    tpu.vector_store %arg10[%c0_26, %c0_27], %49 {strides = array<i32>} : memref<16x768xbf16, #tpu.memory_space<vmem>>, vector<16x768xbf16>,
    return
  }
  func.func @transform_0(%arg0: i32) -> i32 {
    %c0_i32 = arith.constant 0 : i32
    %c0_i32_0 = arith.constant 0 : i32
    return %c0_i32 : i32
  }
  func.func @transform_1(%arg0: i32) -> (i32, i32) {
    %c0_i32 = arith.constant 0 : i32
    %c0_i32_0 = arith.constant 0 : i32
    return %arg0, %c0_i32 : i32, i32
  }
  func.func @transform_2(%arg0: i32) -> (i32, i32) {
    %c0_i32 = arith.constant 0 : i32
    %c0_i32_0 = arith.constant 0 : i32
    %c0_i32_1 = arith.constant 0 : i32
    return %c0_i32, %c0_i32_0 : i32, i32
  }
  func.func @transform_3(%arg0: i32) -> (i32, i32) {
    %c0_i32 = arith.constant 0 : i32
    %c0_i32_0 = arith.constant 0 : i32
    %c0_i32_1 = arith.constant 0 : i32
    return %c0_i32, %c0_i32_0 : i32, i32
  }
  func.func @transform_4(%arg0: i32) -> (i32, i32) {
    %c0_i32 = arith.constant 0 : i32
    %c0_i32_0 = arith.constant 0 : i32
    %c0_i32_1 = arith.constant 0 : i32
    return %c0_i32, %c0_i32_0 : i32, i32
  }
  func.func @transform_5(%arg0: i32) -> (i32, i32) {
    %c0_i32 = arith.constant 0 : i32
    %c0_i32_0 = arith.constant 0 : i32
    %c0_i32_1 = arith.constant 0 : i32
    return %c0_i32, %c0_i32_0 : i32, i32
  }
  func.func @transform_6(%arg0: i32) -> (i32, i32) {
    %c0_i32 = arith.constant 0 : i32
    %c0_i32_0 = arith.constant 0 : i32
    %c0_i32_1 = arith.constant 0 : i32
    return %c0_i32, %c0_i32_0 : i32, i32
  }
  func.func @transform_7(%arg0: i32) -> (i32, i32) {
    %c0_i32 = arith.constant 0 : i32
    %c0_i32_0 = arith.constant 0 : i32
    %c0_i32_1 = arith.constant 0 : i32
    return %c0_i32, %c0_i32_0 : i32, i32
  }
  func.func @transform_8(%arg0: i32) -> (i32, i32) {
    %c0_i32 = arith.constant 0 : i32
    %c0_i32_0 = arith.constant 0 : i32
    %c0_i32_1 = arith.constant 0 : i32
    return %c0_i32, %c0_i32_0 : i32, i32
  }
  func.func @transform_9(%arg0: i32) -> (i32, i32) {
    %c0_i32 = arith.constant 0 : i32
    %c0_i32_0 = arith.constant 0 : i32
    return %arg0, %c0_i32 : i32, i32
  }
}

</mosaic_0001>

<bundles_post_ra>
// kernel: _eg3d_forward.1
= control target key start
LH: loop header
LB: loop body
LE: loop exit
PB: predicated region body
PF: predicated region fallthrough
CT: control target
= control target key end

     0   :  { %15 = vsyncpa [#allocation4], 0  ;;  %s6420_s0 = inlined_call_operand.<no memory space> [shape: f32[1], index: 0, kind: input, shape index: {}]   ;;  %s6421_s1 = inlined_call_operand.vmem [shape: bf16[16,512], index: 1, kind: input, shape index: {}]   ;;  %s6422_s2 = inlined_call_operand.hbm [shape: bf16[512,512], index: 2, kind: input, shape index: {}]   ;;  %s6423_s3 = inlined_call_operand.vmem [shape: f32[1,512], index: 3, kind: input, shape index: {}]   ;;  %s6424_s4 = inlined_call_operand.hbm [shape: bf16[512,512], index: 4, kind: input, shape index: {}]   ;;  %s6425_s5 = inlined_call_operand.vmem [shape: f32[1,512], index: 5, kind: input, shape index: {}]   ;;  %s6426_s6 = inlined_call_operand.hbm [shape: bf16[512,768], index: 6, kind: input, shape index: {}]   ;;  %s6427_s7 = inlined_call_operand.vmem [shape: f32[1,768], index: 7, kind: input, shape index: {}]   ;;  %s6428_s8 = inlined_call_operand.vmem [shape: f32[1,768], index: 8, kind: input, shape index: {}]   ;;  %s6429_s9 = inlined_call_operand.vmem [shape: bf16[16,768], index: 9, kind: output, shape index: {}]  }
   0x1   :  { %16 = vsyncpa [#allocation6], 0  ;;  %s40_s11 = sshll.u32 %s6424_s4, 4  ;;  %s6138_s12 = smov [#allocation5]   ;;  %s41_s11 = int_to_ptr.hbm [resolvable:$true] %s40_s11 }
   0x2   :  { %s42_s13 = sshll.u32 %s6138_s12, 4  ;;  %s25_s16 = sshll.u32 %s6422_s2, 4  ;;  %s43_s13 = int_to_ptr.vmem [resolvable:$true] %s42_s13  ;;  %s26_s16 = int_to_ptr.hbm [resolvable:$true] %s25_s16 }
   0x3   :  { %s6139_s17 = smov 256   ;;  %s6140_s18 = smov 16  }
   0x4   :  { %48 = dma.hbm_to_vmem [thread:$0]  %s41_s11, 16384, %s43_s13, [#allocation6], %s6139_s17, %s6139_s17, %s6140_s18  }
   0x5   :  { %s6141_s19 = smov [#allocation3]   ;;  %s55_s23 = sshll.u32 %s6426_s6, 4  ;;  %s56_s23 = int_to_ptr.hbm [resolvable:$true] %s55_s23 }
   0x6   :  { %s27_s20 = sshll.u32 %s6141_s19, 4  ;;  %s6142_s4 = smov [#allocation7]   ;;  %s28_s20 = int_to_ptr.vmem [resolvable:$true] %s27_s20 }
   0x7   :  { %33 = dma.hbm_to_vmem [thread:$0]  %s26_s16, 16384, %s28_s20, [#allocation4], %s6139_s17, %s6139_s17, %s6140_s18  }
   0x8   :  { %s57_s24 = sshll.u32 %s6142_s4, 4  ;;  %s6143_s25 = smov 384   ;;  %s58_s24 = int_to_ptr.vmem [resolvable:$true] %s57_s24 }
   0x9   :  { %s6144_s26 = smov 24  }
   0xa   :  { %63 = dma.hbm_to_vmem [thread:$0]  %s56_s23, 24576, %s58_s24, [#allocation6], %s6143_s25, %s6143_s25, %s6144_s26  }
   0xb   :  { %6134 = dma.done.wait [#allocation4], 16384  }
   0xc   :  { %6135 = vsyncadd [#allocation4], 4294950912 }
   0xd   :  { %6136 = dma.done.wait [#allocation6], 40960  }
   0xe   :  { %6137 = vsyncadd [#allocation6], 4294926336  ;;  %v81_v0 = vld [vmem:[%s6421_s1] sm:$0xff]  ;;  %v82_v1 = vld [vmem:[%s6421_s1 + $0x8] sm:$0xff]  ;;  %s2194_s15 = ssub.f32 1.0, %s6420_s0 }
   0xf   :  { %v83_v2 = vld [vmem:[%s6421_s1 + $0x10] sm:$0xff]  ;;  %v6214_v3 = vunpack.c.l.bf16 %v81_v0  ;;  %v6216_v4 = vunpack.c.h.bf16 %v81_v0  ;;  %v6218_v5 = vunpack.c.l.bf16 %v82_v1  ;;  %v6220_v6 = vunpack.c.h.bf16 %v82_v1  ;;  %v84_v7 = vld [vmem:[%s6421_s1 + $0x18] sm:$0xff]  ;;  %v3898_v8 = vld [vmem:[#allocation3 + $0xe0] sm:$0xf] }
  0x10   :  { %v5606_v9 = vld [vmem:[#allocation3 + $0xec] sm:$0xf0]  ;;  %v6225_v10 = vunpack.c.l.bf16 %v83_v2  ;;  %v6227_v11 = vunpack.c.h.bf16 %v83_v2  ;;  %v6229_v12 = vunpack.c.l.bf16 %v84_v7  ;;  %v4026_v13 = vld [vmem:[#allocation3 + $0x1e0] sm:$0xf]  ;;  %v6245_v40 = vunpack.c.h.bf16 %v84_v7 }
  0x11   :  { %v5638_v14 = vld [vmem:[#allocation3 + $0x1ec] sm:$0xf0]  ;;  %v4154_v15 = vld [vmem:[#allocation3 + $0x2e0] sm:$0xf]  ;;  %v93_v16 = vmul.f32 %v6214_v3, %v6214_v3  ;;  %v94_v17 = vmul.f32 %v6216_v4, %v6216_v4  ;;  %v95_v18 = vmul.f32 %v6218_v5, %v6218_v5  ;;  %v96_v22 = vmul.f32 %v6220_v6, %v6220_v6 }
  0x12   :  { %v5670_v19 = vld [vmem:[#allocation3 + $0x2ec] sm:$0xf0]  ;;  %v4282_v20 = vld [vmem:[#allocation3 + $0x3e0] sm:$0xf]  ;;  %v97_v23 = vmul.f32 %v6225_v10, %v6225_v10  ;;  %v98_v24 = vmul.f32 %v6227_v11, %v6227_v11  ;;  %v3899_v29 = vor.u32 %v5606_v9, %v3898_v8  ;;  %v4027_v30 = vor.u32 %v5638_v14, %v4026_v13 }
  0x13   :  { %v5702_v21 = vld [vmem:[#allocation3 + $0x3ec] sm:$0xf0]  ;;  %v3882_v25 = vld [vmem:[#allocation3 + $0xc0] sm:$0xf]  ;;  %v101_v28 = vadd.f32 %v94_v17, %v93_v16  ;;  %v4155_v31 = vor.u32 %v5670_v19, %v4154_v15  ;;  %v99_v35 = vmul.f32 %v6229_v12, %v6229_v12  ;;  %v100_v55 = vmul.f32 %v6245_v40, %v6245_v40 }
  0x14   :  { %v5602_v26 = vld [vmem:[#allocation3 + $0xcc] sm:$0xf0]  ;;  %v4010_v27 = vld [vmem:[#allocation3 + $0x1c0] sm:$0xf]  ;;  %v4283_v36 = vor.u32 %v5702_v21, %v4282_v20  ;;  %v106_v41 = vadd.f32 %v98_v24, %v97_v23  ;;  %932 = vmatpush.bf16.msra.mxu0 %v3899_v29  ;;  %946 = vmatpush.bf16.msra.mxu1 %v4027_v30 }
  0x15   :  { %v5634_v32 = vld [vmem:[#allocation3 + $0x1cc] sm:$0xf0]  ;;  %v4138_v33 = vld [vmem:[#allocation3 + $0x2c0] sm:$0xf]  ;;  %v102_v39 = vadd.f32 %v101_v28, %v95_v18  ;;  %v3883_v42 = vor.u32 %v5602_v26, %v3882_v25  ;;  %960 = vmatpush.bf16.msra.mxu2 %v4155_v31 }
  0x16   :  { %v5666_v34 = vld [vmem:[#allocation3 + $0x2cc] sm:$0xf0]  ;;  %v4266_v37 = vld [vmem:[#allocation3 + $0x3c0] sm:$0xf]  ;;  %974 = vmatpush.bf16.msra.mxu3 %v4283_v36  ;;  %v4011_v43 = vor.u32 %v5634_v32, %v4010_v27  ;;  %v107_v56 = vadd.f32 %v106_v41, %v99_v35 }
  0x17   :  { %v5698_v38 = vld [vmem:[#allocation3 + $0x3cc] sm:$0xf0]  ;;  %v4139_v44 = vor.u32 %v5666_v34, %v4138_v33  ;;  %v3866_v45 = vld [vmem:[#allocation3 + $0xa0] sm:$0xf]  ;;  %v103_v48 = vadd.f32 %v102_v39, %v96_v22 }
  0x18   :  { %v5598_v46 = vld [vmem:[#allocation3 + $0xac] sm:$0xf0]  ;;  %v3994_v47 = vld [vmem:[#allocation3 + $0x1a0] sm:$0xf]  ;;  %v4267_v49 = vor.u32 %v5698_v38, %v4266_v37  ;;  %933 = vmatpush.bf16.msra.mxu0 %v3883_v42  ;;  %947 = vmatpush.bf16.msra.mxu1 %v4011_v43  ;;  %v108_v9 = vadd.f32 %v107_v56, %v100_v55 }
  0x19   :  { %v5630_v50 = vld [vmem:[#allocation3 + $0x1ac] sm:$0xf0]  ;;  %v4122_v51 = vld [vmem:[#allocation3 + $0x2a0] sm:$0xf]  ;;  %104 = vadd.xlane.f32.xlu0 %v103_v48  ;;  %v3867_v57 = vor.u32 %v5598_v46, %v3866_v45  ;;  %961 = vmatpush.bf16.msra.mxu2 %v4139_v44 }
  0x1a   :  { %v5662_v52 = vld [vmem:[#allocation3 + $0x2ac] sm:$0xf0]  ;;  %v4250_v53 = vld [vmem:[#allocation3 + $0x3a0] sm:$0xf]  ;;  %v3995_v58 = vor.u32 %v5630_v50, %v3994_v47  ;;  %975 = vmatpush.bf16.msra.mxu3 %v4267_v49 }
  0x1b   :  { %v5694_v54 = vld [vmem:[#allocation3 + $0x3ac] sm:$0xf0]  ;;  %v4123_v59 = vor.u32 %v5662_v52, %v4122_v51  ;;  %v3850_v60 = vld [vmem:[#allocation3 + $0x80] sm:$0xf] }
  0x1c   :  { %v5594_v61 = vld [vmem:[#allocation3 + $0x8c] sm:$0xf0]  ;;  %v3978_v62 = vld [vmem:[#allocation3 + $0x180] sm:$0xf]  ;;  %v4251_v63 = vor.u32 %v5694_v54, %v4250_v53  ;;  %934 = vmatpush.bf16.msra.mxu0 %v3867_v57  ;;  %948 = vmatpush.bf16.msra.mxu1 %v3995_v58 }
  0x1d   :  { %v5626_v0 = vld [vmem:[#allocation3 + $0x18c] sm:$0xf0]  ;;  %v4106_v1 = vld [vmem:[#allocation3 + $0x280] sm:$0xf]  ;;  %v3851_v13 = vor.u32 %v5594_v61, %v3850_v60  ;;  %962 = vmatpush.bf16.msra.mxu2 %v4123_v59 }
  0x1e   :  { %v5658_v2 = vld [vmem:[#allocation3 + $0x28c] sm:$0xf0]  ;;  %v4234_v7 = vld [vmem:[#allocation3 + $0x380] sm:$0xf]  ;;  %v3979_v14 = vor.u32 %v5626_v0, %v3978_v62  ;;  %976 = vmatpush.bf16.msra.mxu3 %v4251_v63 }
  0x1f   :  { %v5690_v8 = vld [vmem:[#allocation3 + $0x38c] sm:$0xf0]  ;;  %v4107_v15 = vor.u32 %v5658_v2, %v4106_v1  ;;  %v3834_v16 = vld [vmem:[#allocation3 + $0x60] sm:$0xf]  ;;  %v5604_v1 = vld [vmem:[#allocation3 + $0xe4] sm:$0xf] }
  0x20   :  { %v5590_v17 = vld [vmem:[#allocation3 + $0x6c] sm:$0xf0]  ;;  %v3962_v18 = vld [vmem:[#allocation3 + $0x160] sm:$0xf]  ;;  %v4235_v19 = vor.u32 %v5690_v8, %v4234_v7  ;;  %935 = vmatpush.bf16.msra.mxu0 %v3851_v13  ;;  %949 = vmatpush.bf16.msra.mxu1 %v3979_v14  ;;  %v6145_v2 = vmov 512.0  }
  0x21   :  { %v5622_v20 = vld [vmem:[#allocation3 + $0x16c] sm:$0xf0]  ;;  %v4090_v21 = vld [vmem:[#allocation3 + $0x260] sm:$0xf]  ;;  %109 = vadd.xlane.f32.xlu0 %v108_v9  ;;  %v3835_v25 = vor.u32 %v5590_v17, %v3834_v16  ;;  %963 = vmatpush.bf16.msra.mxu2 %v4107_v15  ;;  %6032 = vrcp.f32 %v6145_v2  ;;  %v3900_v8 = vld [vmem:[#allocation3 + $0xf0] sm:$0xf0] }
  0x22   :  { %v5654_v22 = vld [vmem:[#allocation3 + $0x26c] sm:$0xf0]  ;;  %v4218_v23 = vld [vmem:[#allocation3 + $0x360] sm:$0xf]  ;;  %v3963_v26 = vor.u32 %v5622_v20, %v3962_v18  ;;  %977 = vmatpush.bf16.msra.mxu3 %v4235_v19  ;;  %v5636_v9 = vld [vmem:[#allocation3 + $0x1e4] sm:$0xf]  ;;  %v3903_v14 = vor.u32 %v5604_v1, %v3900_v8 }
  0x23   :  { %v5686_v24 = vld [vmem:[#allocation3 + $0x36c] sm:$0xf0]  ;;  %v4091_v27 = vor.u32 %v5654_v22, %v4090_v21  ;;  %v3818_v28 = vld [vmem:[#allocation3 + $0x40] sm:$0xf]  ;;  %v4028_v13 = vld [vmem:[#allocation3 + $0x1f0] sm:$0xf0] }
  0x24   :  { %v5586_v29 = vld [vmem:[#allocation3 + $0x4c] sm:$0xf0]  ;;  %v3946_v30 = vld [vmem:[#allocation3 + $0x140] sm:$0xf]  ;;  %v4219_v31 = vor.u32 %v5686_v24, %v4218_v23  ;;  %936 = vmatpush.bf16.msra.mxu0 %v3835_v25  ;;  %950 = vmatpush.bf16.msra.mxu1 %v3963_v26  ;;  %v4031_v15 = vor.u32 %v5636_v9, %v4028_v13  ;;  %v5668_v16 = vld [vmem:[#allocation3 + $0x2e4] sm:$0xf] }
  0x25   :  { %v5618_v32 = vld [vmem:[#allocation3 + $0x14c] sm:$0xf0]  ;;  %v4074_v33 = vld [vmem:[#allocation3 + $0x240] sm:$0xf]  ;;  %v3819_v37 = vor.u32 %v5586_v29, %v3818_v28  ;;  %964 = vmatpush.bf16.msra.mxu2 %v4091_v27  ;;  %v4156_v17 = vld [vmem:[#allocation3 + $0x2f0] sm:$0xf0] }
  0x26   :  { %v5650_v34 = vld [vmem:[#allocation3 + $0x24c] sm:$0xf0]  ;;  %v4202_v35 = vld [vmem:[#allocation3 + $0x340] sm:$0xf]  ;;  %v3947_v38 = vor.u32 %v5618_v32, %v3946_v30  ;;  %978 = vmatpush.bf16.msra.mxu3 %v4219_v31  ;;  %v5700_v18 = vld [vmem:[#allocation3 + $0x3e4] sm:$0xf]  ;;  %v4159_v19 = vor.u32 %v5668_v16, %v4156_v17 }
  0x27   :  { %v5682_v36 = vld [vmem:[#allocation3 + $0x34c] sm:$0xf0]  ;;  %v4075_v39 = vor.u32 %v5650_v34, %v4074_v33  ;;  %v3802_v42 = vld [vmem:[#allocation3 + $0x20] sm:$0xf]  ;;  %v4284_v20 = vld [vmem:[#allocation3 + $0x3f0] sm:$0xf0]  ;;  %v6249_v34 = vpop.eup %6032 }
  0x28   :  { %v4203_v41 = vor.u32 %v5682_v36, %v4202_v35  ;;  %937 = vmatpush.bf16.msra.mxu0 %v3819_v37  ;;  %951 = vmatpush.bf16.msra.mxu1 %v3947_v38  ;;  %v5582_v43 = vld [vmem:[#allocation3 + $0x2c] sm:$0xf0]  ;;  %v3930_v44 = vld [vmem:[#allocation3 + $0x120] sm:$0xf]  ;;  %v5600_v21 = vld [vmem:[#allocation3 + $0xc4] sm:$0xf]  ;;  %v4287_v23 = vor.u32 %v5700_v18, %v4284_v20  ;;  %vm116_vm0 = vweird.f32 %v6249_v34 }
  0x29   :  { %965 = vmatpush.bf16.msra.mxu2 %v4075_v39  ;;  %v3803_v45 = vor.u32 %v5582_v43, %v3802_v42  ;;  %v5614_v46 = vld [vmem:[#allocation3 + $0x12c] sm:$0xf0]  ;;  %v4058_v47 = vld [vmem:[#allocation3 + $0x220] sm:$0xf]  ;;  %v3884_v22 = vld [vmem:[#allocation3 + $0xd0] sm:$0xf0] }
  0x2a   :  { %979 = vmatpush.bf16.msra.mxu3 %v4203_v41  ;;  %v5646_v48 = vld [vmem:[#allocation3 + $0x22c] sm:$0xf0]  ;;  %v3931_v49 = vor.u32 %v5614_v46, %v3930_v44  ;;  %v4186_v51 = vld [vmem:[#allocation3 + $0x320] sm:$0xf]  ;;  %v3887_v24 = vor.u32 %v5600_v21, %v3884_v22  ;;  %v5632_v25 = vld [vmem:[#allocation3 + $0x1c4] sm:$0xf] }
  0x2b   :  { %v4059_v50 = vor.u32 %v5646_v48, %v4058_v47  ;;  %v5678_v52 = vld [vmem:[#allocation3 + $0x32c] sm:$0xf0]  ;;  %v3786_v54 = vld [vmem:[#allocation3] sm:$0xf]  ;;  %v4012_v26 = vld [vmem:[#allocation3 + $0x1d0] sm:$0xf0] }
  0x2c   :  { %938 = vmatpush.bf16.msra.mxu0 %v3803_v45  ;;  %v4187_v53 = vor.u32 %v5678_v52, %v4186_v51  ;;  %952 = vmatpush.bf16.msra.mxu1 %v3931_v49  ;;  %v5578_v55 = vld [vmem:[#allocation3 + $0xc] sm:$0xf0]  ;;  %v3914_v56 = vld [vmem:[#allocation3 + $0x100] sm:$0xf]  ;;  %v5664_v27 = vld [vmem:[#allocation3 + $0x2c4] sm:$0xf]  ;;  %v4015_v28 = vor.u32 %v5632_v25, %v4012_v26 }
  0x2d   :  { %966 = vmatpush.bf16.msra.mxu2 %v4059_v50  ;;  %v3787_v57 = vor.u32 %v5578_v55, %v3786_v54  ;;  %v5610_v58 = vld [vmem:[#allocation3 + $0x10c] sm:$0xf0]  ;;  %v4042_v59 = vld [vmem:[#allocation3 + $0x200] sm:$0xf]  ;;  %v4140_v29 = vld [vmem:[#allocation3 + $0x2d0] sm:$0xf0] }
  0x2e   :  { %980 = vmatpush.bf16.msra.mxu3 %v4187_v53  ;;  %v5642_v60 = vld [vmem:[#allocation3 + $0x20c] sm:$0xf0]  ;;  %v3915_v61 = vor.u32 %v5610_v58, %v3914_v56  ;;  %v4170_v63 = vld [vmem:[#allocation3 + $0x300] sm:$0xf]  ;;  %v5696_v30 = vld [vmem:[#allocation3 + $0x3c4] sm:$0xf]  ;;  %v4143_v32 = vor.u32 %v5664_v27, %v4140_v29 }
  0x2f   :  { %v4043_v62 = vor.u32 %v5642_v60, %v4042_v59  ;;  %v5674_v0 = vld [vmem:[#allocation3 + $0x30c] sm:$0xf0]  ;;  %v4268_v31 = vld [vmem:[#allocation3 + $0x3d0] sm:$0xf0]  ;;  %v5596_v35 = vld [vmem:[#allocation3 + $0xa4] sm:$0xf] }
  0x30   :  { %939 = vmatpush.bf16.msra.mxu0 %v3787_v57  ;;  %v4171_v7 = vor.u32 %v5674_v0, %v4170_v63  ;;  %953 = vmatpush.bf16.msra.mxu1 %v3915_v61  ;;  %v4271_v33 = vor.u32 %v5696_v30, %v4268_v31  ;;  %v3868_v36 = vld [vmem:[#allocation3 + $0xb0] sm:$0xf0]  ;;  %v5628_v37 = vld [vmem:[#allocation3 + $0x1a4] sm:$0xf]  ;;  %v112_v47 = vmul.f32 512.0, %v6249_v34 }
  0x31   :  { %967 = vmatpush.bf16.msra.mxu2 %v4043_v62  ;;  %v3871_v38 = vor.u32 %v5596_v35, %v3868_v36  ;;  %v3996_v39 = vld [vmem:[#allocation3 + $0x1b0] sm:$0xf0]  ;;  %v5660_v41 = vld [vmem:[#allocation3 + $0x2a4] sm:$0xf] }
  0x32   :  { %981 = vmatpush.bf16.msra.mxu3 %v4171_v7  ;;  %v4124_v42 = vld [vmem:[#allocation3 + $0x2b0] sm:$0xf0]  ;;  %v3999_v43 = vor.u32 %v5628_v37, %v3996_v39  ;;  %v5692_v45 = vld [vmem:[#allocation3 + $0x3a4] sm:$0xf]  ;;  %v113_v60 = vsub.f32 1.0, %v112_v47 }
  0x33   :  { %v4127_v44 = vor.u32 %v5660_v41, %v4124_v42  ;;  %v4252_v46 = vld [vmem:[#allocation3 + $0x3b0] sm:$0xf0]  ;;  %v5592_v49 = vld [vmem:[#allocation3 + $0x84] sm:$0xf] }
  0x34   :  { %988 = vmatpush.bf16.msrb.mxu0 %v3903_v14  ;;  %1002 = vmatpush.bf16.msrb.mxu1 %v4031_v15  ;;  %v4255_v48 = vor.u32 %v5692_v45, %v4252_v46  ;;  %v3852_v50 = vld [vmem:[#allocation3 + $0x90] sm:$0xf0]  ;;  %v5624_v51 = vld [vmem:[#allocation3 + $0x184] sm:$0xf]  ;;  %v114_v16 = vmul.f32 %v6249_v34, %v113_v60 }
  0x35   :  { %1016 = vmatpush.bf16.msrb.mxu2 %v4159_v19  ;;  %v3855_v52 = vor.u32 %v5592_v49, %v3852_v50  ;;  %v3980_v53 = vld [vmem:[#allocation3 + $0x190] sm:$0xf0]  ;;  %v5656_v54 = vld [vmem:[#allocation3 + $0x284] sm:$0xf] }
  0x36   :  { %1030 = vmatpush.bf16.msrb.mxu3 %v4287_v23  ;;  %v4108_v55 = vld [vmem:[#allocation3 + $0x290] sm:$0xf0]  ;;  %v3983_v56 = vor.u32 %v5624_v51, %v3980_v53  ;;  %v5688_v58 = vld [vmem:[#allocation3 + $0x384] sm:$0xf]  ;;  %v115_v29 = vadd.f32 %v6249_v34, %v114_v16 }
  0x37   :  { %v4111_v57 = vor.u32 %v5656_v54, %v4108_v55  ;;  %v4236_v59 = vld [vmem:[#allocation3 + $0x390] sm:$0xf0]  ;;  %v5588_v62 = vld [vmem:[#allocation3 + $0x64] sm:$0xf] }
  0x38   :  { %989 = vmatpush.bf16.msrb.mxu0 %v3887_v24  ;;  %1003 = vmatpush.bf16.msrb.mxu1 %v4015_v28  ;;  %v4239_v61 = vor.u32 %v5688_v58, %v4236_v59  ;;  %v3836_v63 = vld [vmem:[#allocation3 + $0x70] sm:$0xf0]  ;;  %v5620_v0 = vld [vmem:[#allocation3 + $0x164] sm:$0xf] }
  0x39   :  { %1017 = vmatpush.bf16.msrb.mxu2 %v4143_v32  ;;  %v3839_v1 = vor.u32 %v5588_v62, %v3836_v63  ;;  %v3964_v2 = vld [vmem:[#allocation3 + $0x170] sm:$0xf0]  ;;  %v5652_v7 = vld [vmem:[#allocation3 + $0x264] sm:$0xf] }
  0x3a   :  { %1031 = vmatpush.bf16.msrb.mxu3 %v4271_v33  ;;  %v4092_v8 = vld [vmem:[#allocation3 + $0x270] sm:$0xf0]  ;;  %v3967_v9 = vor.u32 %v5620_v0, %v3964_v2  ;;  %v5684_v14 = vld [vmem:[#allocation3 + $0x364] sm:$0xf] }
  0x3b   :  { %v4095_v13 = vor.u32 %v5652_v7, %v4092_v8  ;;  %v4220_v15 = vld [vmem:[#allocation3 + $0x370] sm:$0xf0]  ;;  %v5584_v18 = vld [vmem:[#allocation3 + $0x44] sm:$0xf] }
  0x3c   :  { %990 = vmatpush.bf16.msrb.mxu0 %v3871_v38  ;;  %1004 = vmatpush.bf16.msrb.mxu1 %v3999_v43  ;;  %v4223_v17 = vor.u32 %v5684_v14, %v4220_v15  ;;  %v3820_v19 = vld [vmem:[#allocation3 + $0x50] sm:$0xf0]  ;;  %v5616_v20 = vld [vmem:[#allocation3 + $0x144] sm:$0xf] }
  0x3d   :  { %1018 = vmatpush.bf16.msrb.mxu2 %v4127_v44  ;;  %v3823_v21 = vor.u32 %v5584_v18, %v3820_v19  ;;  %v3948_v22 = vld [vmem:[#allocation3 + $0x150] sm:$0xf0]  ;;  %v5648_v23 = vld [vmem:[#allocation3 + $0x244] sm:$0xf]  ;;  %v117_v44 = vsel %vm116_vm0, %v6249_v34, %v115_v29  ;;  %v3906_v19 = vld [vmem:[#allocation3 + $0xe8] sm:$0xf] }
  0x3e   :  { %1032 = vmatpush.bf16.msrb.mxu3 %v4255_v48  ;;  %v4076_v24 = vld [vmem:[#allocation3 + $0x250] sm:$0xf0]  ;;  %v3951_v25 = vor.u32 %v5616_v20, %v3948_v22  ;;  %v5680_v27 = vld [vmem:[#allocation3 + $0x344] sm:$0xf]  ;;  %v5607_v20 = vld [vmem:[#allocation3 + $0xf4] sm:$0xf0] }
  0x3f   :  { %v4079_v26 = vor.u32 %v5648_v23, %v4076_v24  ;;  %v4204_v28 = vld [vmem:[#allocation3 + $0x350] sm:$0xf0]  ;;  %v5580_v31 = vld [vmem:[#allocation3 + $0x24] sm:$0xf]  ;;  %v4034_v22 = vld [vmem:[#allocation3 + $0x1e8] sm:$0xf] }
  0x40   :  { %991 = vmatpush.bf16.msrb.mxu0 %v3855_v52  ;;  %1005 = vmatpush.bf16.msrb.mxu1 %v3983_v56  ;;  %v4207_v30 = vor.u32 %v5680_v27, %v4204_v28  ;;  %v3804_v32 = vld [vmem:[#allocation3 + $0x30] sm:$0xf0]  ;;  %v5612_v33 = vld [vmem:[#allocation3 + $0x124] sm:$0xf]  ;;  %v5639_v23 = vld [vmem:[#allocation3 + $0x1f4] sm:$0xf0] }
  0x41   :  { %1019 = vmatpush.bf16.msrb.mxu2 %v4111_v57  ;;  %v3807_v35 = vor.u32 %v5580_v31, %v3804_v32  ;;  %v3932_v36 = vld [vmem:[#allocation3 + $0x130] sm:$0xf0]  ;;  %v5644_v37 = vld [vmem:[#allocation3 + $0x224] sm:$0xf]  ;;  %v4162_v28 = vld [vmem:[#allocation3 + $0x2e8] sm:$0xf] }
  0x42   :  { %1033 = vmatpush.bf16.msrb.mxu3 %v4239_v61  ;;  %v4060_v38 = vld [vmem:[#allocation3 + $0x230] sm:$0xf0]  ;;  %v3935_v39 = vor.u32 %v5612_v33, %v3932_v36  ;;  %v5676_v42 = vld [vmem:[#allocation3 + $0x324] sm:$0xf]  ;;  %v5671_v33 = vld [vmem:[#allocation3 + $0x2f4] sm:$0xf0]  ;;  %v3907_v36 = vor.u32 %v5607_v20, %v3906_v19 }
  0x43   :  { %v4063_v41 = vor.u32 %v5644_v37, %v4060_v38  ;;  %v4188_v43 = vld [vmem:[#allocation3 + $0x330] sm:$0xf0]  ;;  %v5576_v46 = vld [vmem:[#allocation3 + $0x4] sm:$0xf]  ;;  %v4035_v37 = vor.u32 %v5639_v23, %v4034_v22  ;;  %v5623_v19 = vld [vmem:[#allocation3 + $0x174] sm:$0xf0] }
  0x44   :  { %992 = vmatpush.bf16.msrb.mxu0 %v3839_v1  ;;  %1006 = vmatpush.bf16.msrb.mxu1 %v3967_v9  ;;  %v4191_v45 = vor.u32 %v5676_v42, %v4188_v43  ;;  %v3788_v47 = vld [vmem:[#allocation3 + $0x10] sm:$0xf0]  ;;  %v5608_v48 = vld [vmem:[#allocation3 + $0x104] sm:$0xf]  ;;  %v5635_v42 = vld [vmem:[#allocation3 + $0x1d4] sm:$0xf0] }
  0x45   :  { %1020 = vmatpush.bf16.msrb.mxu2 %v4095_v13  ;;  %v3916_v49 = vld [vmem:[#allocation3 + $0x110] sm:$0xf0]  ;;  %v5640_v50 = vld [vmem:[#allocation3 + $0x204] sm:$0xf]  ;;  %v3791_v53 = vor.u32 %v5576_v46, %v3788_v47  ;;  %v5667_v43 = vld [vmem:[#allocation3 + $0x2d4] sm:$0xf0] }
  0x46   :  { %1034 = vmatpush.bf16.msrb.mxu3 %v4223_v17  ;;  %v4044_v51 = vld [vmem:[#allocation3 + $0x210] sm:$0xf0]  ;;  %v3919_v54 = vor.u32 %v5608_v48, %v3916_v49  ;;  %v5672_v55 = vld [vmem:[#allocation3 + $0x304] sm:$0xf]  ;;  %v3874_v48 = vld [vmem:[#allocation3 + $0xa8] sm:$0xf] }
  0x47   :  { %v4172_v56 = vld [vmem:[#allocation3 + $0x310] sm:$0xf0]  ;;  %v4047_v58 = vor.u32 %v5640_v50, %v4044_v51  ;;  %v5599_v49 = vld [vmem:[#allocation3 + $0xb4] sm:$0xf0]  ;;  %v4098_v20 = vld [vmem:[#allocation3 + $0x268] sm:$0xf] }
  0x48   :  { %993 = vmatpush.bf16.msrb.mxu0 %v3823_v21  ;;  %1007 = vmatpush.bf16.msrb.mxu1 %v3951_v25  ;;  %v4175_v34 = vor.u32 %v5672_v55, %v4172_v56  ;;  %v5663_v55 = vld [vmem:[#allocation3 + $0x2b4] sm:$0xf0]  ;;  %v4258_v56 = vld [vmem:[#allocation3 + $0x3a8] sm:$0xf] }
  0x49   :  { %1021 = vmatpush.bf16.msrb.mxu2 %v4079_v26  ;;  %v4226_v22 = vld [vmem:[#allocation3 + $0x368] sm:$0xf]  ;;  %v5687_v23 = vld [vmem:[#allocation3 + $0x374] sm:$0xf0] }
  0x4a   :  { %1035 = vmatpush.bf16.msrb.mxu3 %v4207_v30 }
  0x4c   :  { %994 = vmatpush.bf16.msrb.mxu0 %v3807_v35  ;;  %1008 = vmatpush.bf16.msrb.mxu1 %v3935_v39  ;;  %v5703_v35 = vld [vmem:[#allocation3 + $0x3f4] sm:$0xf0] }
  0x4d   :  { %1022 = vmatpush.bf16.msrb.mxu2 %v4063_v41  ;;  %v5603_v39 = vld [vmem:[#allocation3 + $0xd4] sm:$0xf0] }
  0x4e   :  { %1036 = vmatpush.bf16.msrb.mxu3 %v4191_v45  ;;  %v5699_v45 = vld [vmem:[#allocation3 + $0x3d4] sm:$0xf0] }
  0x50   :  { %995 = vmatpush.bf16.msrb.mxu0 %v3791_v53  ;;  %1009 = vmatpush.bf16.msrb.mxu1 %v3919_v54  ;;  %v5631_v53 = vld [vmem:[#allocation3 + $0x1b4] sm:$0xf0]  ;;  %v4130_v54 = vld [vmem:[#allocation3 + $0x2a8] sm:$0xf] }
  0x51   :  { %1023 = vmatpush.bf16.msrb.mxu2 %v4047_v58  ;;  %v3875_v58 = vor.u32 %v5599_v49, %v3874_v48  ;;  %v5579_v49 = vld [vmem:[#allocation3 + $0x14] sm:$0xf0] }
  0x52   :  { %1037 = vmatpush.bf16.msrb.mxu3 %v4175_v34 }
  0x8c   :  { %v105_v52 = vpop.xlane.xlu0 %104 }
  0x8d   :  { %v118_v57 = vmul.f32 %v117_v44, %v105_v52  ;;  %v4002_v52 = vld [vmem:[#allocation3 + $0x1a8] sm:$0xf] }
  0x8e   :  { %v4003_v34 = vor.u32 %v5631_v53, %v4002_v52 }
  0x8f   :  { %v120_v59 = vadd.f32 1e-08, %v118_v57  ;;  %v5695_v57 = vld [vmem:[#allocation3 + $0x3b4] sm:$0xf0] }
  0x91   :  { %6034 = vrsqrt.f32 %v120_v59  ;;  %vm128_vm2 = vweird.f32 %v120_v59 }
  0x94   :  { %v110_v60 = vpop.xlane.xlu0 %109 }
  0x95   :  { %v119_v61 = vmul.f32 %v117_v44, %v110_v60  ;;  %v4274_v44 = vld [vmem:[#allocation3 + $0x3c8] sm:$0xf]  ;;  %v5595_v60 = vld [vmem:[#allocation3 + $0x94] sm:$0xf0] }
  0x96   :  { %v4275_v51 = vor.u32 %v5699_v45, %v4274_v44  ;;  %v4194_v44 = vld [vmem:[#allocation3 + $0x328] sm:$0xf]  ;;  %v5679_v45 = vld [vmem:[#allocation3 + $0x334] sm:$0xf0] }
  0x97   :  { %v6035_v62 = vpop.eup %6034  ;;  %v121_v63 = vadd.f32 1e-08, %v119_v61  ;;  %v4131_v61 = vor.u32 %v5663_v55, %v4130_v54  ;;  %v4195_v53 = vor.u32 %v5679_v45, %v4194_v44  ;;  %v4050_v54 = vld [vmem:[#allocation3 + $0x208] sm:$0xf]  ;;  %v5643_v55 = vld [vmem:[#allocation3 + $0x214] sm:$0xf0] }
  0x98   :  { %v123_v0 = vmul.f32 %v6035_v62, %v120_v59  ;;  %vm129_vm1 = vweird.f32 %v6035_v62  ;;  %v3858_v59 = vld [vmem:[#allocation3 + $0x88] sm:$0xf]  ;;  %v5689_v44 = vld [vmem:[#allocation3 + $0x38c] sm:$0xf]  ;;  %v4244_v45 = vld [vmem:[#allocation3 + $0x398] sm:$0xf0] }
  0x99   :  { %6036 = vrsqrt.f32 %v121_v63  ;;  %vm130_vm3 = vmor %vm128_vm2, %vm129_vm1  ;;  %vm138_vm5 = vweird.f32 %v121_v63 }
  0x9a   :  { %v124_v1 = vmul.f32 %v6035_v62, %v123_v0  ;;  %v5627_v0 = vld [vmem:[#allocation3 + $0x194] sm:$0xf0] }
  0x9c   :  { %v125_v2 = vmul.f32 0.5, %v124_v1  ;;  %v4114_v1 = vld [vmem:[#allocation3 + $0x288] sm:$0xf] }
  0x9e   :  { %v126_v7 = vsub.f32 1.5, %v125_v2  ;;  %v5659_v2 = vld [vmem:[#allocation3 + $0x294] sm:$0xf0] }
  0x9f   :  { %v6037_v8 = vpop.eup %6036 }
  0xa0   :  { %v133_v9 = vmul.f32 %v6037_v8, %v121_v63  ;;  %v127_v13 = vmul.f32 %v6035_v62, %v126_v7  ;;  %vm139_vm4 = vweird.f32 %v6037_v8  ;;  %v3986_v63 = vld [vmem:[#allocation3 + $0x188] sm:$0xf] }
  0xa1   :  { %vm140_vm6 = vmor %vm138_vm5, %vm139_vm4  ;;  %v4242_v7 = vld [vmem:[#allocation3 + $0x388] sm:$0xf] }
  0xa2   :  { %v134_v14 = vmul.f32 %v6037_v8, %v133_v9  ;;  %v131_v16 = vsel %vm130_vm3, %v6035_v62, %v127_v13  ;;  %v4259_v62 = vor.u32 %v5695_v57, %v4258_v56  ;;  %v3859_v9 = vor.u32 %v5595_v60, %v3858_v59  ;;  %v4178_v56 = vld [vmem:[#allocation3 + $0x308] sm:$0xf]  ;;  %v5675_v57 = vld [vmem:[#allocation3 + $0x314] sm:$0xf0]  ;;  %v5637_v59 = vld [vmem:[#allocation3 + $0x1ec] sm:$0xf] }
  0xa3   :  { %v142_v21 = vmul.f32 %v131_v16, %v6214_v3  ;;  %v143_v25 = vmul.f32 %v131_v16, %v6216_v4  ;;  %v144_v26 = vmul.f32 %v131_v16, %v6218_v5  ;;  %v145_v27 = vmul.f32 %v131_v16, %v6220_v6  ;;  %v4290_v3 = vld [vmem:[#allocation3 + $0x3e8] sm:$0xf]  ;;  %v4036_v60 = vld [vmem:[#allocation3 + $0x1f8] sm:$0xf0] }
  0xa4   :  { %v135_v15 = vmul.f32 0.5, %v134_v14  ;;  %v4291_v41 = vor.u32 %v5703_v35, %v4290_v3  ;;  %v3987_v13 = vor.u32 %v5627_v0, %v3986_v63  ;;  %v3842_v14 = vld [vmem:[#allocation3 + $0x68] sm:$0xf]  ;;  %v4115_v16 = vor.u32 %v5659_v2, %v4114_v1  ;;  %v5683_v35 = vld [vmem:[#allocation3 + $0x354] sm:$0xf0] }
  0xa5   :  { %v4210_v3 = vld [vmem:[#allocation3 + $0x348] sm:$0xf]  ;;  %v4164_v0 = vld [vmem:[#allocation3 + $0x2f8] sm:$0xf0]  ;;  %v5701_v1 = vld [vmem:[#allocation3 + $0x3ec] sm:$0xf] }
  0xa6   :  { %v136_v17 = vsub.f32 1.5, %v135_v15  ;;  %v5591_v15 = vld [vmem:[#allocation3 + $0x74] sm:$0xf0]  ;;  %v4292_v2 = vld [vmem:[#allocation3 + $0x3f8] sm:$0xf0] }
  0xa8   :  { %v137_v18 = vmul.f32 %v6037_v8, %v136_v17 }
  0xaa   :  { %v141_v24 = vsel %vm140_vm6, %v6037_v8, %v137_v18  ;;  %v5691_v8 = vld [vmem:[#allocation3 + $0x394] sm:$0xf0]  ;;  %v3970_v18 = vld [vmem:[#allocation3 + $0x168] sm:$0xf] }
  0xab   :  { %v146_v29 = vmul.f32 %v141_v24, %v6225_v10  ;;  %v147_v30 = vmul.f32 %v141_v24, %v6227_v11  ;;  %v148_v31 = vmul.f32 %v141_v24, %v6229_v12  ;;  %v149_v32 = vmul.f32 %v141_v24, %v6245_v40  ;;  %v3890_v10 = vld [vmem:[#allocation3 + $0xc8] sm:$0xf] }
  0xac   :  { %v4163_v11 = vor.u32 %v5671_v33, %v4162_v28  ;;  %v4018_v12 = vld [vmem:[#allocation3 + $0x1c8] sm:$0xf]  ;;  %v3891_v46 = vor.u32 %v5603_v39, %v3890_v10  ;;  %v4243_v17 = vor.u32 %v5691_v8, %v4242_v7  ;;  %v3843_v24 = vor.u32 %v5591_v15, %v3842_v14  ;;  %v5651_v33 = vld [vmem:[#allocation3 + $0x254] sm:$0xf0]  ;;  %v5601_v14 = vld [vmem:[#allocation3 + $0xcc] sm:$0xf] }
  0xad   :  { %v6264_v38 = vpack.c.bf16 %v146_v29, %v142_v21  ;;  %v6266_v4 = vpack.c.bf16 %v147_v30, %v143_v25  ;;  %v6268_v5 = vpack.c.bf16 %v148_v31, %v144_v26  ;;  %v6270_v6 = vpack.c.bf16 %v149_v32, %v145_v27  ;;  %v4146_v40 = vld [vmem:[#allocation3 + $0x2c8] sm:$0xf]  ;;  %v5655_v21 = vld [vmem:[#allocation3 + $0x274] sm:$0xf0]  ;;  %v3892_v15 = vld [vmem:[#allocation3 + $0xd8] sm:$0xf0] }
  0xae   :  { %v4019_v47 = vor.u32 %v5635_v42, %v4018_v12  ;;  %v4147_v50 = vor.u32 %v5667_v43, %v4146_v40  ;;  %v3971_v25 = vor.u32 %v5623_v19, %v3970_v18  ;;  %v3826_v26 = vld [vmem:[#allocation3 + $0x48] sm:$0xf]  ;;  %v5587_v27 = vld [vmem:[#allocation3 + $0x54] sm:$0xf0]  ;;  %v4099_v28 = vor.u32 %v5655_v21, %v4098_v20  ;;  %v5633_v18 = vld [vmem:[#allocation3 + $0x1cc] sm:$0xf] }
  0xaf   :  { %940 = vmatmul.bf16.vlgmr.msra.gmra.mxu0 %v6264_v38  ;;  %954 = vmatmul.bf16.vlgmr.msra.gmra.mxu1 %v6266_v4  ;;  %v4227_v29 = vor.u32 %v5687_v23, %v4226_v22  ;;  %v3954_v30 = vld [vmem:[#allocation3 + $0x148] sm:$0xf]  ;;  %v5619_v31 = vld [vmem:[#allocation3 + $0x154] sm:$0xf0]  ;;  %v4051_v7 = vor.u32 %v5643_v55, %v4050_v54  ;;  %v4179_v8 = vor.u32 %v5675_v57, %v4178_v56  ;;  %v4020_v19 = vld [vmem:[#allocation3 + $0x1d8] sm:$0xf0] }
  0xb0   :  { %968 = vmatmul.bf16.vlgmr.msra.gmra.mxu2 %v6268_v5  ;;  %982 = vmatmul.bf16.vlgmr.msra.gmra.mxu3 %v6270_v6  ;;  %v4082_v32 = vld [vmem:[#allocation3 + $0x248] sm:$0xf]  ;;  %v5583_v39 = vld [vmem:[#allocation3 + $0x34] sm:$0xf0]  ;;  %v5665_v20 = vld [vmem:[#allocation3 + $0x2cc] sm:$0xf] }
  0xb1   :  { %1044 = vmatpush.bf16.msra.mxu0 %v3907_v36  ;;  %1058 = vmatpush.bf16.msra.mxu1 %v4035_v37  ;;  %v3827_v36 = vor.u32 %v5587_v27, %v3826_v26  ;;  %v3955_v37 = vor.u32 %v5619_v31, %v3954_v30  ;;  %v3810_v10 = vld [vmem:[#allocation3 + $0x28] sm:$0xf]  ;;  %v5615_v42 = vld [vmem:[#allocation3 + $0x134] sm:$0xf0]  ;;  %v4148_v21 = vld [vmem:[#allocation3 + $0x2d8] sm:$0xf0] }
  0xb2   :  { %1072 = vmatpush.bf16.msra.mxu2 %v4163_v11  ;;  %1086 = vmatpush.bf16.msra.mxu3 %v4291_v41  ;;  %v4083_v11 = vor.u32 %v5651_v33, %v4082_v32  ;;  %v4211_v41 = vor.u32 %v5683_v35, %v4210_v3  ;;  %v3938_v12 = vld [vmem:[#allocation3 + $0x128] sm:$0xf]  ;;  %v5647_v43 = vld [vmem:[#allocation3 + $0x234] sm:$0xf0]  ;;  %v5697_v22 = vld [vmem:[#allocation3 + $0x3cc] sm:$0xf] }
  0xb3   :  { %v4066_v40 = vld [vmem:[#allocation3 + $0x228] sm:$0xf]  ;;  %v3939_v48 = vor.u32 %v5615_v42, %v3938_v12  ;;  %v4276_v23 = vld [vmem:[#allocation3 + $0x3d8] sm:$0xf0]  ;;  %v5597_v26 = vld [vmem:[#allocation3 + $0xac] sm:$0xf] }
  0xb4   :  { %v4067_v52 = vor.u32 %v5647_v43, %v4066_v40  ;;  %v3876_v27 = vld [vmem:[#allocation3 + $0xb8] sm:$0xf0]  ;;  %v5629_v30 = vld [vmem:[#allocation3 + $0x1ac] sm:$0xf] }
  0xb5   :  { %1045 = vmatpush.bf16.msra.mxu0 %v3891_v46  ;;  %1059 = vmatpush.bf16.msra.mxu1 %v4019_v47  ;;  %v3794_v46 = vld [vmem:[#allocation3 + $0x8] sm:$0xf]  ;;  %v3811_v47 = vor.u32 %v5583_v39, %v3810_v10  ;;  %v4004_v31 = vld [vmem:[#allocation3 + $0x1b8] sm:$0xf0]  ;;  %v5661_v32 = vld [vmem:[#allocation3 + $0x2ac] sm:$0xf] }
  0xb6   :  { %1073 = vmatpush.bf16.msra.mxu2 %v4147_v50  ;;  %1087 = vmatpush.bf16.msra.mxu3 %v4275_v51  ;;  %v3922_v50 = vld [vmem:[#allocation3 + $0x108] sm:$0xf]  ;;  %v5611_v51 = vld [vmem:[#allocation3 + $0x114] sm:$0xf0]  ;;  %v4132_v33 = vld [vmem:[#allocation3 + $0x2b8] sm:$0xf0] }
  0xb7   :  { %v3923_v63 = vor.u32 %v5611_v51, %v3922_v50  ;;  %v5693_v3 = vld [vmem:[#allocation3 + $0x3ac] sm:$0xf]  ;;  %v4260_v35 = vld [vmem:[#allocation3 + $0x3b8] sm:$0xf0]  ;;  %v4247_v51 = vor.u32 %v5689_v44, %v4244_v45  ;;  %v5730_v45 = vld [vmem:[#allocation5 + $0xcc] sm:$0xf0] }
  0xb8   :  { %v5593_v10 = vld [vmem:[#allocation3 + $0x8c] sm:$0xf]  ;;  %v3860_v39 = vld [vmem:[#allocation3 + $0x98] sm:$0xf0] }
  0xb9   :  { %1046 = vmatpush.bf16.msra.mxu0 %v3875_v58  ;;  %1060 = vmatpush.bf16.msra.mxu1 %v4003_v34  ;;  %v5605_v58 = vld [vmem:[#allocation3 + $0xec] sm:$0xf]  ;;  %v3908_v34 = vld [vmem:[#allocation3 + $0xf8] sm:$0xf0] }
  0xba   :  { %1074 = vmatpush.bf16.msra.mxu2 %v4131_v61  ;;  %1088 = vmatpush.bf16.msra.mxu3 %v4259_v62  ;;  %v5669_v61 = vld [vmem:[#allocation3 + $0x2ec] sm:$0xf]  ;;  %v3795_v62 = vor.u32 %v5579_v49, %v3794_v46  ;;  %v3988_v42 = vld [vmem:[#allocation3 + $0x198] sm:$0xf0]  ;;  %v3863_v46 = vor.u32 %v5593_v10, %v3860_v39  ;;  %v4538_v10 = vld [vmem:[#allocation5 + $0x1e0] sm:$0xf] }
  0xbb   :  { %v5625_v12 = vld [vmem:[#allocation3 + $0x18c] sm:$0xf]  ;;  %v4116_v43 = vld [vmem:[#allocation3 + $0x298] sm:$0xf0]  ;;  %v5766_v39 = vld [vmem:[#allocation5 + $0x1ec] sm:$0xf0] }
  0xbc   :  { %v5657_v40 = vld [vmem:[#allocation3 + $0x28c] sm:$0xf]  ;;  %v3844_v49 = vld [vmem:[#allocation3 + $0x78] sm:$0xf0]  ;;  %v4539_v44 = vor.u32 %v5766_v39, %v4538_v10  ;;  %v5720_v10 = vld [vmem:[#allocation5 + $0x84] sm:$0xf] }
  0xbd   :  { %1047 = vmatpush.bf16.msra.mxu0 %v3859_v9  ;;  %1061 = vmatpush.bf16.msra.mxu1 %v3987_v13  ;;  %v3911_v9 = vor.u32 %v5605_v58, %v3908_v34  ;;  %v4039_v13 = vor.u32 %v5637_v59, %v4036_v60  ;;  %v4119_v50 = vor.u32 %v5657_v40, %v4116_v43  ;;  %v5653_v54 = vld [vmem:[#allocation3 + $0x26c] sm:$0xf]  ;;  %v4100_v55 = vld [vmem:[#allocation3 + $0x278] sm:$0xf0]  ;;  %v4394_v43 = vld [vmem:[#allocation5 + $0xc0] sm:$0xf] }
  0xbe   :  { %1075 = vmatpush.bf16.msra.mxu2 %v4115_v16  ;;  %1089 = vmatpush.bf16.msra.mxu3 %v4243_v17  ;;  %v4167_v16 = vor.u32 %v5669_v61, %v4164_v0  ;;  %v4295_v17 = vor.u32 %v5701_v1, %v4292_v2  ;;  %v5685_v56 = vld [vmem:[#allocation3 + $0x36c] sm:$0xf]  ;;  %v4228_v57 = vld [vmem:[#allocation3 + $0x378] sm:$0xf0]  ;;  %v4103_v61 = vor.u32 %v5653_v54, %v4100_v55  ;;  %v5726_v54 = vld [vmem:[#allocation5 + $0xac] sm:$0xf0] }
  0xbf   :  { %996 = vmatmul.bf16.vlgmr.msrb.gmra.mxu0 %v6264_v38  ;;  %1010 = vmatmul.bf16.vlgmr.msrb.gmra.mxu1 %v6266_v4  ;;  %v5585_v59 = vld [vmem:[#allocation3 + $0x4c] sm:$0xf]  ;;  %v3828_v60 = vld [vmem:[#allocation3 + $0x58] sm:$0xf0]  ;;  %v4506_v55 = vld [vmem:[#allocation5 + $0x1a0] sm:$0xf] }
  0xc0   :  { %1024 = vmatmul.bf16.vlgmr.msrb.gmra.mxu2 %v6268_v5  ;;  %1038 = vmatmul.bf16.vlgmr.msrb.gmra.mxu3 %v6270_v6  ;;  %v3956_v0 = vld [vmem:[#allocation3 + $0x158] sm:$0xf0]  ;;  %v5649_v1 = vld [vmem:[#allocation3 + $0x24c] sm:$0xf]  ;;  %v4364_v39 = vld [vmem:[#allocation5 + $0x90] sm:$0xf0] }
  0xc1   :  { %1048 = vmatpush.bf16.msra.mxu0 %v3843_v24  ;;  %1062 = vmatpush.bf16.msra.mxu1 %v3971_v25  ;;  %v3895_v24 = vor.u32 %v5601_v14, %v3892_v15  ;;  %v4023_v25 = vor.u32 %v5633_v18, %v4020_v19  ;;  %v4084_v2 = vld [vmem:[#allocation3 + $0x258] sm:$0xf0]  ;;  %v5581_v14 = vld [vmem:[#allocation3 + $0x2c] sm:$0xf] }
  0xc2   :  { %1076 = vmatpush.bf16.msra.mxu2 %v4099_v28  ;;  %1090 = vmatpush.bf16.msra.mxu3 %v4227_v29  ;;  %v4151_v28 = vor.u32 %v5665_v20, %v4148_v21  ;;  %v4279_v29 = vor.u32 %v5697_v22, %v4276_v23  ;;  %v3812_v15 = vld [vmem:[#allocation3 + $0x38] sm:$0xf0]  ;;  %v5613_v18 = vld [vmem:[#allocation3 + $0x12c] sm:$0xf] }
  0xc3   :  { %v3940_v19 = vld [vmem:[#allocation3 + $0x138] sm:$0xf0]  ;;  %v5645_v20 = vld [vmem:[#allocation3 + $0x22c] sm:$0xf] }
  0xc4   :  { %v4068_v21 = vld [vmem:[#allocation3 + $0x238] sm:$0xf0]  ;;  %v5677_v22 = vld [vmem:[#allocation3 + $0x32c] sm:$0xf] }
  0xc5   :  { %1049 = vmatpush.bf16.msra.mxu0 %v3827_v36  ;;  %1063 = vmatpush.bf16.msra.mxu1 %v3955_v37  ;;  %v3879_v36 = vor.u32 %v5597_v26, %v3876_v27  ;;  %v4007_v37 = vor.u32 %v5629_v30, %v4004_v31  ;;  %v4196_v23 = vld [vmem:[#allocation3 + $0x338] sm:$0xf0]  ;;  %v5577_v26 = vld [vmem:[#allocation3 + $0xc] sm:$0xf] }
  0xc6   :  { %1077 = vmatpush.bf16.msra.mxu2 %v4083_v11  ;;  %1091 = vmatpush.bf16.msra.mxu3 %v4211_v41  ;;  %v4135_v11 = vor.u32 %v5661_v32, %v4132_v33  ;;  %v4263_v41 = vor.u32 %v5693_v3, %v4260_v35  ;;  %v3796_v27 = vld [vmem:[#allocation3 + $0x18] sm:$0xf0]  ;;  %v4199_v30 = vor.u32 %v5677_v22, %v4196_v23  ;;  %v5641_v32 = vld [vmem:[#allocation3 + $0x20c] sm:$0xf]  ;;  %v4396_v22 = vld [vmem:[#allocation5 + $0xd0] sm:$0xf0] }
  0xc7   :  { %v3924_v31 = vld [vmem:[#allocation3 + $0x118] sm:$0xf0]  ;;  %v5673_v3 = vld [vmem:[#allocation3 + $0x30c] sm:$0xf] }
  0xc8   :  { %v4052_v33 = vld [vmem:[#allocation3 + $0x218] sm:$0xf0] }
  0xc9   :  { %1050 = vmatpush.bf16.msra.mxu0 %v3811_v47  ;;  %1064 = vmatpush.bf16.msra.mxu1 %v3939_v48  ;;  %v3991_v47 = vor.u32 %v5625_v12, %v3988_v42  ;;  %v5589_v48 = vld [vmem:[#allocation3 + $0x6c] sm:$0xf]  ;;  %v4180_v35 = vld [vmem:[#allocation3 + $0x318] sm:$0xf0]  ;;  %v4055_v12 = vor.u32 %v5641_v32, %v4052_v33  ;;  %v4442_v33 = vld [vmem:[#allocation5 + $0x120] sm:$0xf] }
  0xca   :  { %1078 = vmatpush.bf16.msra.mxu2 %v4067_v52  ;;  %1092 = vmatpush.bf16.msra.mxu3 %v4195_v53  ;;  %v5621_v52 = vld [vmem:[#allocation3 + $0x16c] sm:$0xf]  ;;  %v3972_v53 = vld [vmem:[#allocation3 + $0x178] sm:$0xf0]  ;;  %v3847_v58 = vor.u32 %v5589_v48, %v3844_v49  ;;  %v4183_v42 = vor.u32 %v5673_v3, %v4180_v35  ;;  %v4666_v48 = vld [vmem:[#allocation5 + $0x2e0] sm:$0xf] }
  0xcb   :  { %v3975_v34 = vor.u32 %v5621_v52, %v3972_v53  ;;  %v5798_v49 = vld [vmem:[#allocation5 + $0x2ec] sm:$0xf0]  ;;  %v4378_v52 = vld [vmem:[#allocation5 + $0xa0] sm:$0xf] }
  0xcc   :  { %v5742_v3 = vld [vmem:[#allocation5 + $0x12c] sm:$0xf0]  ;;  %v4634_v35 = vld [vmem:[#allocation5 + $0x2a0] sm:$0xf] }
  0xcd   :  { %1051 = vmatpush.bf16.msra.mxu0 %v3795_v62  ;;  %1065 = vmatpush.bf16.msra.mxu1 %v3923_v63  ;;  %v4231_v62 = vor.u32 %v5685_v56, %v4228_v57  ;;  %v5617_v63 = vld [vmem:[#allocation3 + $0x14c] sm:$0xf]  ;;  %v5758_v56 = vld [vmem:[#allocation5 + $0x1ac] sm:$0xf0]  ;;  %v4379_v57 = vor.u32 %v5726_v54, %v4378_v52  ;;  %v4602_v52 = vld [vmem:[#allocation5 + $0x260] sm:$0xf] }
  0xce   :  { %1079 = vmatpush.bf16.msra.mxu2 %v4051_v7  ;;  %1093 = vmatpush.bf16.msra.mxu3 %v4179_v8  ;;  %v5681_v7 = vld [vmem:[#allocation3 + $0x34c] sm:$0xf]  ;;  %v4212_v8 = vld [vmem:[#allocation3 + $0x358] sm:$0xf0] }
  0xd0   :  { %1052 = vmatmul.bf16.vlgmr.msra.gmra.mxu0 %v6264_v38  ;;  %1066 = vmatmul.bf16.vlgmr.msra.gmra.mxu1 %v6266_v4 }
  0xd1   :  { %1100 = vmatpush.bf16.msrb.mxu0 %v3911_v9  ;;  %1114 = vmatpush.bf16.msrb.mxu1 %v4039_v13  ;;  %v3831_v9 = vor.u32 %v5585_v59, %v3828_v60  ;;  %v3959_v13 = vor.u32 %v5617_v63, %v3956_v0  ;;  %v5722_v59 = vld [vmem:[#allocation5 + $0x8c] sm:$0xf0]  ;;  %v4490_v60 = vld [vmem:[#allocation5 + $0x180] sm:$0xf] }
  0xd2   :  { %1128 = vmatpush.bf16.msrb.mxu2 %v4167_v16  ;;  %1142 = vmatpush.bf16.msrb.mxu3 %v4295_v17  ;;  %v4087_v16 = vor.u32 %v5649_v1, %v4084_v2  ;;  %v4215_v17 = vor.u32 %v5681_v7, %v4212_v8  ;;  %v5718_v63 = vld [vmem:[#allocation5 + $0x6c] sm:$0xf0]  ;;  %v4474_v0 = vld [vmem:[#allocation5 + $0x160] sm:$0xf] }
  0xd3   :  { %1080 = vmatmul.bf16.vlgmr.msra.gmra.mxu2 %v6268_v5  ;;  %1094 = vmatmul.bf16.vlgmr.msra.gmra.mxu3 %v6270_v6  ;;  %v5750_v1 = vld [vmem:[#allocation5 + $0x16c] sm:$0xf0]  ;;  %v4330_v2 = vld [vmem:[#allocation5 + $0x40] sm:$0xf] }
  0xd4   :  { %v5714_v7 = vld [vmem:[#allocation5 + $0x4c] sm:$0xf0] }
  0xd5   :  { %1101 = vmatpush.bf16.msrb.mxu0 %v3895_v24  ;;  %1115 = vmatpush.bf16.msrb.mxu1 %v4023_v25  ;;  %v3815_v24 = vor.u32 %v5581_v14, %v3812_v15  ;;  %v3943_v25 = vor.u32 %v5613_v18, %v3940_v19  ;;  %v4331_v8 = vor.u32 %v5714_v7, %v4330_v2  ;;  %v4298_v15 = vld [vmem:[#allocation5] sm:$0xf]  ;;  %v4412_v18 = vld [vmem:[#allocation5 + $0xf0] sm:$0xf0]  ;;  %v5774_v2 = vld [vmem:[#allocation5 + $0x22c] sm:$0xf0] }
  0xd6   :  { %1129 = vmatpush.bf16.msrb.mxu2 %v4151_v28  ;;  %1143 = vmatpush.bf16.msrb.mxu3 %v4279_v29  ;;  %v5609_v28 = vld [vmem:[#allocation3 + $0x10c] sm:$0xf]  ;;  %v4071_v29 = vor.u32 %v5645_v20, %v4068_v21  ;;  %v5728_v21 = vld [vmem:[#allocation5 + $0xc4] sm:$0xf] }
  0xd7   :  { %v4399_v23 = vor.u32 %v5728_v21, %v4396_v22  ;;  %v5830_v22 = vld [vmem:[#allocation5 + $0x3ec] sm:$0xf0] }
  0xd9   :  { %1102 = vmatpush.bf16.msrb.mxu0 %v3879_v36  ;;  %1116 = vmatpush.bf16.msrb.mxu1 %v4007_v37  ;;  %v4410_v36 = vld [vmem:[#allocation5 + $0xe0] sm:$0xf]  ;;  %v5734_v37 = vld [vmem:[#allocation5 + $0xec] sm:$0xf0] }
  0xda   :  { %1130 = vmatpush.bf16.msrb.mxu2 %v4135_v11  ;;  %1144 = vmatpush.bf16.msrb.mxu3 %v4263_v41  ;;  %v3799_v11 = vor.u32 %v5577_v26, %v3796_v27  ;;  %v3927_v41 = vor.u32 %v5609_v28, %v3924_v31  ;;  %v4411_v40 = vor.u32 %v5734_v37, %v4410_v36  ;;  %v4650_v26 = vld [vmem:[#allocation5 + $0x2c0] sm:$0xf]  ;;  %v5794_v28 = vld [vmem:[#allocation5 + $0x2cc] sm:$0xf0] }
  0xdb   :  { %v4651_v31 = vor.u32 %v5794_v28, %v4650_v26  ;;  %v4443_v36 = vor.u32 %v5742_v3, %v4442_v33  ;;  %v5790_v37 = vld [vmem:[#allocation5 + $0x2ac] sm:$0xf0]  ;;  %v4668_v28 = vld [vmem:[#allocation5 + $0x2f0] sm:$0xf0]  ;;  %v4778_v33 = vld [vmem:[#allocation5 + $0x3c0] sm:$0xf] }
  0xdc   :  { %v5826_v3 = vld [vmem:[#allocation5 + $0x3cc] sm:$0xf0] }
  0xdd   :  { %1103 = vmatpush.bf16.msrb.mxu0 %v3863_v46  ;;  %1117 = vmatpush.bf16.msrb.mxu1 %v3991_v47  ;;  %v4522_v46 = vld [vmem:[#allocation5 + $0x1c0] sm:$0xf]  ;;  %v5762_v47 = vld [vmem:[#allocation5 + $0x1cc] sm:$0xf0] }
  0xde   :  { %1131 = vmatpush.bf16.msrb.mxu2 %v4119_v50  ;;  %1145 = vmatpush.bf16.msrb.mxu3 %v4247_v51  ;;  %v4667_v50 = vor.u32 %v5798_v49, %v4666_v48  ;;  %v4395_v51 = vor.u32 %v5730_v45, %v4394_v43  ;;  %v4523_v53 = vor.u32 %v5762_v47, %v4522_v46  ;;  %v5716_v45 = vld [vmem:[#allocation5 + $0x64] sm:$0xf]  ;;  %v4348_v46 = vld [vmem:[#allocation5 + $0x70] sm:$0xf0] }
  0xdf   :  { %v4351_v48 = vor.u32 %v5716_v45, %v4348_v46  ;;  %v5764_v49 = vld [vmem:[#allocation5 + $0x1e4] sm:$0xf]  ;;  %v4444_v45 = vld [vmem:[#allocation5 + $0x130] sm:$0xf0] }
  0xe0   :  { %v5788_v46 = vld [vmem:[#allocation5 + $0x2a4] sm:$0xf] }
  0xe1   :  { %1104 = vmatpush.bf16.msrb.mxu0 %v3847_v58  ;;  %1118 = vmatpush.bf16.msrb.mxu1 %v3975_v34  ;;  %v4362_v58 = vld [vmem:[#allocation5 + $0x80] sm:$0xf]  ;;  %v4507_v34 = vor.u32 %v5758_v56, %v4506_v55  ;;  %v5712_v55 = vld [vmem:[#allocation5 + $0x44] sm:$0xf]  ;;  %v4332_v56 = vld [vmem:[#allocation5 + $0x50] sm:$0xf0] }
  0xe2   :  { %1132 = vmatpush.bf16.msrb.mxu2 %v4103_v61  ;;  %1146 = vmatpush.bf16.msrb.mxu3 %v4231_v62  ;;  %v5754_v61 = vld [vmem:[#allocation5 + $0x18c] sm:$0xf0]  ;;  %v4346_v62 = vld [vmem:[#allocation5 + $0x60] sm:$0xf] }
  0xe5   :  { %1105 = vmatpush.bf16.msrb.mxu0 %v3831_v9  ;;  %1119 = vmatpush.bf16.msrb.mxu1 %v3959_v13  ;;  %v4314_v9 = vld [vmem:[#allocation5 + $0x20] sm:$0xf]  ;;  %v5710_v13 = vld [vmem:[#allocation5 + $0x2c] sm:$0xf0] }
  0xe6   :  { %1133 = vmatpush.bf16.msrb.mxu2 %v4087_v16  ;;  %1147 = vmatpush.bf16.msrb.mxu3 %v4215_v17  ;;  %v4315_v14 = vor.u32 %v5710_v13, %v4314_v9  ;;  %v5706_v16 = vld [vmem:[#allocation5 + $0xc] sm:$0xf0]  ;;  %v5732_v17 = vld [vmem:[#allocation5 + $0xe4] sm:$0xf]  ;;  %v4300_v9 = vld [vmem:[#allocation5 + $0x10] sm:$0xf0] }
  0xe7   :  { %v4299_v19 = vor.u32 %v5706_v16, %v4298_v15  ;;  %v4415_v20 = vor.u32 %v5732_v17, %v4412_v18  ;;  %v5752_v13 = vld [vmem:[#allocation5 + $0x184] sm:$0xf]  ;;  %v4492_v15 = vld [vmem:[#allocation5 + $0x190] sm:$0xf0]  ;;  %v6291_v16 = vld [vmem:[%s6423_s3] sm:$0xf] }
  0xe8   :  { %v4495_v17 = vor.u32 %v5752_v13, %v4492_v15  ;;  %v4554_v18 = vld [vmem:[#allocation5 + $0x200] sm:$0xf]  ;;  %v285_v15 = vperm.slane %v6291_v16, 1 }
  0xe9   :  { %1106 = vmatpush.bf16.msrb.mxu0 %v3815_v24  ;;  %1120 = vmatpush.bf16.msrb.mxu1 %v3943_v25  ;;  %v4458_v24 = vld [vmem:[#allocation5 + $0x140] sm:$0xf]  ;;  %v5746_v25 = vld [vmem:[#allocation5 + $0x14c] sm:$0xf0] }
  0xea   :  { %1134 = vmatpush.bf16.msrb.mxu2 %v4071_v29  ;;  %1148 = vmatpush.bf16.msrb.mxu3 %v4199_v30  ;;  %v4459_v27 = vor.u32 %v5746_v25, %v4458_v24  ;;  %v5724_v29 = vld [vmem:[#allocation5 + $0xa4] sm:$0xf]  ;;  %v4380_v30 = vld [vmem:[#allocation5 + $0xb0] sm:$0xf0] }
  0xeb   :  { %v4383_v32 = vor.u32 %v5724_v29, %v4380_v30  ;;  %v4476_v24 = vld [vmem:[#allocation5 + $0x170] sm:$0xf0]  ;;  %v284_v30 = vperm.slane %v6291_v16, 0 }
  0xed   :  { %1107 = vmatpush.bf16.msrb.mxu0 %v3799_v11  ;;  %1121 = vmatpush.bf16.msrb.mxu1 %v3927_v41  ;;  %v4635_v11 = vor.u32 %v5790_v37, %v4634_v35  ;;  %v4367_v41 = vor.u32 %v5720_v10, %v4364_v39  ;;  %v4779_v35 = vor.u32 %v5826_v3, %v4778_v33  ;;  %v4460_v37 = vld [vmem:[#allocation5 + $0x150] sm:$0xf0]  ;;  %v5792_v10 = vld [vmem:[#allocation5 + $0x2c4] sm:$0xf] }
  0xee   :  { %1135 = vmatpush.bf16.msrb.mxu2 %v4055_v12  ;;  %1149 = vmatpush.bf16.msrb.mxu3 %v4183_v42  ;;  %v4426_v12 = vld [vmem:[#allocation5 + $0x100] sm:$0xf]  ;;  %v5738_v42 = vld [vmem:[#allocation5 + $0x10c] sm:$0xf0]  ;;  %v5772_v3 = vld [vmem:[#allocation5 + $0x224] sm:$0xf] }
  0xef   :  { %v4427_v43 = vor.u32 %v5738_v42, %v4426_v12  ;;  %v4762_v42 = vld [vmem:[#allocation5 + $0x3a0] sm:$0xf] }
  0xf0   :  { %1108 = vmatmul.bf16.vlgmr.msrb.gmra.mxu0 %v6264_v38  ;;  %1122 = vmatmul.bf16.vlgmr.msrb.gmra.mxu1 %v6266_v4  ;;  %v4363_v38 = vor.u32 %v5722_v59, %v4362_v58  ;;  %v4491_v4 = vor.u32 %v5754_v61, %v4490_v60  ;;  %v4335_v58 = vor.u32 %v5712_v55, %v4332_v56  ;;  %v4586_v60 = vld [vmem:[#allocation5 + $0x240] sm:$0xf]  ;;  %v5778_v61 = vld [vmem:[#allocation5 + $0x24c] sm:$0xf0] }
  0xf1   :  { %1954 = vmatpush.bf16.msra.mxu0 %v4411_v40  ;;  %1968 = vmatpush.bf16.msra.mxu1 %v4539_v44  ;;  %v4618_v40 = vld [vmem:[#allocation5 + $0x280] sm:$0xf]  ;;  %v5786_v44 = vld [vmem:[#allocation5 + $0x28c] sm:$0xf0] }
  0xf2   :  { %1136 = vmatmul.bf16.vlgmr.msrb.gmra.mxu2 %v6268_v5  ;;  %1150 = vmatmul.bf16.vlgmr.msrb.gmra.mxu3 %v6270_v6  ;;  %v4347_v5 = vor.u32 %v5718_v63, %v4346_v62  ;;  %v4475_v6 = vor.u32 %v5750_v1, %v4474_v0  ;;  %v4619_v47 = vor.u32 %v5786_v44, %v4618_v40  ;;  %v5708_v62 = vld [vmem:[#allocation5 + $0x24] sm:$0xf]  ;;  %v4508_v1 = vld [vmem:[#allocation5 + $0x1b0] sm:$0xf0]  ;;  %v5822_v40 = vld [vmem:[#allocation5 + $0x3ac] sm:$0xf0] }
  0xf3   :  { %1982 = vmatpush.bf16.msra.mxu2 %v4667_v50  ;;  %v4540_v50 = vld [vmem:[#allocation5 + $0x1f0] sm:$0xf0]  ;;  %v5756_v63 = vld [vmem:[#allocation5 + $0x1a4] sm:$0xf]  ;;  %v4746_v55 = vld [vmem:[#allocation5 + $0x380] sm:$0xf] }
  0xf4   :  { %v5740_v44 = vld [vmem:[#allocation5 + $0x124] sm:$0xf]  ;;  %v5818_v56 = vld [vmem:[#allocation5 + $0x38c] sm:$0xf0] }
  0xf5   :  { %1955 = vmatpush.bf16.msra.mxu0 %v4395_v51  ;;  %1969 = vmatpush.bf16.msra.mxu1 %v4523_v53  ;;  %v4543_v51 = vor.u32 %v5764_v49, %v4540_v50  ;;  %v5782_v53 = vld [vmem:[#allocation5 + $0x26c] sm:$0xf0] }
  0xf6   :  { %v4603_v54 = vor.u32 %v5782_v53, %v4602_v52 }
  0xf7   :  { %1983 = vmatpush.bf16.msra.mxu2 %v4651_v31 }
  0xf9   :  { %1956 = vmatpush.bf16.msra.mxu0 %v4379_v57  ;;  %1970 = vmatpush.bf16.msra.mxu1 %v4507_v34  ;;  %v5760_v57 = vld [vmem:[#allocation5 + $0x1c4] sm:$0xf]  ;;  %v4524_v34 = vld [vmem:[#allocation5 + $0x1d0] sm:$0xf0] }
  0xfa   :  { %v4527_v59 = vor.u32 %v5760_v57, %v4524_v34  ;;  %v4747_v57 = vor.u32 %v5818_v56, %v4746_v55  ;;  %v4428_v34 = vld [vmem:[#allocation5 + $0x110] sm:$0xf0] }
  0xfb   :  { %1984 = vmatpush.bf16.msra.mxu2 %v4635_v11  ;;  %v4652_v11 = vld [vmem:[#allocation5 + $0x2d0] sm:$0xf0] }
  0xfd   :  { %1957 = vmatpush.bf16.msra.mxu0 %v4363_v38  ;;  %1971 = vmatpush.bf16.msra.mxu1 %v4491_v4  ;;  %v4587_v38 = vor.u32 %v5778_v61, %v4586_v60  ;;  %v4316_v4 = vld [vmem:[#allocation5 + $0x30] sm:$0xf0] }
  0xfe   :  { %v4319_v0 = vor.u32 %v5708_v62, %v4316_v4  ;;  %v4620_v62 = vld [vmem:[#allocation5 + $0x290] sm:$0xf0] }
  0xff   :  { %1985 = vmatpush.bf16.msra.mxu2 %v4619_v47  ;;  %v4447_v47 = vor.u32 %v5740_v44, %v4444_v45  ;;  %v5731_v44 = vld [vmem:[#allocation5 + $0xd4] sm:$0xf0]  ;;  %v4682_v45 = vld [vmem:[#allocation5 + $0x300] sm:$0xf] }
 0x101   :  { %1958 = vmatpush.bf16.msra.mxu0 %v4347_v5  ;;  %1972 = vmatpush.bf16.msra.mxu1 %v4475_v6  ;;  %v4511_v5 = vor.u32 %v5756_v63, %v4508_v1  ;;  %v4570_v6 = vld [vmem:[#allocation5 + $0x220] sm:$0xf] }
 0x102   :  { %v4571_v7 = vor.u32 %v5774_v2, %v4570_v6  ;;  %v4730_v63 = vld [vmem:[#allocation5 + $0x360] sm:$0xf]  ;;  %v4604_v6 = vld [vmem:[#allocation5 + $0x270] sm:$0xf0] }
 0x103   :  { %1986 = vmatpush.bf16.msra.mxu2 %v4603_v54 }
 0x105   :  { %1959 = vmatpush.bf16.msra.mxu0 %v4331_v8  ;;  %1973 = vmatpush.bf16.msra.mxu1 %v4459_v27  ;;  %v5704_v8 = vld [vmem:[#allocation5 + $0x4] sm:$0xf] }
 0x106   :  { %v5796_v27 = vld [vmem:[#allocation5 + $0x2e4] sm:$0xf] }
 0x107   :  { %1987 = vmatpush.bf16.msra.mxu2 %v4587_v38  ;;  %v4671_v29 = vor.u32 %v5796_v27, %v4668_v28  ;;  %v4418_v27 = vld [vmem:[#allocation5 + $0xe8] sm:$0xf]  ;;  %v5735_v28 = vld [vmem:[#allocation5 + $0xf4] sm:$0xf0] }
 0x109   :  { %1960 = vmatpush.bf16.msra.mxu0 %v4315_v14  ;;  %1974 = vmatpush.bf16.msra.mxu1 %v4443_v36  ;;  %v4303_v14 = vor.u32 %v5704_v8, %v4300_v9  ;;  %v5744_v36 = vld [vmem:[#allocation5 + $0x144] sm:$0xf] }
 0x10a   :  { %v4463_v39 = vor.u32 %v5744_v36, %v4460_v37 }
 0x10b   :  { %1988 = vmatpush.bf16.msra.mxu2 %v4571_v7 }
 0x10d   :  { %1961 = vmatpush.bf16.msra.mxu0 %v4299_v19  ;;  %1975 = vmatpush.bf16.msra.mxu1 %v4427_v43  ;;  %v5770_v19 = vld [vmem:[#allocation5 + $0x20c] sm:$0xf0]  ;;  %v4763_v43 = vor.u32 %v5822_v40, %v4762_v42 }
 0x10e   :  { %v4555_v21 = vor.u32 %v5770_v19, %v4554_v18  ;;  %v4714_v18 = vld [vmem:[#allocation5 + $0x340] sm:$0xf]  ;;  %v5810_v19 = vld [vmem:[#allocation5 + $0x34c] sm:$0xf0] }
 0x110   :  { %1989 = vmatpush.bf16.msra.mxu2 %v4555_v21  ;;  %v4715_v21 = vor.u32 %v5810_v19, %v4714_v18  ;;  %v4354_v18 = vld [vmem:[#allocation5 + $0x68] sm:$0xf]  ;;  %v5719_v19 = vld [vmem:[#allocation5 + $0x74] sm:$0xf0] }
 0x111   :  { %2010 = vmatpush.bf16.msrb.mxu0 %v4415_v20  ;;  %2024 = vmatpush.bf16.msrb.mxu1 %v4543_v51  ;;  %v4794_v20 = vld [vmem:[#allocation5 + $0x3e0] sm:$0xf] }
 0x112   :  { %v4795_v25 = vor.u32 %v5830_v22, %v4794_v20  ;;  %v5776_v22 = vld [vmem:[#allocation5 + $0x244] sm:$0xf] }
 0x114   :  { %1996 = vmatpush.bf16.msra.mxu3 %v4795_v25  ;;  %2038 = vmatpush.bf16.msrb.mxu2 %v4671_v29 }
 0x115   :  { %2011 = vmatpush.bf16.msrb.mxu0 %v4399_v23  ;;  %2025 = vmatpush.bf16.msrb.mxu1 %v4527_v59  ;;  %v5748_v23 = vld [vmem:[#allocation5 + $0x164] sm:$0xf] }
 0x116   :  { %v4479_v26 = vor.u32 %v5748_v23, %v4476_v24  ;;  %v5784_v59 = vld [vmem:[#allocation5 + $0x284] sm:$0xf]  ;;  %v4588_v23 = vld [vmem:[#allocation5 + $0x250] sm:$0xf0] }
 0x117   :  { %v4623_v4 = vor.u32 %v5784_v59, %v4620_v62  ;;  %v5824_v59 = vld [vmem:[#allocation5 + $0x3c4] sm:$0xf] }
 0x118   :  { %1997 = vmatpush.bf16.msra.mxu3 %v4779_v35  ;;  %v4572_v35 = vld [vmem:[#allocation5 + $0x230] sm:$0xf0] }
 0x119   :  { %2012 = vmatpush.bf16.msrb.mxu0 %v4383_v32  ;;  %2026 = vmatpush.bf16.msrb.mxu1 %v4511_v5  ;;  %v5780_v5 = vld [vmem:[#allocation5 + $0x264] sm:$0xf] }
 0x11a   :  { %v4607_v8 = vor.u32 %v5780_v5, %v4604_v6  ;;  %v4370_v5 = vld [vmem:[#allocation5 + $0x88] sm:$0xf]  ;;  %v5723_v6 = vld [vmem:[#allocation5 + $0x94] sm:$0xf0] }
 0x11c   :  { %1998 = vmatpush.bf16.msra.mxu3 %v4763_v43 }
 0x11d   :  { %2013 = vmatpush.bf16.msrb.mxu0 %v4367_v41  ;;  %2027 = vmatpush.bf16.msrb.mxu1 %v4495_v17  ;;  %v4655_v41 = vor.u32 %v5792_v10, %v4652_v11  ;;  %v4575_v10 = vor.u32 %v5772_v3, %v4572_v35  ;;  %v5715_v3 = vld [vmem:[#allocation5 + $0x54] sm:$0xf0]  ;;  %v4530_v35 = vld [vmem:[#allocation5 + $0x1c8] sm:$0xf] }
 0x11f   :  { %2039 = vmatpush.bf16.msrb.mxu2 %v4655_v41  ;;  %v4419_v41 = vor.u32 %v5735_v28, %v4418_v27 }
 0x120   :  { %1999 = vmatpush.bf16.msra.mxu3 %v4747_v57 }
 0x121   :  { %2014 = vmatpush.bf16.msrb.mxu0 %v4351_v48  ;;  %2028 = vmatpush.bf16.msrb.mxu1 %v4479_v26  ;;  %v4636_v48 = vld [vmem:[#allocation5 + $0x2b0] sm:$0xf0]  ;;  %v4591_v26 = vor.u32 %v5776_v22, %v4588_v23  ;;  %v5767_v22 = vld [vmem:[#allocation5 + $0x1f4] sm:$0xf0] }
 0x122   :  { %v4639_v51 = vor.u32 %v5788_v46, %v4636_v48  ;;  %v5802_v46 = vld [vmem:[#allocation5 + $0x30c] sm:$0xf0]  ;;  %v5768_v48 = vld [vmem:[#allocation5 + $0x204] sm:$0xf] }
 0x124   :  { %2040 = vmatpush.bf16.msrb.mxu2 %v4639_v51 }
 0x125   :  { %2015 = vmatpush.bf16.msrb.mxu0 %v4335_v58  ;;  %2029 = vmatpush.bf16.msrb.mxu1 %v4463_v39  ;;  %v5736_v58 = vld [vmem:[#allocation5 + $0x104] sm:$0xf] }
 0x126   :  { %v4431_v38 = vor.u32 %v5736_v58, %v4428_v34  ;;  %v4386_v58 = vld [vmem:[#allocation5 + $0xa8] sm:$0xf]  ;;  %v5727_v34 = vld [vmem:[#allocation5 + $0xb4] sm:$0xf0] }
 0x128   :  { %2041 = vmatpush.bf16.msrb.mxu2 %v4623_v4 }
 0x129   :  { %2016 = vmatpush.bf16.msrb.mxu0 %v4319_v0  ;;  %2030 = vmatpush.bf16.msrb.mxu1 %v4447_v47  ;;  %v5814_v0 = vld [vmem:[#allocation5 + $0x36c] sm:$0xf0]  ;;  %v4683_v47 = vor.u32 %v5802_v46, %v4682_v45  ;;  %v4322_v45 = vld [vmem:[#allocation5 + $0x28] sm:$0xf] }
 0x12a   :  { %v4731_v1 = vor.u32 %v5814_v0, %v4730_v63  ;;  %v4387_v0 = vor.u32 %v5727_v34, %v4386_v58  ;;  %v5707_v58 = vld [vmem:[#allocation5 + $0x14] sm:$0xf0] }
 0x12c   :  { %v941_v31 = vpop.f32.mrf.mxu0  ;;  %v955_v32 = vpop.f32.mrf.mxu1  ;;  %2000 = vmatpush.bf16.msra.mxu3 %v4731_v1  ;;  %2042 = vmatpush.bf16.msrb.mxu2 %v4607_v8 }
 0x12d   :  { %2017 = vmatpush.bf16.msrb.mxu0 %v4303_v14  ;;  %v942_v12 = vadd.f32 %v941_v31, %v284_v30  ;;  %2031 = vmatpush.bf16.msrb.mxu1 %v4431_v38  ;;  %v4698_v31 = vld [vmem:[#allocation5 + $0x320] sm:$0xf] }
 0x12f   :  { %v956_v52 = vadd.f32 %v955_v32, %v942_v12  ;;  %v5806_v32 = vld [vmem:[#allocation5 + $0x32c] sm:$0xf0]  ;;  %v4402_v12 = vld [vmem:[#allocation5 + $0xc8] sm:$0xf] }
 0x130   :  { %2001 = vmatpush.bf16.msra.mxu3 %v4715_v21  ;;  %2043 = vmatpush.bf16.msrb.mxu2 %v4591_v26  ;;  %v4699_v33 = vor.u32 %v5806_v32, %v4698_v31  ;;  %v4403_v56 = vor.u32 %v5731_v44, %v4402_v12  ;;  %v4546_v21 = vld [vmem:[#allocation5 + $0x1e8] sm:$0xf] }
 0x131   :  { %v4547_v31 = vor.u32 %v5767_v22, %v4546_v21  ;;  %v4338_v32 = vld [vmem:[#allocation5 + $0x48] sm:$0xf] }
 0x132   :  { %v4674_v22 = vld [vmem:[#allocation5 + $0x2e8] sm:$0xf] }
 0x133   :  { %v969_v49 = vpop.f32.mrf.mxu2  ;;  %v983_v50 = vpop.f32.mrf.mxu3 }
 0x134   :  { %v943_v53 = vpop.f32.mrf.mxu0  ;;  %v957_v54 = vpop.f32.mrf.mxu1  ;;  %v970_v60 = vadd.f32 %v969_v49, %v956_v52  ;;  %2002 = vmatpush.bf16.msra.mxu3 %v4699_v33  ;;  %2044 = vmatpush.bf16.msrb.mxu2 %v4575_v10  ;;  %v4556_v49 = vld [vmem:[#allocation5 + $0x210] sm:$0xf0] }
 0x135   :  { %v944_v61 = vadd.f32 %v943_v53, %v284_v30  ;;  %v4559_v53 = vor.u32 %v5768_v48, %v4556_v49  ;;  %v5711_v48 = vld [vmem:[#allocation5 + $0x34] sm:$0xf0]  ;;  %v4514_v49 = vld [vmem:[#allocation5 + $0x1a8] sm:$0xf] }
 0x136   :  { %v984_v2 = vadd.f32 %v983_v50, %v970_v60  ;;  %v5828_v50 = vld [vmem:[#allocation5 + $0x3e4] sm:$0xf]  ;;  %v4780_v60 = vld [vmem:[#allocation5 + $0x3d0] sm:$0xf0] }
 0x137   :  { %v958_v7 = vadd.f32 %v957_v54, %v944_v61  ;;  %v4796_v54 = vld [vmem:[#allocation5 + $0x3f0] sm:$0xf0]  ;;  %v4783_v62 = vor.u32 %v5824_v59, %v4780_v60  ;;  %v4498_v60 = vld [vmem:[#allocation5 + $0x188] sm:$0xf] }
 0x138   :  { %v1156_v24 = vmul.f32 0.2, %v984_v2  ;;  %v4799_v57 = vor.u32 %v5828_v50, %v4796_v54  ;;  %2003 = vmatpush.bf16.msra.mxu3 %v4683_v47  ;;  %2045 = vmatpush.bf16.msrb.mxu2 %v4559_v53  ;;  %v5759_v50 = vld [vmem:[#allocation5 + $0x1b4] sm:$0xf0] }
 0x13a   :  { %v1164_v36 = vmax.f32 %v984_v2, %v1156_v24  ;;  %v5820_v2 = vld [vmem:[#allocation5 + $0x3a4] sm:$0xf] }
 0x13b   :  { %v971_v9 = vpop.f32.mrf.mxu2  ;;  %v985_v13 = vpop.f32.mrf.mxu3  ;;  %v5816_v24 = vld [vmem:[#allocation5 + $0x384] sm:$0xf] }
 0x13c   :  { %v972_v14 = vadd.f32 %v971_v9, %v958_v7  ;;  %v997_v17 = vpop.f32.mrf.mxu0  ;;  %v1011_v20 = vpop.f32.mrf.mxu1  ;;  %2052 = vmatpush.bf16.msrb.mxu3 %v4799_v57  ;;  %v4764_v7 = vld [vmem:[#allocation5 + $0x3b0] sm:$0xf0]  ;;  %v4306_v57 = vld [vmem:[#allocation5 + $0x8] sm:$0xf] }
 0x13d   :  { %v998_v30 = vadd.f32 %v997_v17, %v285_v15  ;;  %v4371_v17 = vor.u32 %v5723_v6, %v4370_v5 }
 0x13e   :  { %v986_v25 = vadd.f32 %v985_v13, %v972_v14  ;;  %v286_v13 = vperm.slane %v6291_v16, 2 }
 0x13f   :  { %v1012_v40 = vadd.f32 %v1011_v20, %v998_v30  ;;  %v4355_v30 = vor.u32 %v5719_v19, %v4354_v18  ;;  %v4404_v18 = vld [vmem:[#allocation5 + $0xd8] sm:$0xf0]  ;;  %v5800_v19 = vld [vmem:[#allocation5 + $0x304] sm:$0xf] }
 0x140   :  { %v1160_v29 = vmul.f32 0.2, %v986_v25  ;;  %2053 = vmatpush.bf16.msrb.mxu3 %v4783_v62 }
 0x142   :  { %v1168_v37 = vmax.f32 %v986_v25, %v1160_v29  ;;  %v4748_v25 = vld [vmem:[#allocation5 + $0x390] sm:$0xf0] }
 0x143   :  { %v1025_v39 = vpop.f32.mrf.mxu2  ;;  %v1039_v11 = vpop.f32.mrf.mxu3  ;;  %v4751_v29 = vor.u32 %v5816_v24, %v4748_v25 }
 0x144   :  { %v6295_v42 = vpack.c.bf16 %v1168_v37, %v1164_v36  ;;  %v999_v43 = vpop.f32.mrf.mxu0  ;;  %v1026_v51 = vadd.f32 %v1025_v39, %v1012_v40  ;;  %v1013_v55 = vpop.f32.mrf.mxu1  ;;  %v5763_v36 = vld [vmem:[#allocation5 + $0x1d4] sm:$0xf0]  ;;  %v5812_v39 = vld [vmem:[#allocation5 + $0x364] sm:$0xf] }
 0x145   :  { %v1000_v52 = vadd.f32 %v999_v43, %v285_v15  ;;  %v4767_v15 = vor.u32 %v5820_v2, %v4764_v7  ;;  %v4339_v43 = vor.u32 %v5715_v3, %v4338_v32  ;;  %v4531_v44 = vor.u32 %v5763_v36, %v4530_v35  ;;  %v5725_v32 = vld [vmem:[#allocation5 + $0xac] sm:$0xf]  ;;  %v4388_v3 = vld [vmem:[#allocation5 + $0xb8] sm:$0xf0]  ;;  %v4658_v36 = vld [vmem:[#allocation5 + $0x2c8] sm:$0xf] }
 0x146   :  { %1962 = vmatmul.bf16.vlgmr.msra.gmra.mxu0 %v6295_v42  ;;  %v1040_v61 = vadd.f32 %v1039_v11, %v1026_v51  ;;  %v4732_v11 = vld [vmem:[#allocation5 + $0x370] sm:$0xf0]  ;;  %v5808_v51 = vld [vmem:[#allocation5 + $0x344] sm:$0xf]  ;;  %v4307_v2 = vor.u32 %v5707_v58, %v4306_v57  ;;  %v4626_v58 = vld [vmem:[#allocation5 + $0x288] sm:$0xf] }
 0x147   :  { %2066 = vmatpush.bf16.msra.mxu0 %v4419_v41  ;;  %v1014_v38 = vadd.f32 %v1013_v55, %v1000_v52  ;;  %2054 = vmatpush.bf16.msrb.mxu3 %v4767_v15  ;;  %v4735_v40 = vor.u32 %v5812_v39, %v4732_v11  ;;  %v4716_v52 = vld [vmem:[#allocation5 + $0x350] sm:$0xf0]  ;;  %v4323_v55 = vor.u32 %v5711_v48, %v4322_v45  ;;  %v5751_v15 = vld [vmem:[#allocation5 + $0x174] sm:$0xf0]  ;;  %v4450_v11 = vld [vmem:[#allocation5 + $0x128] sm:$0xf] }
 0x148   :  { %v1157_v8 = vmul.f32 0.2, %v1040_v61  ;;  %v4719_v53 = vor.u32 %v5808_v51, %v4716_v52  ;;  %v4391_v39 = vor.u32 %v5725_v32, %v4388_v3  ;;  %v5791_v45 = vld [vmem:[#allocation5 + $0x2b4] sm:$0xf0]  ;;  %v5717_v52 = vld [vmem:[#allocation5 + $0x6c] sm:$0xf] }
 0x149   :  { %v5739_v51 = vld [vmem:[#allocation5 + $0x114] sm:$0xf0]  ;;  %v4308_v32 = vld [vmem:[#allocation5 + $0x18] sm:$0xf0] }
 0x14a   :  { %v1165_v26 = vmax.f32 %v1040_v61, %v1157_v8  ;;  %v5755_v61 = vld [vmem:[#allocation5 + $0x194] sm:$0xf0]  ;;  %v4482_v8 = vld [vmem:[#allocation5 + $0x168] sm:$0xf] }
 0x14b   :  { %2067 = vmatpush.bf16.msra.mxu0 %v4403_v56  ;;  %v1027_v4 = vpop.f32.mrf.mxu2  ;;  %v1041_v63 = vpop.f32.mrf.mxu3  ;;  %2055 = vmatpush.bf16.msrb.mxu3 %v4751_v29  ;;  %v4515_v56 = vor.u32 %v5759_v50, %v4514_v49  ;;  %v4499_v7 = vor.u32 %v5755_v61, %v4498_v60  ;;  %v4483_v25 = vor.u32 %v5751_v15, %v4482_v8  ;;  %v4466_v29 = vld [vmem:[#allocation5 + $0x148] sm:$0xf] }
 0x14c   :  { %v1028_v1 = vadd.f32 %v1027_v4, %v1014_v38  ;;  %v5733_v38 = vld [vmem:[#allocation5 + $0xec] sm:$0xf]  ;;  %v4420_v4 = vld [vmem:[#allocation5 + $0xf8] sm:$0xf0]  ;;  %v4434_v50 = vld [vmem:[#allocation5 + $0x108] sm:$0xf] }
 0x14d   :  { %v1053_v14 = vpop.f32.mrf.mxu0  ;;  %v1067_v23 = vpop.f32.mrf.mxu1  ;;  %v4435_v60 = vor.u32 %v5739_v51, %v4434_v50  ;;  %v5749_v50 = vld [vmem:[#allocation5 + $0x16c] sm:$0xf]  ;;  %v4484_v51 = vld [vmem:[#allocation5 + $0x178] sm:$0xf0] }
 0x14e   :  { %v1042_v9 = vadd.f32 %v1041_v63, %v1028_v1  ;;  %v1054_v28 = vadd.f32 %v1053_v14, %v286_v13  ;;  %v5804_v63 = vld [vmem:[#allocation5 + $0x324] sm:$0xf]  ;;  %v4423_v14 = vor.u32 %v5733_v38, %v4420_v4  ;;  %v5713_v4 = vld [vmem:[#allocation5 + $0x4c] sm:$0xf] }
 0x14f   :  { %2068 = vmatpush.bf16.msra.mxu0 %v4387_v0  ;;  %2056 = vmatpush.bf16.msrb.mxu3 %v4735_v40  ;;  %v4700_v0 = vld [vmem:[#allocation5 + $0x330] sm:$0xf0]  ;;  %v5721_v40 = vld [vmem:[#allocation5 + $0x8c] sm:$0xf] }
 0x150   :  { %v1161_v20 = vmul.f32 0.2, %v1042_v9  ;;  %v1068_v41 = vadd.f32 %v1067_v23, %v1054_v28  ;;  %v4703_v5 = vor.u32 %v5804_v63, %v4700_v0  ;;  %v5799_v23 = vld [vmem:[#allocation5 + $0x2f4] sm:$0xf0]  ;;  %v4340_v63 = vld [vmem:[#allocation5 + $0x58] sm:$0xf0] }
 0x152   :  { %v1169_v27 = vmax.f32 %v1042_v9, %v1161_v20  ;;  %v4684_v20 = vld [vmem:[#allocation5 + $0x310] sm:$0xf0] }
 0x153   :  { %2069 = vmatpush.bf16.msra.mxu0 %v4371_v17  ;;  %2057 = vmatpush.bf16.msrb.mxu3 %v4719_v53  ;;  %v5729_v17 = vld [vmem:[#allocation5 + $0xcc] sm:$0xf]  ;;  %v4687_v24 = vor.u32 %v5800_v19, %v4684_v20  ;;  %v5779_v19 = vld [vmem:[#allocation5 + $0x254] sm:$0xf0] }
 0x154   :  { %v6299_v33 = vpack.c.bf16 %v1169_v27, %v1165_v26  ;;  %v4407_v28 = vor.u32 %v5729_v17, %v4404_v18  ;;  %v5709_v20 = vld [vmem:[#allocation5 + $0x2c] sm:$0xf] }
 0x155   :  { %v1055_v12 = vpop.f32.mrf.mxu0  ;;  %v1069_v54 = vpop.f32.mrf.mxu1 }
 0x156   :  { %v1081_v37 = vpop.f32.mrf.mxu2  ;;  %v1095_v10 = vpop.f32.mrf.mxu3  ;;  %1976 = vmatmul.bf16.vlgmr.msra.gmra.mxu1 %v6299_v33  ;;  %2018 = vmatmul.bf16.vlgmr.msrb.gmra.mxu0 %v6295_v42  ;;  %v1056_v47 = vadd.f32 %v1055_v12, %v286_v13 }
 0x157   :  { %2070 = vmatpush.bf16.msra.mxu0 %v4355_v30  ;;  %2080 = vmatpush.bf16.msra.mxu1 %v4547_v31  ;;  %v1082_v46 = vadd.f32 %v1081_v37, %v1068_v41  ;;  %v5747_v30 = vld [vmem:[#allocation5 + $0x154] sm:$0xf0]  ;;  %v4675_v31 = vor.u32 %v5799_v23, %v4674_v22  ;;  %v5757_v22 = vld [vmem:[#allocation5 + $0x1ac] sm:$0xf]  ;;  %v4516_v23 = vld [vmem:[#allocation5 + $0x1b8] sm:$0xf0] }
 0x158   :  { %v1070_v59 = vadd.f32 %v1069_v54, %v1056_v47  ;;  %2058 = vmatpush.bf16.msrb.mxu3 %v4703_v5  ;;  %v5795_v37 = vld [vmem:[#allocation5 + $0x2d4] sm:$0xf0]  ;;  %v4356_v54 = vld [vmem:[#allocation5 + $0x78] sm:$0xf0] }
 0x159   :  { %v1096_v34 = vadd.f32 %v1095_v10, %v1082_v46  ;;  %v4467_v10 = vor.u32 %v5747_v30, %v4466_v29  ;;  %v5743_v41 = vld [vmem:[#allocation5 + $0x134] sm:$0xf0]  ;;  %v4659_v12 = vor.u32 %v5795_v37, %v4658_v36  ;;  %v287_v46 = vperm.slane %v6291_v16, 3  ;;  %v4578_v30 = vld [vmem:[#allocation5 + $0x228] sm:$0xf] }
 0x15a   :  { %v4451_v48 = vor.u32 %v5743_v41, %v4450_v11  ;;  %v4359_v16 = vor.u32 %v5717_v52, %v4356_v54  ;;  %v5783_v5 = vld [vmem:[#allocation5 + $0x274] sm:$0xf0]  ;;  %v4519_v29 = vor.u32 %v5757_v22, %v4516_v23  ;;  %v5753_v37 = vld [vmem:[#allocation5 + $0x18c] sm:$0xf] }
 0x15b   :  { %2071 = vmatpush.bf16.msra.mxu0 %v4339_v43  ;;  %2081 = vmatpush.bf16.msra.mxu1 %v4531_v44  ;;  %v1158_v9 = vmul.f32 0.2, %v1096_v34  ;;  %v4372_v43 = vld [vmem:[#allocation5 + $0x98] sm:$0xf0]  ;;  %v4642_v44 = vld [vmem:[#allocation5 + $0x2a8] sm:$0xf] }
 0x15c   :  { %2059 = vmatpush.bf16.msrb.mxu3 %v4687_v24  ;;  %v4375_v49 = vor.u32 %v5721_v40, %v4372_v43  ;;  %v4643_v53 = vor.u32 %v5791_v45, %v4642_v44  ;;  %v5775_v36 = vld [vmem:[#allocation5 + $0x234] sm:$0xf0]  ;;  %v4562_v45 = vld [vmem:[#allocation5 + $0x208] sm:$0xf]  ;;  %v5797_v52 = vld [vmem:[#allocation5 + $0x2ec] sm:$0xf] }
 0x15d   :  { %v1166_v26 = vmax.f32 %v1096_v34, %v1158_v9  ;;  %v5787_v34 = vld [vmem:[#allocation5 + $0x294] sm:$0xf0]  ;;  %v4343_v9 = vor.u32 %v5713_v4, %v4340_v63  ;;  %v4579_v43 = vor.u32 %v5775_v36, %v4578_v30  ;;  %v4660_v4 = vld [vmem:[#allocation5 + $0x2d8] sm:$0xf0] }
 0x15e   :  { %v1083_v62 = vpop.f32.mrf.mxu2  ;;  %v1097_v6 = vpop.f32.mrf.mxu3  ;;  %v4627_v38 = vor.u32 %v5787_v34, %v4626_v58  ;;  %v4487_v58 = vor.u32 %v5749_v50, %v4484_v51  ;;  %v4786_v34 = vld [vmem:[#allocation5 + $0x3c8] sm:$0xf]  ;;  %v4596_v36 = vld [vmem:[#allocation5 + $0x258] sm:$0xf0] }
 0x15f   :  { %v1084_v1 = vadd.f32 %v1083_v62, %v1070_v59  ;;  %2072 = vmatpush.bf16.msra.mxu0 %v4323_v55  ;;  %2082 = vmatpush.bf16.msra.mxu1 %v4515_v56  ;;  %v5765_v55 = vld [vmem:[#allocation5 + $0x1ec] sm:$0xf]  ;;  %v4548_v56 = vld [vmem:[#allocation5 + $0x1f8] sm:$0xf0]  ;;  %v4610_v62 = vld [vmem:[#allocation5 + $0x268] sm:$0xf] }
 0x160   :  { %v4551_v61 = vor.u32 %v5765_v55, %v4548_v56  ;;  %v4611_v17 = vor.u32 %v5783_v5, %v4610_v62  ;;  %v5793_v62 = vld [vmem:[#allocation5 + $0x2cc] sm:$0xf] }
 0x161   :  { %v1098_v13 = vadd.f32 %v1097_v6, %v1084_v1  ;;  %v5761_v6 = vld [vmem:[#allocation5 + $0x1cc] sm:$0xf]  ;;  %v4663_v5 = vor.u32 %v5793_v62, %v4660_v4  ;;  %v4724_v4 = vld [vmem:[#allocation5 + $0x358] sm:$0xf0] }
 0x162   :  { %v5809_v62 = vld [vmem:[#allocation5 + $0x34c] sm:$0xf] }
 0x163   :  { %v1162_v21 = vmul.f32 0.2, %v1098_v13  ;;  %2073 = vmatpush.bf16.msra.mxu0 %v4307_v2  ;;  %2083 = vmatpush.bf16.msra.mxu1 %v4499_v7  ;;  %v4532_v2 = vld [vmem:[#allocation5 + $0x1d8] sm:$0xf0] }
 0x164   :  { %v4535_v18 = vor.u32 %v5761_v6, %v4532_v2  ;;  %v5823_v6 = vld [vmem:[#allocation5 + $0x3b4] sm:$0xf0]  ;;  %v5741_v2 = vld [vmem:[#allocation5 + $0x12c] sm:$0xf] }
 0x165   :  { %v1170_v27 = vmax.f32 %v1098_v13, %v1162_v21  ;;  %v4594_v13 = vld [vmem:[#allocation5 + $0x248] sm:$0xf]  ;;  %v4324_v21 = vld [vmem:[#allocation5 + $0x38] sm:$0xf0] }
 0x166   :  { %2032 = vmatmul.bf16.vlgmr.msrb.gmra.mxu1 %v6299_v33  ;;  %2074 = vmatmul.bf16.vlgmr.msra.gmra.mxu0 %v6295_v42 }
 0x167   :  { %2122 = vmatpush.bf16.msrb.mxu0 %v4423_v14  ;;  %v6303_v35 = vpack.c.bf16 %v1170_v27, %v1166_v26  ;;  %2084 = vmatpush.bf16.msra.mxu1 %v4483_v25  ;;  %v4595_v25 = vor.u32 %v5779_v19, %v4594_v13  ;;  %v4327_v26 = vor.u32 %v5709_v20, %v4324_v21  ;;  %v4436_v19 = vld [vmem:[#allocation5 + $0x118] sm:$0xf0]  ;;  %v5785_v20 = vld [vmem:[#allocation5 + $0x28c] sm:$0xf] }
 0x168   :  { %v4628_v21 = vld [vmem:[#allocation5 + $0x298] sm:$0xf0] }
 0x169   :  { %1990 = vmatmul.bf16.vlgmr.msra.gmra.mxu2 %v6303_v35 }
 0x16a   :  { %2094 = vmatpush.bf16.msra.mxu2 %v4675_v31  ;;  %v5705_v31 = vld [vmem:[#allocation5 + $0xc] sm:$0xf] }
 0x16b   :  { %2123 = vmatpush.bf16.msrb.mxu0 %v4407_v28  ;;  %2085 = vmatpush.bf16.msra.mxu1 %v4467_v10  ;;  %v4500_v10 = vld [vmem:[#allocation5 + $0x198] sm:$0xf0]  ;;  %v4311_v41 = vor.u32 %v5705_v31, %v4308_v32  ;;  %v4722_v31 = vld [vmem:[#allocation5 + $0x348] sm:$0xf]  ;;  %v5811_v32 = vld [vmem:[#allocation5 + $0x354] sm:$0xf0] }
 0x16c   :  { %v4503_v44 = vor.u32 %v5753_v37, %v4500_v10  ;;  %v4723_v37 = vor.u32 %v5811_v32, %v4722_v31  ;;  %v5919_v31 = vld [vmem:[#allocation7 + $0x2b4] sm:$0xf0] }
 0x16d   :  { %v1109_v47 = vpop.f32.mrf.mxu0  ;;  %v1123_v57 = vpop.f32.mrf.mxu1 }
 0x16e   :  { %2095 = vmatpush.bf16.msra.mxu2 %v4659_v12  ;;  %v1110_v59 = vadd.f32 %v1109_v47, %v287_v46  ;;  %v4802_v47 = vld [vmem:[#allocation5 + $0x3e8] sm:$0xf] }
 0x16f   :  { %2124 = vmatpush.bf16.msrb.mxu0 %v4391_v39  ;;  %2086 = vmatpush.bf16.msra.mxu1 %v4451_v48  ;;  %v5831_v48 = vld [vmem:[#allocation5 + $0x3f4] sm:$0xf0] }
 0x170   :  { %v1124_v7 = vadd.f32 %v1123_v57, %v1110_v59  ;;  %v4803_v57 = vor.u32 %v5831_v48, %v4802_v47  ;;  %v4564_v47 = vld [vmem:[#allocation5 + $0x218] sm:$0xf0]  ;;  %v5829_v48 = vld [vmem:[#allocation5 + $0x3ec] sm:$0xf] }
 0x172   :  { %2096 = vmatpush.bf16.msra.mxu2 %v4643_v53  ;;  %v4676_v53 = vld [vmem:[#allocation5 + $0x2f8] sm:$0xf0] }
 0x173   :  { %2125 = vmatpush.bf16.msrb.mxu0 %v4375_v49  ;;  %2087 = vmatpush.bf16.msra.mxu1 %v4435_v60  ;;  %v4679_v60 = vor.u32 %v5797_v52, %v4676_v53  ;;  %v5825_v52 = vld [vmem:[#allocation5 + $0x3cc] sm:$0xf]  ;;  %v4788_v53 = vld [vmem:[#allocation5 + $0x3d8] sm:$0xf0] }
 0x175   :  { %v1137_v0 = vpop.f32.mrf.mxu2  ;;  %v1151_v1 = vpop.f32.mrf.mxu3 }
 0x176   :  { %v1111_v8 = vpop.f32.mrf.mxu0  ;;  %v1138_v14 = vadd.f32 %v1137_v0, %v1124_v7  ;;  %2097 = vmatpush.bf16.msra.mxu2 %v4627_v38  ;;  %2088 = vmatmul.bf16.vlgmr.msra.gmra.mxu1 %v6299_v33  ;;  %v1125_v24 = vpop.f32.mrf.mxu1  ;;  %v4468_v38 = vld [vmem:[#allocation5 + $0x158] sm:$0xf0] }
 0x177   :  { %2126 = vmatpush.bf16.msrb.mxu0 %v4359_v16  ;;  %2136 = vmatpush.bf16.msrb.mxu1 %v4551_v61  ;;  %v1112_v15 = vadd.f32 %v1111_v8, %v287_v46  ;;  %v5771_v46 = vld [vmem:[#allocation5 + $0x214] sm:$0xf0]  ;;  %v5745_v61 = vld [vmem:[#allocation5 + $0x14c] sm:$0xf]  ;;  %v4452_v7 = vld [vmem:[#allocation5 + $0x138] sm:$0xf0] }
 0x178   :  { %v1152_v27 = vadd.f32 %v1151_v1, %v1138_v14  ;;  %v4563_v56 = vor.u32 %v5771_v46, %v4562_v45  ;;  %v5827_v16 = vld [vmem:[#allocation5 + $0x3d4] sm:$0xf0]  ;;  %v4471_v0 = vor.u32 %v5745_v61, %v4468_v38  ;;  %v4770_v1 = vld [vmem:[#allocation5 + $0x3a8] sm:$0xf]  ;;  %v4644_v8 = vld [vmem:[#allocation5 + $0x2b8] sm:$0xf0]  ;;  %v4455_v13 = vor.u32 %v5741_v2, %v4452_v7 }
 0x179   :  { %2046 = vmatmul.bf16.vlgmr.msrb.gmra.mxu2 %v6303_v35  ;;  %v1126_v28 = vadd.f32 %v1125_v24, %v1112_v15  ;;  %v4787_v63 = vor.u32 %v5827_v16, %v4786_v34  ;;  %v4754_v14 = vld [vmem:[#allocation5 + $0x388] sm:$0xf]  ;;  %v4631_v24 = vor.u32 %v5785_v20, %v4628_v21  ;;  %v5803_v45 = vld [vmem:[#allocation5 + $0x314] sm:$0xf0]  ;;  %v5769_v46 = vld [vmem:[#allocation5 + $0x20c] sm:$0xf] }
 0x17a   :  { %2098 = vmatpush.bf16.msra.mxu2 %v4611_v17  ;;  %v1159_v12 = vmul.f32 0.2, %v1152_v27  ;;  %v5819_v17 = vld [vmem:[#allocation5 + $0x394] sm:$0xf0]  ;;  %v4567_v50 = vor.u32 %v5769_v46, %v4564_v47  ;;  %v4756_v34 = vld [vmem:[#allocation5 + $0x398] sm:$0xf0] }
 0x17b   :  { %2127 = vmatpush.bf16.msrb.mxu0 %v4343_v9  ;;  %2137 = vmatpush.bf16.msrb.mxu1 %v4535_v18  ;;  %v4771_v9 = vor.u32 %v5823_v6, %v4770_v1  ;;  %v5737_v18 = vld [vmem:[#allocation5 + $0x10c] sm:$0xf]  ;;  %v4755_v22 = vor.u32 %v5819_v17, %v4754_v14  ;;  %v4740_v61 = vld [vmem:[#allocation5 + $0x378] sm:$0xf0]  ;;  %v4978_v7 = vld [vmem:[#allocation7 + $0x150] sm:$0xf] }
 0x17c   :  { %v1167_v54 = vmax.f32 %v1152_v27, %v1159_v12  ;;  %v4439_v23 = vor.u32 %v5737_v18, %v4436_v19  ;;  %v5781_v27 = vld [vmem:[#allocation5 + $0x26c] sm:$0xf]  ;;  %v4580_v12 = vld [vmem:[#allocation5 + $0x238] sm:$0xf0]  ;;  %v5865_v17 = vld [vmem:[#allocation7 + $0x104] sm:$0xf0] }
 0x17d   :  { %v1139_v3 = vpop.f32.mrf.mxu2  ;;  %v1153_v11 = vpop.f32.mrf.mxu3  ;;  %v5813_v16 = vld [vmem:[#allocation5 + $0x36c] sm:$0xf]  ;;  %v4708_v1 = vld [vmem:[#allocation5 + $0x338] sm:$0xf0]  ;;  %v4906_v19 = vld [vmem:[#allocation7 + $0xc0] sm:$0xf] }
 0x17e   :  { %v1140_v39 = vadd.f32 %v1139_v3, %v1126_v28  ;;  %2099 = vmatpush.bf16.msra.mxu2 %v4595_v25  ;;  %v4738_v25 = vld [vmem:[#allocation5 + $0x368] sm:$0xf]  ;;  %v4612_v28 = vld [vmem:[#allocation5 + $0x278] sm:$0xf0]  ;;  %v5777_v3 = vld [vmem:[#allocation5 + $0x24c] sm:$0xf]  ;;  %v4743_v38 = vor.u32 %v5813_v16, %v4740_v61 }
 0x17f   :  { %2128 = vmatpush.bf16.msrb.mxu0 %v4327_v26  ;;  %2138 = vmatpush.bf16.msrb.mxu1 %v4519_v29  ;;  %v5815_v26 = vld [vmem:[#allocation5 + $0x374] sm:$0xf0]  ;;  %v4615_v30 = vor.u32 %v5781_v27, %v4612_v28  ;;  %v4599_v10 = vor.u32 %v5777_v3, %v4596_v36  ;;  %v5801_v6 = vld [vmem:[#allocation5 + $0x30c] sm:$0xf]  ;;  %v4858_v27 = vld [vmem:[#allocation7 + $0x60] sm:$0xf] }
 0x180   :  { %v1154_v40 = vadd.f32 %v1153_v11, %v1140_v39  ;;  %v4739_v29 = vor.u32 %v5815_v26, %v4738_v25  ;;  %v4706_v39 = vld [vmem:[#allocation5 + $0x328] sm:$0xf]  ;;  %v5807_v11 = vld [vmem:[#allocation5 + $0x334] sm:$0xf0]  ;;  %v4834_v3 = vld [vmem:[#allocation7 + $0x30] sm:$0xf] }
 0x181   :  { %v5859_v20 = vld [vmem:[#allocation7 + $0xd4] sm:$0xf0]  ;;  %v5925_v26 = vld [vmem:[#allocation7 + $0x2e4] sm:$0xf0]  ;;  %v5874_v46 = vld [vmem:[#allocation7 + $0x154] sm:$0xf] }
 0x182   :  { %v1163_v49 = vmul.f32 0.2, %v1154_v40  ;;  %2100 = vmatpush.bf16.msra.mxu2 %v4579_v43  ;;  %v4907_v21 = vor.u32 %v5859_v20, %v4906_v19  ;;  %v5847_v28 = vld [vmem:[#allocation7 + $0x74] sm:$0xf0]  ;;  %v5841_v36 = vld [vmem:[#allocation7 + $0x44] sm:$0xf0] }
 0x183   :  { %2129 = vmatpush.bf16.msrb.mxu0 %v4311_v41  ;;  %2139 = vmatpush.bf16.msrb.mxu1 %v4503_v44  ;;  %v5773_v41 = vld [vmem:[#allocation5 + $0x22c] sm:$0xf]  ;;  %v4690_v44 = vld [vmem:[#allocation5 + $0x308] sm:$0xf]  ;;  %v5967_v16 = vld [vmem:[#allocation7 + $0x434] sm:$0xf0] }
 0x184   :  { %v1171_v55 = vmax.f32 %v1154_v40, %v1163_v49  ;;  %v4707_v40 = vor.u32 %v5807_v11, %v4706_v39  ;;  %v4583_v43 = vor.u32 %v5773_v41, %v4580_v12  ;;  %v4804_v49 = vld [vmem:[#allocation5 + $0x3f8] sm:$0xf0]  ;;  %v5913_v39 = vld [vmem:[#allocation7 + $0x284] sm:$0xf0]  ;;  %v4810_v11 = vld [vmem:[#allocation7] sm:$0xf] }
 0x185   :  { %v4807_v51 = vor.u32 %v5829_v48, %v4804_v49  ;;  %v5835_v41 = vld [vmem:[#allocation7 + $0x14] sm:$0xf0]  ;;  %v4980_v47 = vld [vmem:[#allocation7 + $0x168] sm:$0xf0]  ;;  %v5074_v49 = vld [vmem:[#allocation7 + $0x210] sm:$0xf] }
 0x186   :  { %v6311_v59 = vpack.c.bf16 %v1171_v55, %v1167_v54  ;;  %2130 = vmatmul.bf16.vlgmr.msrb.gmra.mxu0 %v6295_v42  ;;  %2101 = vmatpush.bf16.msra.mxu2 %v4563_v56  ;;  %v5789_v42 = vld [vmem:[#allocation5 + $0x2ac] sm:$0xf]  ;;  %v4791_v54 = vor.u32 %v5825_v52, %v4788_v53  ;;  %v4772_v56 = vld [vmem:[#allocation5 + $0x3b8] sm:$0xf0]  ;;  %v4983_v48 = vor.u32 %v5874_v46, %v4980_v47  ;;  %v5973_v52 = vld [vmem:[#allocation7 + $0x464] sm:$0xf0] }
 0x187   :  { %2140 = vmatpush.bf16.msrb.mxu1 %v4487_v58  ;;  %v4647_v15 = vor.u32 %v5789_v42, %v4644_v8  ;;  %v5821_v55 = vld [vmem:[#allocation5 + $0x3ac] sm:$0xf]  ;;  %v5877_v42 = vld [vmem:[#allocation7 + $0x164] sm:$0xf0]  ;;  %v4954_v8 = vld [vmem:[#allocation7 + $0x120] sm:$0xf] }
 0x188   :  { %2004 = vmatmul.bf16.vlgmr.msra.gmra.mxu3 %v6311_v59  ;;  %v5817_v58 = vld [vmem:[#allocation5 + $0x38c] sm:$0xf]  ;;  %v5868_v53 = vld [vmem:[#allocation7 + $0x124] sm:$0xf]  ;;  %v5862_v61 = vld [vmem:[#allocation7 + $0xf4] sm:$0xf] }
 0x189   :  { %2108 = vmatpush.bf16.msra.mxu3 %v4803_v57  ;;  %2102 = vmatmul.bf16.vlgmr.msra.gmra.mxu2 %v6303_v35  ;;  %v4775_v57 = vor.u32 %v5821_v55, %v4772_v56  ;;  %v5832_v46 = vld [vmem:[#allocation7 + $0x4] sm:$0xf]  ;;  %v4812_v47 = vld [vmem:[#allocation7 + $0x18] sm:$0xf0] }
 0x18a   :  { %2150 = vmatpush.bf16.msrb.mxu2 %v4679_v60  ;;  %v4759_v60 = vor.u32 %v5817_v58, %v4756_v34  ;;  %v5895_v58 = vld [vmem:[#allocation7 + $0x1f4] sm:$0xf0]  ;;  %v5338_v34 = vld [vmem:[#allocation7 + $0x420] sm:$0xf] }
 0x18b   :  { %2141 = vmatpush.bf16.msrb.mxu1 %v4471_v0  ;;  %v5805_v0 = vld [vmem:[#allocation5 + $0x32c] sm:$0xf] }
 0x18d   :  { %2109 = vmatpush.bf16.msra.mxu3 %v4787_v63  ;;  %v4727_v63 = vor.u32 %v5809_v62, %v4724_v4  ;;  %v5339_v62 = vor.u32 %v5967_v16, %v5338_v34  ;;  %v5076_v34 = vld [vmem:[#allocation7 + $0x228] sm:$0xf0] }
 0x18e   :  { %2151 = vmatpush.bf16.msrb.mxu2 %v4663_v5  ;;  %v4711_v5 = vor.u32 %v5805_v0, %v4708_v1  ;;  %v5889_v0 = vld [vmem:[#allocation7 + $0x1c4] sm:$0xf0]  ;;  %v5314_v1 = vld [vmem:[#allocation7 + $0x3f0] sm:$0xf] }
 0x18f   :  { %2142 = vmatpush.bf16.msrb.mxu1 %v4455_v13  ;;  %v5871_v13 = vld [vmem:[#allocation7 + $0x134] sm:$0xf0] }
 0x190   :  { %v4955_v14 = vor.u32 %v5871_v13, %v4954_v8  ;;  %v5002_v8 = vld [vmem:[#allocation7 + $0x180] sm:$0xf] }
 0x191   :  { %2110 = vmatpush.bf16.msra.mxu3 %v4771_v9  ;;  %v4979_v9 = vor.u32 %v5877_v42, %v4978_v7  ;;  %v4908_v7 = vld [vmem:[#allocation7 + $0xd8] sm:$0xf0]  ;;  %v5290_v13 = vld [vmem:[#allocation7 + $0x3c0] sm:$0xf] }
 0x192   :  { %2152 = vmatpush.bf16.msrb.mxu2 %v4647_v15  ;;  %v4930_v15 = vld [vmem:[#allocation7 + $0xf0] sm:$0xf] }
 0x193   :  { %2143 = vmatpush.bf16.msrb.mxu1 %v4439_v23  ;;  %3356 = vmatpush.bf16.msra.mxu0 %v4979_v9  ;;  %v4931_v18 = vor.u32 %v5865_v17, %v4930_v15  ;;  %v5853_v23 = vld [vmem:[#allocation7 + $0xa4] sm:$0xf0]  ;;  %v5883_v9 = vld [vmem:[#allocation7 + $0x194] sm:$0xf0]  ;;  %v5850_v17 = vld [vmem:[#allocation7 + $0x94] sm:$0xf] }
 0x194   :  { %v5955_v15 = vld [vmem:[#allocation7 + $0x3d4] sm:$0xf0] }
 0x195   :  { %2111 = vmatpush.bf16.msra.mxu3 %v4755_v22  ;;  %v4882_v22 = vld [vmem:[#allocation7 + $0x90] sm:$0xf]  ;;  %v5291_v19 = vor.u32 %v5955_v15, %v5290_v13  ;;  %v6009_v13 = vld [vmem:[#allocation7 + $0x584] sm:$0xf0] }
 0x196   :  { %2153 = vmatpush.bf16.msrb.mxu2 %v4631_v24  ;;  %2144 = vmatmul.bf16.vlgmr.msrb.gmra.mxu1 %v6299_v33  ;;  %v4691_v33 = vor.u32 %v5803_v45, %v4690_v44  ;;  %v5170_v24 = vld [vmem:[#allocation7 + $0x2d0] sm:$0xf]  ;;  %v4883_v25 = vor.u32 %v5853_v23, %v4882_v22  ;;  %v4811_v44 = vor.u32 %v5835_v41, %v4810_v11  ;;  %v5172_v22 = vld [vmem:[#allocation7 + $0x2e8] sm:$0xf0] }
 0x197   :  { %3357 = vmatpush.bf16.msra.mxu0 %v4955_v14  ;;  %v5003_v14 = vor.u32 %v5883_v9, %v5002_v8  ;;  %v5124_v41 = vld [vmem:[#allocation7 + $0x288] sm:$0xf0]  ;;  %v5506_v9 = vld [vmem:[#allocation7 + $0x570] sm:$0xf] }
 0x198   :  { %2060 = vmatmul.bf16.vlgmr.msrb.gmra.mxu3 %v6311_v59  ;;  %v5507_v15 = vor.u32 %v6009_v13, %v5506_v9 }
 0x199   :  { %2112 = vmatpush.bf16.msra.mxu3 %v4739_v29  ;;  %v5171_v29 = vor.u32 %v5925_v26, %v5170_v24  ;;  %v5266_v24 = vld [vmem:[#allocation7 + $0x390] sm:$0xf] }
 0x19a   :  { %2154 = vmatpush.bf16.msrb.mxu2 %v4615_v30  ;;  %v5146_v30 = vld [vmem:[#allocation7 + $0x2a0] sm:$0xf] }
 0x19b   :  { %3358 = vmatpush.bf16.msra.mxu0 %v4931_v18  ;;  %3370 = vmatpush.bf16.msra.mxu1 %v5171_v29  ;;  %v5147_v32 = vor.u32 %v5919_v31, %v5146_v30  ;;  %v4884_v18 = vld [vmem:[#allocation7 + $0xa8] sm:$0xf0]  ;;  %v5916_v29 = vld [vmem:[#allocation7 + $0x2a4] sm:$0xf]  ;;  %v5148_v31 = vld [vmem:[#allocation7 + $0x2b8] sm:$0xf0] }
 0x19c   :  { %v4887_v20 = vor.u32 %v5850_v17, %v4884_v18  ;;  %v5886_v17 = vld [vmem:[#allocation7 + $0x1b4] sm:$0xf]  ;;  %v5028_v18 = vld [vmem:[#allocation7 + $0x1c8] sm:$0xf0] }
 0x19d   :  { %2113 = vmatpush.bf16.msra.mxu3 %v4723_v37  ;;  %v5122_v37 = vld [vmem:[#allocation7 + $0x270] sm:$0xf] }
 0x19e   :  { %2155 = vmatpush.bf16.msrb.mxu2 %v4599_v10  ;;  %v4835_v10 = vor.u32 %v5841_v36, %v4834_v3  ;;  %v5123_v12 = vor.u32 %v5913_v39, %v5122_v37  ;;  %v5943_v3 = vld [vmem:[#allocation7 + $0x374] sm:$0xf0]  ;;  %v5838_v37 = vld [vmem:[#allocation7 + $0x34] sm:$0xf] }
 0x19f   :  { %3359 = vmatpush.bf16.msra.mxu0 %v4907_v21  ;;  %3371 = vmatpush.bf16.msra.mxu1 %v5147_v32  ;;  %v5922_v21 = vld [vmem:[#allocation7 + $0x2d4] sm:$0xf]  ;;  %v5242_v32 = vld [vmem:[#allocation7 + $0x360] sm:$0xf] }
 0x1a0   :  { %v5175_v23 = vor.u32 %v5922_v21, %v5172_v22  ;;  %v5243_v36 = vor.u32 %v5943_v3, %v5242_v32  ;;  %v5910_v39 = vld [vmem:[#allocation7 + $0x274] sm:$0xf]  ;;  %v5031_v21 = vor.u32 %v5886_v17, %v5028_v18  ;;  %v5316_v22 = vld [vmem:[#allocation7 + $0x408] sm:$0xf0]  ;;  %v5292_v32 = vld [vmem:[#allocation7 + $0x3d8] sm:$0xf0] }
 0x1a1   :  { %2114 = vmatpush.bf16.msra.mxu3 %v4707_v40  ;;  %v5098_v40 = vld [vmem:[#allocation7 + $0x240] sm:$0xf]  ;;  %v6018_v17 = vld [vmem:[#allocation7 + $0x5d4] sm:$0xf] }
 0x1a2   :  { %2156 = vmatpush.bf16.msrb.mxu2 %v4583_v43  ;;  %v5907_v43 = vld [vmem:[#allocation7 + $0x254] sm:$0xf0] }
 0x1a3   :  { %3360 = vmatpush.bf16.msra.mxu0 %v4883_v25  ;;  %3372 = vmatpush.bf16.msra.mxu1 %v5123_v12  ;;  %v5099_v45 = vor.u32 %v5907_v43, %v5098_v40  ;;  %v5949_v25 = vld [vmem:[#allocation7 + $0x3a4] sm:$0xf0]  ;;  %v5127_v12 = vor.u32 %v5910_v39, %v5124_v41  ;;  %v5218_v40 = vld [vmem:[#allocation7 + $0x330] sm:$0xf] }
 0x1a4   :  { %v5267_v26 = vor.u32 %v5949_v25, %v5266_v24  ;;  %v5937_v43 = vld [vmem:[#allocation7 + $0x344] sm:$0xf0]  ;;  %v5482_v25 = vld [vmem:[#allocation7 + $0x540] sm:$0xf] }
 0x1a5   :  { %2115 = vmatpush.bf16.msra.mxu3 %v4691_v33  ;;  %v5901_v33 = vld [vmem:[#allocation7 + $0x224] sm:$0xf0] }
 0x1a6   :  { %2157 = vmatpush.bf16.msrb.mxu2 %v4567_v50  ;;  %v5362_v50 = vld [vmem:[#allocation7 + $0x450] sm:$0xf]  ;;  %v5997_v39 = vld [vmem:[#allocation7 + $0x524] sm:$0xf0] }
 0x1a7   :  { %3373 = vmatpush.bf16.msra.mxu1 %v5099_v45  ;;  %v5363_v55 = vor.u32 %v5973_v52, %v5362_v50  ;;  %v5219_v45 = vor.u32 %v5937_v43, %v5218_v40  ;;  %v5194_v52 = vld [vmem:[#allocation7 + $0x300] sm:$0xf]  ;;  %v5268_v40 = vld [vmem:[#allocation7 + $0x3a8] sm:$0xf0] }
 0x1a8   :  { %2116 = vmatmul.bf16.vlgmr.msra.gmra.mxu3 %v6311_v59 }
 0x1a9   :  { %2164 = vmatpush.bf16.msrb.mxu3 %v4807_v51  ;;  %2158 = vmatmul.bf16.vlgmr.msrb.gmra.mxu2 %v6303_v35  ;;  %v4692_v35 = vld [vmem:[#allocation5 + $0x318] sm:$0xf0]  ;;  %v5075_v51 = vor.u32 %v5901_v33, %v5074_v49  ;;  %v4815_v49 = vor.u32 %v5832_v46, %v4812_v47 }
 0x1aa   :  { %v4695_v2 = vor.u32 %v5801_v6, %v4692_v35  ;;  %3384 = vmatpush.bf16.msra.mxu2 %v5363_v55  ;;  %v5961_v6 = vld [vmem:[#allocation7 + $0x404] sm:$0xf0]  ;;  %v5100_v33 = vld [vmem:[#allocation7 + $0x258] sm:$0xf0] }
 0x1ab   :  { %3374 = vmatpush.bf16.msra.mxu1 %v5075_v51  ;;  %v5315_v35 = vor.u32 %v5961_v6, %v5314_v1  ;;  %v5892_v1 = vld [vmem:[#allocation7 + $0x1e4] sm:$0xf] }
 0x1ac   :  { %v5964_v6 = vld [vmem:[#allocation7 + $0x424] sm:$0xf] }
 0x1ad   :  { %2165 = vmatpush.bf16.msrb.mxu3 %v4791_v54  ;;  %v4956_v54 = vld [vmem:[#allocation7 + $0x138] sm:$0xf0] }
 0x1ae   :  { %v4959_v56 = vor.u32 %v5868_v53, %v4956_v54  ;;  %3385 = vmatpush.bf16.msra.mxu2 %v5339_v62  ;;  %v5931_v53 = vld [vmem:[#allocation7 + $0x314] sm:$0xf0]  ;;  %v5554_v54 = vld [vmem:[#allocation7 + $0x5d0] sm:$0xf] }
 0x1b1   :  { %2166 = vmatpush.bf16.msrb.mxu3 %v4775_v57  ;;  %v5050_v57 = vld [vmem:[#allocation7 + $0x1e0] sm:$0xf] }
 0x1b2   :  { %3386 = vmatpush.bf16.msra.mxu2 %v5315_v35 }
 0x1b5   :  { %2167 = vmatpush.bf16.msrb.mxu3 %v4759_v60  ;;  %v5051_v60 = vor.u32 %v5895_v58, %v5050_v57  ;;  %v6021_v57 = vld [vmem:[#allocation7 + $0x5e4] sm:$0xf0]  ;;  %v5898_v58 = vld [vmem:[#allocation7 + $0x214] sm:$0xf] }
 0x1b6   :  { %3387 = vmatpush.bf16.msra.mxu2 %v5291_v19  ;;  %v5079_v16 = vor.u32 %v5898_v58, %v5076_v34  ;;  %v5958_v19 = vld [vmem:[#allocation7 + $0x3f4] sm:$0xf] }
 0x1b7   :  { %3375 = vmatpush.bf16.msra.mxu1 %v5051_v60  ;;  %v5555_v60 = vor.u32 %v6021_v57, %v5554_v54  ;;  %v5319_v24 = vor.u32 %v5958_v19, %v5316_v22 }
 0x1b9   :  { %2168 = vmatpush.bf16.msrb.mxu3 %v4743_v38  ;;  %v4932_v38 = vld [vmem:[#allocation7 + $0x108] sm:$0xf0] }
 0x1ba   :  { %v4935_v4 = vor.u32 %v5862_v61, %v4932_v38  ;;  %3388 = vmatpush.bf16.msra.mxu2 %v5267_v26  ;;  %v5970_v61 = vld [vmem:[#allocation7 + $0x454] sm:$0xf]  ;;  %v5364_v38 = vld [vmem:[#allocation7 + $0x468] sm:$0xf0]  ;;  %v6003_v26 = vld [vmem:[#allocation7 + $0x554] sm:$0xf0] }
 0x1bb   :  { %v5367_v62 = vor.u32 %v5970_v61, %v5364_v38  ;;  %v5934_v38 = vld [vmem:[#allocation7 + $0x334] sm:$0xf] }
 0x1bd   :  { %2169 = vmatpush.bf16.msrb.mxu3 %v4727_v63  ;;  %v5026_v63 = vld [vmem:[#allocation7 + $0x1b0] sm:$0xf] }
 0x1be   :  { %3389 = vmatpush.bf16.msra.mxu2 %v5243_v36 }
 0x1c1   :  { %2170 = vmatpush.bf16.msrb.mxu3 %v4711_v5  ;;  %v5027_v5 = vor.u32 %v5889_v0, %v5026_v63  ;;  %v6015_v63 = vld [vmem:[#allocation7 + $0x5b4] sm:$0xf0] }
 0x1c2   :  { %3390 = vmatpush.bf16.msra.mxu2 %v5219_v45 }
 0x1c3   :  { %3376 = vmatpush.bf16.msra.mxu1 %v5027_v5  ;;  %v5052_v5 = vld [vmem:[#allocation7 + $0x1f8] sm:$0xf0] }
 0x1c4   :  { %v5055_v35 = vor.u32 %v5892_v1, %v5052_v5 }
 0x1c5   :  { %2171 = vmatpush.bf16.msrb.mxu3 %v4695_v2  ;;  %v5856_v2 = vld [vmem:[#allocation7 + $0xc4] sm:$0xf] }
 0x1c6   :  { %v4911_v42 = vor.u32 %v5856_v2, %v4908_v7  ;;  %v5340_v2 = vld [vmem:[#allocation7 + $0x438] sm:$0xf0]  ;;  %v6328_v7 = vld [vmem:[%s6425_s5] sm:$0xf] }
 0x1c7   :  { %3377 = vmatpush.bf16.msra.mxu1 %v5003_v14  ;;  %v5343_v8 = vor.u32 %v5964_v6, %v5340_v2  ;;  %v5386_v2 = vld [vmem:[#allocation7 + $0x480] sm:$0xf] }
 0x1c8   :  { %2172 = vmatmul.bf16.vlgmr.msrb.gmra.mxu3 %v6311_v59  ;;  %v4859_v59 = vor.u32 %v5847_v28, %v4858_v27  ;;  %v5844_v27 = vld [vmem:[#allocation7 + $0x64] sm:$0xf]  ;;  %v4860_v28 = vld [vmem:[#allocation7 + $0x78] sm:$0xf0] }
 0x1c9   :  { %v4863_v30 = vor.u32 %v5844_v27, %v4860_v28  ;;  %3398 = vmatpush.bf16.msra.mxu3 %v5555_v60  ;;  %v5483_v27 = vor.u32 %v6003_v26, %v5482_v25  ;;  %v5880_v28 = vld [vmem:[#allocation7 + $0x184] sm:$0xf]  ;;  %v5410_v60 = vld [vmem:[#allocation7 + $0x4b0] sm:$0xf] }
 0x1ca   :  { %3361 = vmatpush.bf16.msra.mxu0 %v4859_v59  ;;  %v5151_v59 = vor.u32 %v5916_v29, %v5148_v31  ;;  %v5004_v29 = vld [vmem:[#allocation7 + $0x198] sm:$0xf0] }
 0x1cb   :  { %3426 = vmatpush.bf16.msrb.mxu1 %v5175_v23 }
 0x1ce   :  { %3362 = vmatpush.bf16.msra.mxu0 %v4835_v10  ;;  %v4836_v10 = vld [vmem:[#allocation7 + $0x48] sm:$0xf0] }
 0x1cf   :  { %3427 = vmatpush.bf16.msrb.mxu1 %v5151_v59  ;;  %v4839_v11 = vor.u32 %v5838_v37, %v4836_v10  ;;  %v5007_v59 = vor.u32 %v5880_v28, %v5004_v29  ;;  %v5458_v10 = vld [vmem:[#allocation7 + $0x510] sm:$0xf]  ;;  %v4938_v29 = vld [vmem:[#allocation7 + $0xf8] sm:$0xf] }
 0x1d0   :  { %v5459_v41 = vor.u32 %v5997_v39, %v5458_v10 }
 0x1d2   :  { %3363 = vmatpush.bf16.msra.mxu0 %v4811_v44  ;;  %v6321_v44 = vpop.f32.mrf.mxu0 }
 0x1d3   :  { %3428 = vmatpush.bf16.msrb.mxu1 %v5127_v12  ;;  %v1977_v50 = vpop.f32.mrf.mxu1  ;;  %v5946_v12 = vld [vmem:[#allocation7 + $0x394] sm:$0xf] }
 0x1d4   :  { %v5271_v46 = vor.u32 %v5946_v12, %v5268_v40  ;;  %v5860_v40 = vld [vmem:[#allocation7 + $0xdc] sm:$0xf0] }
 0x1d6   :  { %3412 = vmatpush.bf16.msrb.mxu0 %v4983_v48  ;;  %v5904_v48 = vld [vmem:[#allocation7 + $0x244] sm:$0xf] }
 0x1d7   :  { %v5103_v51 = vor.u32 %v5904_v48, %v5100_v33  ;;  %v5991_v33 = vld [vmem:[#allocation7 + $0x4f4] sm:$0xf0] }
 0x1d9   :  { %3429 = vmatpush.bf16.msrb.mxu1 %v5103_v51 }
 0x1da   :  { %3413 = vmatpush.bf16.msrb.mxu0 %v4959_v56  ;;  %v5195_v56 = vor.u32 %v5931_v53, %v5194_v52  ;;  %v5940_v52 = vld [vmem:[#allocation7 + $0x364] sm:$0xf]  ;;  %v5244_v53 = vld [vmem:[#allocation7 + $0x378] sm:$0xf0] }
 0x1db   :  { %v1979_v14 = vpop.f32.mrf.mxu1 }
 0x1dc   :  { %3391 = vmatpush.bf16.msra.mxu2 %v5195_v56  ;;  %v5247_v56 = vor.u32 %v5940_v52, %v5244_v53  ;;  %v5854_v53 = vld [vmem:[#allocation7 + $0xac] sm:$0xf0] }
 0x1dd   :  { %3430 = vmatpush.bf16.msrb.mxu1 %v5079_v16  ;;  %v1307_v16 = vperm.slane %v6328_v7, 1 }
 0x1de   :  { %3414 = vmatpush.bf16.msrb.mxu0 %v4935_v4  ;;  %v5530_v4 = vld [vmem:[#allocation7 + $0x5a0] sm:$0xf] }
 0x1df   :  { %v5531_v0 = vor.u32 %v6015_v63, %v5530_v4  ;;  %v4986_v63 = vld [vmem:[#allocation7 + $0x158] sm:$0xf] }
 0x1e0   :  { %3440 = vmatpush.bf16.msrb.mxu2 %v5367_v62  ;;  %v5220_v62 = vld [vmem:[#allocation7 + $0x348] sm:$0xf0] }
 0x1e1   :  { %3399 = vmatpush.bf16.msra.mxu3 %v5531_v0  ;;  %3431 = vmatpush.bf16.msrb.mxu1 %v5055_v35  ;;  %v5878_v0 = vld [vmem:[#allocation7 + $0x16c] sm:$0xf0]  ;;  %v5223_v1 = vor.u32 %v5934_v38, %v5220_v62  ;;  %v4866_v62 = vld [vmem:[#allocation7 + $0x68] sm:$0xf] }
 0x1e2   :  { %3415 = vmatpush.bf16.msrb.mxu0 %v4911_v42  ;;  %v1965_v42 = vpop.f32.mrf.mxu0  ;;  %v4987_v9 = vor.u32 %v5878_v0, %v4986_v63  ;;  %v5154_v63 = vld [vmem:[#allocation7 + $0x2a8] sm:$0xf] }
 0x1e3   :  { %v2033_v47 = vpop.f32.mrf.mxu1 }
 0x1e4   :  { %3441 = vmatpush.bf16.msrb.mxu2 %v5343_v8 }
 0x1e5   :  { %3400 = vmatpush.bf16.msra.mxu3 %v5507_v15  ;;  %3432 = vmatpush.bf16.msrb.mxu1 %v5031_v21  ;;  %v5196_v15 = vld [vmem:[#allocation7 + $0x318] sm:$0xf0]  ;;  %v5872_v21 = vld [vmem:[#allocation7 + $0x13c] sm:$0xf0] }
 0x1e6   :  { %3416 = vmatpush.bf16.msrb.mxu0 %v4887_v20  ;;  %v1306_v20 = vperm.slane %v6328_v7, 0 }
 0x1e8   :  { %3442 = vmatpush.bf16.msrb.mxu2 %v5319_v24  ;;  %v1964_v31 = vadd.f32 %v6321_v44, %v1306_v20  ;;  %v1966_v43 = vadd.f32 %v1965_v42, %v1306_v20  ;;  %v5979_v42 = vld [vmem:[#allocation7 + $0x494] sm:$0xf0]  ;;  %v4962_v20 = vld [vmem:[#allocation7 + $0x128] sm:$0xf] }
 0x1e9   :  { %3401 = vmatpush.bf16.msra.mxu3 %v5483_v27  ;;  %3433 = vmatpush.bf16.msrb.mxu1 %v5007_v59  ;;  %v5387_v13 = vor.u32 %v5979_v42, %v5386_v2  ;;  %v4963_v28 = vor.u32 %v5872_v21, %v4962_v20  ;;  %v5866_v59 = vld [vmem:[#allocation7 + $0x10c] sm:$0xf0]  ;;  %v5130_v20 = vld [vmem:[#allocation7 + $0x278] sm:$0xf] }
 0x1ea   :  { %3417 = vmatpush.bf16.msrb.mxu0 %v4863_v30  ;;  %v5952_v30 = vld [vmem:[#allocation7 + $0x3c4] sm:$0xf]  ;;  %v1978_v37 = vadd.f32 %v1977_v50, %v1964_v31  ;;  %v1980_v44 = vadd.f32 %v1979_v14, %v1966_v43  ;;  %v6006_v43 = vld [vmem:[#allocation7 + $0x574] sm:$0xf] }
 0x1eb   :  { %v5295_v36 = vor.u32 %v5952_v30, %v5292_v32  ;;  %v2035_v8 = vpop.f32.mrf.mxu1  ;;  %v5928_v14 = vld [vmem:[#allocation7 + $0x304] sm:$0xf] }
 0x1ec   :  { %v6323_v55 = vpop.f32.mrf.mxu2  ;;  %v5199_v22 = vor.u32 %v5928_v14, %v5196_v15  ;;  %v6012_v32 = vld [vmem:[#allocation7 + $0x5a4] sm:$0xf] }
 0x1ed   :  { %3443 = vmatpush.bf16.msrb.mxu2 %v5295_v36  ;;  %v1992_v45 = vadd.f32 %v6323_v55, %v1978_v37  ;;  %3402 = vmatpush.bf16.msra.mxu3 %v5459_v41  ;;  %v5985_v55 = vld [vmem:[#allocation7 + $0x4c4] sm:$0xf0] }
 0x1ee   :  { %3418 = vmatpush.bf16.msrb.mxu0 %v4839_v11  ;;  %v2019_v11 = vpop.f32.mrf.mxu0  ;;  %v5411_v61 = vor.u32 %v5985_v55, %v5410_v60  ;;  %v4914_v41 = vld [vmem:[#allocation7 + $0xc8] sm:$0xf] }
 0x1ef   :  { %v2020_v18 = vadd.f32 %v2019_v11, %v1307_v16  ;;  %v4939_v11 = vor.u32 %v5866_v59, %v4938_v29  ;;  %v4915_v52 = vor.u32 %v5860_v40, %v4914_v41  ;;  %v4818_v59 = vld [vmem:[#allocation7 + $0x8] sm:$0xf]  ;;  %v5875_v41 = vld [vmem:[#allocation7 + $0x15c] sm:$0xf] }
 0x1f1   :  { %3444 = vmatpush.bf16.msrb.mxu2 %v5271_v46  ;;  %v2034_v27 = vadd.f32 %v2033_v47, %v2020_v18  ;;  %v5842_v18 = vld [vmem:[#allocation7 + $0x4c] sm:$0xf0] }
 0x1f2   :  { %3419 = vmatpush.bf16.msrb.mxu0 %v4815_v49  ;;  %v5434_v49 = vld [vmem:[#allocation7 + $0x4e0] sm:$0xf] }
 0x1f3   :  { %v5435_v51 = vor.u32 %v5991_v33, %v5434_v49  ;;  %v2089_v46 = vpop.f32.mrf.mxu1 }
 0x1f4   :  { %v1993_v23 = vpop.f32.mrf.mxu2 }
 0x1f5   :  { %v1994_v54 = vadd.f32 %v1993_v23, %v1980_v44  ;;  %3403 = vmatpush.bf16.msra.mxu3 %v5435_v51  ;;  %3445 = vmatpush.bf16.msrb.mxu2 %v5247_v56  ;;  %v5556_v23 = vld [vmem:[#allocation7 + $0x5e8] sm:$0xf0]  ;;  %v5926_v56 = vld [vmem:[#allocation7 + $0x2ec] sm:$0xf0] }
 0x1f6   :  { %v2021_v5 = vpop.f32.mrf.mxu0  ;;  %v5559_v26 = vor.u32 %v6018_v17, %v5556_v23  ;;  %v4842_v17 = vld [vmem:[#allocation7 + $0x38] sm:$0xf]  ;;  %v5914_v23 = vld [vmem:[#allocation7 + $0x28c] sm:$0xf0] }
 0x1f7   :  { %v2022_v30 = vadd.f32 %v2021_v5, %v1307_v16  ;;  %v5920_v5 = vld [vmem:[#allocation7 + $0x2bc] sm:$0xf0] }
 0x1f8   :  { %v5155_v15 = vor.u32 %v5920_v5, %v5154_v63  ;;  %v5968_v63 = vld [vmem:[#allocation7 + $0x43c] sm:$0xf0]  ;;  %v4940_v5 = vld [vmem:[#allocation7 + $0x110] sm:$0xf0] }
 0x1f9   :  { %3404 = vmatpush.bf16.msra.mxu3 %v5411_v61  ;;  %3446 = vmatpush.bf16.msrb.mxu2 %v5223_v1  ;;  %v2036_v37 = vadd.f32 %v2035_v8, %v2022_v30  ;;  %v4843_v30 = vor.u32 %v5842_v18, %v4842_v17  ;;  %v4916_v17 = vld [vmem:[#allocation7 + $0xe0] sm:$0xf0] }
 0x1fc   :  { %v2047_v50 = vpop.f32.mrf.mxu2 }
 0x1fd   :  { %3405 = vmatpush.bf16.msra.mxu3 %v5387_v13  ;;  %3447 = vmatpush.bf16.msrb.mxu2 %v5199_v22  ;;  %v2048_v31 = vadd.f32 %v2047_v50, %v2034_v27  ;;  %v4890_v50 = vld [vmem:[#allocation7 + $0x98] sm:$0xf]  ;;  %v2091_v13 = vpop.f32.mrf.mxu1 }
 0x1fe   :  { %v2075_v39 = vpop.f32.mrf.mxu0  ;;  %v4891_v61 = vor.u32 %v5854_v53, %v4890_v50  ;;  %v5974_v53 = vld [vmem:[#allocation7 + $0x46c] sm:$0xf0] }
 0x201   :  { %3454 = vmatpush.bf16.msrb.mxu3 %v5559_v26 }
 0x204   :  { %v2049_v24 = vpop.f32.mrf.mxu2 }
 0x205   :  { %v2050_v12 = vadd.f32 %v2049_v24, %v2036_v37  ;;  %v5988_v24 = vld [vmem:[#allocation7 + $0x4e4] sm:$0xf]  ;;  %v5908_v37 = vld [vmem:[#allocation7 + $0x25c] sm:$0xf0] }
 0x206   :  { %v2077_v2 = vpop.f32.mrf.mxu0 }
 0x20b   :  { %v2005_v3 = vpop.f32.mrf.mxu3 }
 0x20c   :  { %v2006_v48 = vadd.f32 %v2005_v3, %v1992_v45  ;;  %v5532_v3 = vld [vmem:[#allocation7 + $0x5b8] sm:$0xf0]  ;;  %v5508_v45 = vld [vmem:[#allocation7 + $0x588] sm:$0xf0]  ;;  %v2103_v51 = vpop.f32.mrf.mxu2 }
 0x20d   :  { %v5535_v36 = vor.u32 %v6012_v32, %v5532_v3  ;;  %v5511_v44 = vor.u32 %v6006_v43, %v5508_v45  ;;  %v5836_v32 = vld [vmem:[#allocation7 + $0x1c] sm:$0xf0]  ;;  %v5106_v3 = vld [vmem:[#allocation7 + $0x248] sm:$0xf] }
 0x20e   :  { %v2178_v58 = vmul.f32 0.2, %v2006_v48 }
 0x20f   :  { %3455 = vmatpush.bf16.msrb.mxu3 %v5535_v36 }
 0x210   :  { %v2186_v6 = vmax.f32 %v2006_v48, %v2178_v58  ;;  %v1308_v48 = vperm.slane %v6328_v7, 2  ;;  %v6000_v58 = vld [vmem:[#allocation7 + $0x544] sm:$0xf] }
 0x212   :  { %v2076_v0 = vadd.f32 %v2075_v39, %v1308_v48  ;;  %v2078_v21 = vadd.f32 %v2077_v2, %v1308_v48  ;;  %v5412_v39 = vld [vmem:[#allocation7 + $0x4c8] sm:$0xf0]  ;;  %v5902_v48 = vld [vmem:[#allocation7 + $0x22c] sm:$0xf0] }
 0x213   :  { %v2007_v57 = vpop.f32.mrf.mxu3  ;;  %3456 = vmatpush.bf16.msrb.mxu3 %v5511_v44  ;;  %v5082_v44 = vld [vmem:[#allocation7 + $0x218] sm:$0xf]  ;;  %v2145_v18 = vpop.f32.mrf.mxu1 }
 0x214   :  { %v2008_v34 = vadd.f32 %v2007_v57, %v1994_v54  ;;  %v5178_v54 = vld [vmem:[#allocation7 + $0x2d8] sm:$0xf]  ;;  %v2105_v26 = vpop.f32.mrf.mxu2 }
 0x215   :  { %v5179_v38 = vor.u32 %v5926_v56, %v5178_v54  ;;  %v5869_v54 = vld [vmem:[#allocation7 + $0x12c] sm:$0xf]  ;;  %v4964_v56 = vld [vmem:[#allocation7 + $0x140] sm:$0xf0] }
 0x216   :  { %v2182_v4 = vmul.f32 0.2, %v2008_v34 }
 0x218   :  { %v2190_v35 = vmax.f32 %v2008_v34, %v2182_v4  ;;  %v5484_v34 = vld [vmem:[#allocation7 + $0x558] sm:$0xf0]  ;;  %v5848_v4 = vld [vmem:[#allocation7 + $0x7c] sm:$0xf0] }
 0x219   :  { %v5487_v60 = vor.u32 %v6000_v58, %v5484_v34  ;;  %v4867_v14 = vor.u32 %v5848_v4, %v4866_v62  ;;  %v5896_v62 = vld [vmem:[#allocation7 + $0x1fc] sm:$0xf0]  ;;  %v5346_v4 = vld [vmem:[#allocation7 + $0x428] sm:$0xf] }
 0x21a   :  { %v6334_v19 = vpack.c.bf16 %v2190_v35, %v2186_v6  ;;  %v5994_v6 = vld [vmem:[#allocation7 + $0x514] sm:$0xf]  ;;  %v5460_v35 = vld [vmem:[#allocation7 + $0x528] sm:$0xf0]  ;;  %v5347_v2 = vor.u32 %v5968_v63, %v5346_v4 }
 0x21b   :  { %v2061_v25 = vpop.f32.mrf.mxu3  ;;  %3457 = vmatpush.bf16.msrb.mxu3 %v5487_v60  ;;  %v5463_v8 = vor.u32 %v5994_v6, %v5460_v35  ;;  %v5083_v60 = vor.u32 %v5902_v48, %v5082_v44  ;;  %v2131_v35 = vpop.f32.mrf.mxu0 }
 0x21c   :  { %3364 = vmatmul.bf16.vlgmr.msra.gmra.mxu0 %v6334_v19  ;;  %v2062_v10 = vadd.f32 %v2061_v25, %v2048_v31  ;;  %v5436_v25 = vld [vmem:[#allocation7 + $0x4f8] sm:$0xf0]  ;;  %v5131_v31 = vor.u32 %v5914_v23, %v5130_v20  ;;  %v1309_v20 = vperm.slane %v6328_v7, 3 }
 0x21d   :  { %3468 = vmatpush.bf16.msra.mxu0 %v4987_v9  ;;  %v2090_v9 = vadd.f32 %v2089_v46, %v2076_v0  ;;  %v5439_v27 = vor.u32 %v5988_v24, %v5436_v25  ;;  %v4819_v46 = vor.u32 %v5836_v32, %v4818_v59  ;;  %v5863_v0 = vld [vmem:[#allocation7 + $0xfc] sm:$0xf]  ;;  %v5010_v25 = vld [vmem:[#allocation7 + $0x188] sm:$0xf]  ;;  %v5180_v59 = vld [vmem:[#allocation7 + $0x2f0] sm:$0xf0] }
 0x21e   :  { %v2179_v49 = vmul.f32 0.2, %v2062_v10 }
 0x21f   :  { %v2104_v22 = vadd.f32 %v2103_v51, %v2090_v9  ;;  %3458 = vmatpush.bf16.msrb.mxu3 %v5463_v8  ;;  %v5976_v51 = vld [vmem:[#allocation7 + $0x484] sm:$0xf]  ;;  %v5034_v8 = vld [vmem:[#allocation7 + $0x1b8] sm:$0xf]  ;;  %v5890_v9 = vld [vmem:[#allocation7 + $0x1cc] sm:$0xf0] }
 0x220   :  { %v2187_v55 = vmax.f32 %v2062_v10, %v2179_v49  ;;  %v5982_v10 = vld [vmem:[#allocation7 + $0x4b4] sm:$0xf]  ;;  %v5370_v49 = vld [vmem:[#allocation7 + $0x458] sm:$0xf] }
 0x221   :  { %3469 = vmatpush.bf16.msra.mxu0 %v4963_v28  ;;  %v2092_v28 = vadd.f32 %v2091_v13, %v2078_v21  ;;  %v5415_v40 = vor.u32 %v5982_v10, %v5412_v39  ;;  %v5322_v13 = vld [vmem:[#allocation7 + $0x3f8] sm:$0xf]  ;;  %v5035_v21 = vor.u32 %v5890_v9, %v5034_v8  ;;  %v5950_v39 = vld [vmem:[#allocation7 + $0x3ac] sm:$0xf0] }
 0x222   :  { %v5879_v8 = vld [vmem:[#allocation7 + $0x174] sm:$0xf0] }
 0x223   :  { %v2063_v47 = vpop.f32.mrf.mxu3  ;;  %v2106_v36 = vadd.f32 %v2105_v26, %v2092_v28  ;;  %3459 = vmatpush.bf16.msrb.mxu3 %v5439_v27  ;;  %v5884_v26 = vld [vmem:[#allocation7 + $0x19c] sm:$0xf0]  ;;  %v5298_v27 = vld [vmem:[#allocation7 + $0x3c8] sm:$0xf] }
 0x224   :  { %v2064_v33 = vadd.f32 %v2063_v47, %v2050_v12  ;;  %v4988_v12 = vld [vmem:[#allocation7 + $0x170] sm:$0xf0]  ;;  %v5107_v47 = vor.u32 %v5908_v37, %v5106_v3  ;;  %v5956_v28 = vld [vmem:[#allocation7 + $0x3dc] sm:$0xf0]  ;;  %v5011_v32 = vor.u32 %v5884_v26, %v5010_v25  ;;  %v2132_v37 = vadd.f32 %v2131_v35, %v1309_v20  ;;  %v5899_v25 = vld [vmem:[#allocation7 + $0x21c] sm:$0xf] }
 0x225   :  { %3470 = vmatpush.bf16.msra.mxu0 %v4939_v11  ;;  %v4991_v50 = vor.u32 %v5875_v41, %v4988_v12  ;;  %v5299_v7 = vor.u32 %v5956_v28, %v5298_v27  ;;  %v4868_v41 = vld [vmem:[#allocation7 + $0x80] sm:$0xf0]  ;;  %v2133_v12 = vpop.f32.mrf.mxu0  ;;  %v5084_v26 = vld [vmem:[#allocation7 + $0x230] sm:$0xf0]  ;;  %v5971_v27 = vld [vmem:[#allocation7 + $0x45c] sm:$0xf] }
 0x226   :  { %v2183_v57 = vmul.f32 0.2, %v2064_v33  ;;  %v5372_v28 = vld [vmem:[#allocation7 + $0x470] sm:$0xf0] }
 0x227   :  { %3460 = vmatpush.bf16.msrb.mxu3 %v5415_v40 }
 0x228   :  { %v2191_v16 = vmax.f32 %v2064_v33, %v2183_v57 }
 0x229   :  { %3471 = vmatpush.bf16.msra.mxu0 %v4915_v52  ;;  %v5388_v52 = vld [vmem:[#allocation7 + $0x498] sm:$0xf0] }
 0x22a   :  { %v6338_v1 = vpack.c.bf16 %v2191_v16, %v2187_v55  ;;  %v5391_v57 = vor.u32 %v5976_v51, %v5388_v52  ;;  %v5371_v16 = vor.u32 %v5974_v53, %v5370_v49  ;;  %v5250_v49 = vld [vmem:[#allocation7 + $0x368] sm:$0xf]  ;;  %v5944_v52 = vld [vmem:[#allocation7 + $0x37c] sm:$0xf0]  ;;  %v5839_v53 = vld [vmem:[#allocation7 + $0x3c] sm:$0xf] }
 0x22b   :  { %v2117_v42 = vpop.f32.mrf.mxu3 }
 0x22c   :  { %3378 = vmatmul.bf16.vlgmr.msra.gmra.mxu1 %v6338_v1  ;;  %3420 = vmatmul.bf16.vlgmr.msrb.gmra.mxu0 %v6334_v19  ;;  %v2118_v29 = vadd.f32 %v2117_v42, %v2104_v22  ;;  %v4943_v42 = vor.u32 %v5863_v0, %v4940_v5  ;;  %v2159_v22 = vpop.f32.mrf.mxu2  ;;  %v5833_v0 = vld [vmem:[#allocation7 + $0xc] sm:$0xf]  ;;  %v4820_v5 = vld [vmem:[#allocation7 + $0x20] sm:$0xf0] }
 0x22d   :  { %3472 = vmatpush.bf16.msra.mxu0 %v4891_v61  ;;  %3482 = vmatpush.bf16.msra.mxu1 %v5179_v38  ;;  %v4967_v61 = vor.u32 %v5869_v54, %v4964_v56  ;;  %v5058_v38 = vld [vmem:[#allocation7 + $0x1e8] sm:$0xf]  ;;  %v4844_v54 = vld [vmem:[#allocation7 + $0x50] sm:$0xf0] }
 0x22e   :  { %v2180_v43 = vmul.f32 0.2, %v2118_v29  ;;  %3461 = vmatpush.bf16.msrb.mxu3 %v5391_v57  ;;  %v5059_v6 = vor.u32 %v5896_v62, %v5058_v38  ;;  %v5911_v57 = vld [vmem:[#allocation7 + $0x27c] sm:$0xf]  ;;  %v5226_v38 = vld [vmem:[#allocation7 + $0x338] sm:$0xf] }
 0x22f   :  { %v5938_v62 = vld [vmem:[#allocation7 + $0x34c] sm:$0xf0] }
 0x230   :  { %v2188_v58 = vmax.f32 %v2118_v29, %v2180_v43  ;;  %v5851_v29 = vld [vmem:[#allocation7 + $0x9c] sm:$0xf]  ;;  %v5917_v43 = vld [vmem:[#allocation7 + $0x2ac] sm:$0xf] }
 0x231   :  { %3473 = vmatpush.bf16.msra.mxu0 %v4867_v14  ;;  %3483 = vmatpush.bf16.msra.mxu1 %v5155_v15  ;;  %v5962_v14 = vld [vmem:[#allocation7 + $0x40c] sm:$0xf0]  ;;  %v5857_v15 = vld [vmem:[#allocation7 + $0xcc] sm:$0xf] }
 0x232   :  { %v5323_v23 = vor.u32 %v5962_v14, %v5322_v13  ;;  %v4919_v24 = vor.u32 %v5857_v15, %v4916_v17  ;;  %v5227_v14 = vor.u32 %v5938_v62, %v5226_v38  ;;  %v4823_v15 = vor.u32 %v5833_v0, %v4820_v5  ;;  %v5202_v17 = vld [vmem:[#allocation7 + $0x308] sm:$0xf]  ;;  %v5881_v38 = vld [vmem:[#allocation7 + $0x18c] sm:$0xf]  ;;  %v5012_v62 = vld [vmem:[#allocation7 + $0x1a0] sm:$0xf0] }
 0x233   :  { %v2119_v11 = vpop.f32.mrf.mxu3  ;;  %v5300_v0 = vld [vmem:[#allocation7 + $0x3e0] sm:$0xf0]  ;;  %v4898_v5 = vld [vmem:[#allocation7 + $0xa0] sm:$0xf] }
 0x234   :  { %v2120_v45 = vadd.f32 %v2119_v11, %v2106_v36  ;;  %v5274_v36 = vld [vmem:[#allocation7 + $0x398] sm:$0xf]  ;;  %v5845_v11 = vld [vmem:[#allocation7 + $0x6c] sm:$0xf]  ;;  %v2161_v56 = vpop.f32.mrf.mxu2 }
 0x235   :  { %3474 = vmatpush.bf16.msra.mxu0 %v4843_v30  ;;  %3484 = vmatpush.bf16.msra.mxu1 %v5131_v31  ;;  %v4892_v30 = vld [vmem:[#allocation7 + $0xb0] sm:$0xf0]  ;;  %v5923_v31 = vld [vmem:[#allocation7 + $0x2dc] sm:$0xf]  ;;  %v5275_v44 = vor.u32 %v5950_v39, %v5274_v36  ;;  %v4871_v48 = vor.u32 %v5845_v11, %v4868_v41  ;;  %v5087_v36 = vor.u32 %v5899_v25, %v5084_v26  ;;  %v6016_v39 = vld [vmem:[#allocation7 + $0x5bc] sm:$0xf0] }
 0x236   :  { %v2184_v33 = vmul.f32 0.2, %v2120_v45  ;;  %v4895_v3 = vor.u32 %v5851_v29, %v4892_v30  ;;  %v5183_v10 = vor.u32 %v5923_v31, %v5180_v59  ;;  %v4970_v31 = vld [vmem:[#allocation7 + $0x130] sm:$0xf]  ;;  %v5873_v59 = vld [vmem:[#allocation7 + $0x144] sm:$0xf0] }
 0x237   :  { %v5893_v11 = vld [vmem:[#allocation7 + $0x1ec] sm:$0xf]  ;;  %v4971_v41 = vor.u32 %v5873_v59, %v4970_v31  ;;  %v5252_v59 = vld [vmem:[#allocation7 + $0x380] sm:$0xf0] }
 0x238   :  { %v2192_v34 = vmax.f32 %v2120_v45, %v2184_v33  ;;  %v5156_v45 = vld [vmem:[#allocation7 + $0x2c0] sm:$0xf0]  ;;  %v2134_v33 = vadd.f32 %v2133_v12, %v1309_v20  ;;  %v5562_v20 = vld [vmem:[#allocation7 + $0x5d8] sm:$0xf]  ;;  %v5941_v31 = vld [vmem:[#allocation7 + $0x36c] sm:$0xf] }
 0x239   :  { %3475 = vmatpush.bf16.msra.mxu0 %v4819_v46  ;;  %3485 = vmatpush.bf16.msra.mxu1 %v5107_v47  ;;  %v2146_v46 = vadd.f32 %v2145_v18, %v2132_v37  ;;  %v2147_v47 = vpop.f32.mrf.mxu1  ;;  %v5159_v51 = vor.u32 %v5917_v43, %v5156_v45  ;;  %v5932_v18 = vld [vmem:[#allocation7 + $0x31c] sm:$0xf0]  ;;  %v5375_v37 = vor.u32 %v5971_v27, %v5372_v28  ;;  %v5060_v12 = vld [vmem:[#allocation7 + $0x200] sm:$0xf0]  ;;  %v5442_v27 = vld [vmem:[#allocation7 + $0x4e8] sm:$0xf] }
 0x23a   :  { %v6342_v55 = vpack.c.bf16 %v2192_v34, %v2188_v58  ;;  %v5132_v58 = vld [vmem:[#allocation7 + $0x290] sm:$0xf0]  ;;  %v2148_v34 = vadd.f32 %v2147_v47, %v2134_v33  ;;  %v5348_v43 = vld [vmem:[#allocation7 + $0x440] sm:$0xf0]  ;;  %v4946_v45 = vld [vmem:[#allocation7 + $0x100] sm:$0xf] }
 0x23b   :  { %v5135_v63 = vor.u32 %v5911_v57, %v5132_v58  ;;  %v6010_v33 = vld [vmem:[#allocation7 + $0x58c] sm:$0xf0]  ;;  %v5861_v57 = vld [vmem:[#allocation7 + $0xe4] sm:$0xf0]  ;;  %v5992_v28 = vld [vmem:[#allocation7 + $0x4fc] sm:$0xf0] }
 0x23c   :  { %3392 = vmatmul.bf16.vlgmr.msra.gmra.mxu2 %v6342_v55  ;;  %3434 = vmatmul.bf16.vlgmr.msrb.gmra.mxu1 %v6338_v1  ;;  %v2162_v4 = vadd.f32 %v2161_v56, %v2148_v34  ;;  %v4922_v56 = vld [vmem:[#allocation7 + $0xd0] sm:$0xf]  ;;  %v5490_v34 = vld [vmem:[#allocation7 + $0x548] sm:$0xf] }
 0x23d   :  { %3524 = vmatpush.bf16.msrb.mxu0 %v4991_v50  ;;  %3486 = vmatpush.bf16.msra.mxu1 %v5083_v60  ;;  %v2160_v50 = vadd.f32 %v2159_v22, %v2146_v46  ;;  %v5867_v46 = vld [vmem:[#allocation7 + $0x114] sm:$0xf0] }
 0x23e   :  { %3476 = vmatmul.bf16.vlgmr.msra.gmra.mxu0 %v6334_v19  ;;  %3496 = vmatpush.bf16.msra.mxu2 %v5371_v16  ;;  %v5251_v16 = vor.u32 %v5944_v52, %v5250_v49  ;;  %v5514_v49 = vld [vmem:[#allocation7 + $0x578] sm:$0xf]  ;;  %v5036_v52 = vld [vmem:[#allocation7 + $0x1d0] sm:$0xf0] }
 0x23f   :  { %v5515_v58 = vor.u32 %v6010_v33, %v5514_v49  ;;  %v5876_v33 = vld [vmem:[#allocation7 + $0x164] sm:$0xf] }
 0x241   :  { %3525 = vmatpush.bf16.msrb.mxu0 %v4967_v61  ;;  %3487 = vmatpush.bf16.msra.mxu1 %v5059_v6  ;;  %v4847_v61 = vor.u32 %v5839_v53, %v4844_v54  ;;  %v5905_v6 = vld [vmem:[#allocation7 + $0x24c] sm:$0xf]  ;;  %v5959_v53 = vld [vmem:[#allocation7 + $0x3fc] sm:$0xf]  ;;  %v5324_v54 = vld [vmem:[#allocation7 + $0x410] sm:$0xf0] }
 0x242   :  { %3497 = vmatpush.bf16.msra.mxu2 %v5347_v2  ;;  %v5108_v2 = vld [vmem:[#allocation7 + $0x260] sm:$0xf0] }
 0x243   :  { %v5111_v22 = vor.u32 %v5905_v6, %v5108_v2  ;;  %v5855_v6 = vld [vmem:[#allocation7 + $0xb4] sm:$0xf0] }
 0x244   :  { %v5927_v2 = vld [vmem:[#allocation7 + $0x2f4] sm:$0xf0] }
 0x245   :  { %3526 = vmatpush.bf16.msrb.mxu0 %v4943_v42  ;;  %3488 = vmatpush.bf16.msra.mxu1 %v5035_v21  ;;  %v4994_v42 = vld [vmem:[#allocation7 + $0x160] sm:$0xf] }
 0x246   :  { %3498 = vmatpush.bf16.msra.mxu2 %v5323_v23  ;;  %v4995_v23 = vor.u32 %v5879_v8, %v4994_v42  ;;  %v5015_v8 = vor.u32 %v5881_v38, %v5012_v62  ;;  %v5903_v38 = vld [vmem:[#allocation7 + $0x234] sm:$0xf0]  ;;  %v5378_v62 = vld [vmem:[#allocation7 + $0x460] sm:$0xf] }
 0x249   :  { %3527 = vmatpush.bf16.msrb.mxu0 %v4919_v24  ;;  %3489 = vmatpush.bf16.msra.mxu1 %v5011_v32  ;;  %v6022_v24 = vld [vmem:[#allocation7 + $0x5ec] sm:$0xf0]  ;;  %v5203_v32 = vor.u32 %v5932_v18, %v5202_v17  ;;  %v5947_v18 = vld [vmem:[#allocation7 + $0x39c] sm:$0xf] }
 0x24a   :  { %3499 = vmatpush.bf16.msra.mxu2 %v5299_v7  ;;  %v5563_v7 = vor.u32 %v6022_v24, %v5562_v20  ;;  %v5276_v20 = vld [vmem:[#allocation7 + $0x3b0] sm:$0xf0]  ;;  %v5921_v24 = vld [vmem:[#allocation7 + $0x2c4] sm:$0xf0] }
 0x24b   :  { %v2173_v40 = vpop.f32.mrf.mxu3  ;;  %v5279_v26 = vor.u32 %v5947_v18, %v5276_v20  ;;  %v5969_v18 = vld [vmem:[#allocation7 + $0x444] sm:$0xf0]  ;;  %v5864_v20 = vld [vmem:[#allocation7 + $0x104] sm:$0xf] }
 0x24c   :  { %3448 = vmatmul.bf16.vlgmr.msrb.gmra.mxu2 %v6342_v55  ;;  %3490 = vmatmul.bf16.vlgmr.msra.gmra.mxu1 %v6338_v1  ;;  %v2174_v60 = vadd.f32 %v2173_v40, %v2160_v50  ;;  %v5965_v40 = vld [vmem:[#allocation7 + $0x42c] sm:$0xf]  ;;  %v5887_v50 = vld [vmem:[#allocation7 + $0x1bc] sm:$0xf] }
 0x24d   :  { %3528 = vmatpush.bf16.msrb.mxu0 %v4895_v3  ;;  %3538 = vmatpush.bf16.msrb.mxu1 %v5183_v10  ;;  %v5538_v10 = vld [vmem:[#allocation7 + $0x5a8] sm:$0xf] }
 0x24e   :  { %3500 = vmatpush.bf16.msra.mxu2 %v5275_v44  ;;  %v2181_v9 = vmul.f32 0.2, %v2174_v60  ;;  %v5539_v47 = vor.u32 %v6016_v39, %v5538_v10  ;;  %v5063_v44 = vor.u32 %v5893_v11, %v5060_v12  ;;  %v5443_v10 = vor.u32 %v5992_v28, %v5442_v27  ;;  %v5418_v11 = vld [vmem:[#allocation7 + $0x4b8] sm:$0xf]  ;;  %v5042_v28 = vld [vmem:[#allocation7 + $0x1c0] sm:$0xf] }
 0x24f   :  { %v5255_v39 = vor.u32 %v5941_v31, %v5252_v59  ;;  %v5963_v31 = vld [vmem:[#allocation7 + $0x414] sm:$0xf0]  ;;  %v5858_v59 = vld [vmem:[#allocation7 + $0xd4] sm:$0xf] }
 0x250   :  { %v2189_v29 = vmax.f32 %v2174_v60, %v2181_v9  ;;  %v5039_v60 = vor.u32 %v5887_v50, %v5036_v52  ;;  %v4996_v50 = vld [vmem:[#allocation7 + $0x178] sm:$0xf0]  ;;  %v5394_v52 = vld [vmem:[#allocation7 + $0x488] sm:$0xf] }
 0x251   :  { %3529 = vmatpush.bf16.msrb.mxu0 %v4871_v48  ;;  %3539 = vmatpush.bf16.msrb.mxu1 %v5159_v51  ;;  %v5351_v48 = vor.u32 %v5965_v40, %v5348_v43  ;;  %v4947_v51 = vor.u32 %v5867_v46, %v4946_v45  ;;  %v5935_v43 = vld [vmem:[#allocation7 + $0x33c] sm:$0xf]  ;;  %v5228_v45 = vld [vmem:[#allocation7 + $0x350] sm:$0xf0]  ;;  %v4826_v46 = vld [vmem:[#allocation7 + $0x10] sm:$0xf] }
 0x252   :  { %3501 = vmatpush.bf16.msra.mxu2 %v5251_v16  ;;  %v5327_v16 = vor.u32 %v5959_v53, %v5324_v54  ;;  %v5980_v53 = vld [vmem:[#allocation7 + $0x49c] sm:$0xf0]  ;;  %v5929_v54 = vld [vmem:[#allocation7 + $0x30c] sm:$0xf] }
 0x253   :  { %v2175_v35 = vpop.f32.mrf.mxu3 }
 0x254   :  { %v2176_v13 = vadd.f32 %v2175_v35, %v2162_v4  ;;  %v4923_v4 = vor.u32 %v5861_v57, %v4922_v56  ;;  %v5186_v35 = vld [vmem:[#allocation7 + $0x2e0] sm:$0xf] }
 0x255   :  { %3530 = vmatpush.bf16.msrb.mxu0 %v4847_v61  ;;  %3540 = vmatpush.bf16.msrb.mxu1 %v5135_v63  ;;  %v6004_v61 = vld [vmem:[#allocation7 + $0x55c] sm:$0xf0]  ;;  %v5953_v63 = vld [vmem:[#allocation7 + $0x3cc] sm:$0xf]  ;;  %v5187_v17 = vor.u32 %v5927_v2, %v5186_v35 }
 0x256   :  { %v2185_v21 = vmul.f32 0.2, %v2176_v13  ;;  %3502 = vmatpush.bf16.msra.mxu2 %v5227_v14  ;;  %v5491_v42 = vor.u32 %v6004_v61, %v5490_v34  ;;  %v5303_v9 = vor.u32 %v5953_v63, %v5300_v0  ;;  %v5998_v14 = vld [vmem:[#allocation7 + $0x52c] sm:$0xf0]  ;;  %v6019_v34 = vld [vmem:[#allocation7 + $0x5dc] sm:$0xf] }
 0x257   :  { %v5090_v61 = vld [vmem:[#allocation7 + $0x220] sm:$0xf]  ;;  %v5975_v63 = vld [vmem:[#allocation7 + $0x474] sm:$0xf0]  ;;  %v5870_v0 = vld [vmem:[#allocation7 + $0x134] sm:$0xf] }
 0x258   :  { %v2193_v30 = vmax.f32 %v2176_v13, %v2185_v21  ;;  %v5466_v13 = vld [vmem:[#allocation7 + $0x518] sm:$0xf]  ;;  %v4874_v21 = vld [vmem:[#allocation7 + $0x70] sm:$0xf]  ;;  %v5091_v2 = vor.u32 %v5903_v38, %v5090_v61  ;;  %v5989_v61 = vld [vmem:[#allocation7 + $0x4ec] sm:$0xf] }
 0x259   :  { %3531 = vmatpush.bf16.msrb.mxu0 %v4823_v15  ;;  %3541 = vmatpush.bf16.msrb.mxu1 %v5111_v22  ;;  %v4899_v15 = vor.u32 %v5855_v6, %v4898_v5  ;;  %v5849_v22 = vld [vmem:[#allocation7 + $0x84] sm:$0xf0]  ;;  %v5467_v25 = vor.u32 %v5998_v14, %v5466_v13  ;;  %v4972_v5 = vld [vmem:[#allocation7 + $0x148] sm:$0xf0]  ;;  %v5066_v14 = vld [vmem:[#allocation7 + $0x1f0] sm:$0xf] }
 0x25a   :  { %v6350_v3 = vpack.c.bf16 %v2193_v30, %v2189_v29  ;;  %3503 = vmatpush.bf16.msra.mxu2 %v5203_v32  ;;  %v4875_v29 = vor.u32 %v5849_v22, %v4874_v21  ;;  %v4850_v32 = vld [vmem:[#allocation7 + $0x40] sm:$0xf]  ;;  %v4975_v13 = vor.u32 %v5870_v0, %v4972_v5  ;;  %v4948_v21 = vld [vmem:[#allocation7 + $0x118] sm:$0xf0]  ;;  %v5444_v38 = vld [vmem:[#allocation7 + $0x500] sm:$0xf0] }
 0x25b   :  { %v4951_v27 = vor.u32 %v5864_v20, %v4948_v21  ;;  %v5945_v5 = vld [vmem:[#allocation7 + $0x384] sm:$0xf0]  ;;  %v5939_v20 = vld [vmem:[#allocation7 + $0x354] sm:$0xf0]  ;;  %v5834_v21 = vld [vmem:[#allocation7 + $0x14] sm:$0xf] }
 0x25c   :  { %3406 = vmatmul.bf16.vlgmr.msra.gmra.mxu3 %v6350_v3  ;;  %3532 = vmatmul.bf16.vlgmr.msrb.gmra.mxu0 %v6334_v19 }
 0x25d   :  { %3580 = vmatpush.bf16.msra.mxu0 %v4995_v23  ;;  %3510 = vmatpush.bf16.msra.mxu3 %v5563_v7  ;;  %v5162_v23 = vld [vmem:[#allocation7 + $0x2b0] sm:$0xf]  ;;  %v5843_v7 = vld [vmem:[#allocation7 + $0x54] sm:$0xf0] }
 0x25e   :  { %3542 = vmatpush.bf16.msrb.mxu1 %v5087_v36  ;;  %3552 = vmatpush.bf16.msrb.mxu2 %v5375_v37  ;;  %v5163_v30 = vor.u32 %v5921_v24, %v5162_v23  ;;  %v5138_v36 = vld [vmem:[#allocation7 + $0x280] sm:$0xf]  ;;  %v5915_v37 = vld [vmem:[#allocation7 + $0x294] sm:$0xf0]  ;;  %v4851_v12 = vor.u32 %v5843_v7, %v4850_v32  ;;  %v6007_v24 = vld [vmem:[#allocation7 + $0x57c] sm:$0xf] }
 0x25f   :  { %3504 = vmatmul.bf16.vlgmr.msra.gmra.mxu2 %v6342_v55  ;;  %v5139_v40 = vor.u32 %v5915_v37, %v5138_v36  ;;  %v4924_v32 = vld [vmem:[#allocation7 + $0xe8] sm:$0xf0] }
 0x260   :  { %v6001_v37 = vld [vmem:[#allocation7 + $0x54c] sm:$0xf] }
 0x261   :  { %3581 = vmatpush.bf16.msra.mxu0 %v4971_v41  ;;  %3511 = vmatpush.bf16.msra.mxu3 %v5539_v47  ;;  %v5986_v41 = vld [vmem:[#allocation7 + $0x4cc] sm:$0xf0]  ;;  %v5837_v47 = vld [vmem:[#allocation7 + $0x24] sm:$0xf0] }
 0x262   :  { %3543 = vmatpush.bf16.msrb.mxu1 %v5063_v44  ;;  %3553 = vmatpush.bf16.msrb.mxu2 %v5351_v48  ;;  %v5114_v44 = vld [vmem:[#allocation7 + $0x250] sm:$0xf]  ;;  %v5909_v48 = vld [vmem:[#allocation7 + $0x264] sm:$0xf0]  ;;  %v5419_v49 = vor.u32 %v5986_v41, %v5418_v11  ;;  %v4827_v56 = vor.u32 %v5837_v47, %v4826_v46  ;;  %v4927_v11 = vor.u32 %v5858_v59, %v4924_v32  ;;  %v4900_v46 = vld [vmem:[#allocation7 + $0xb8] sm:$0xf0] }
 0x263   :  { %v5115_v57 = vor.u32 %v5909_v48, %v5114_v44  ;;  %v5018_v41 = vld [vmem:[#allocation7 + $0x190] sm:$0xf]  ;;  %v5924_v44 = vld [vmem:[#allocation7 + $0x2e4] sm:$0xf]  ;;  %v5188_v48 = vld [vmem:[#allocation7 + $0x2f8] sm:$0xf0] }
 0x264   :  { %v5210_v32 = vld [vmem:[#allocation7 + $0x310] sm:$0xf] }
 0x265   :  { %3582 = vmatpush.bf16.msra.mxu0 %v4947_v51  ;;  %3512 = vmatpush.bf16.msra.mxu3 %v5515_v58  ;;  %v5231_v51 = vor.u32 %v5935_v43, %v5228_v45  ;;  %v5204_v58 = vld [vmem:[#allocation7 + $0x320] sm:$0xf0]  ;;  %v5957_v43 = vld [vmem:[#allocation7 + $0x3e4] sm:$0xf0] }
 0x266   :  { %3544 = vmatpush.bf16.msrb.mxu1 %v5039_v60  ;;  %3554 = vmatpush.bf16.msrb.mxu2 %v5327_v16  ;;  %v5564_v60 = vld [vmem:[#allocation7 + $0x5f0] sm:$0xf0]  ;;  %v4999_v16 = vor.u32 %v5876_v33, %v4996_v50  ;;  %v5207_v6 = vor.u32 %v5929_v54, %v5204_v58  ;;  %v5852_v45 = vld [vmem:[#allocation7 + $0xa4] sm:$0xf]  ;;  %v5995_v33 = vld [vmem:[#allocation7 + $0x51c] sm:$0xf]  ;;  %v5191_v54 = vor.u32 %v5924_v44, %v5188_v48 }
 0x267   :  { %v5567_v35 = vor.u32 %v6019_v34, %v5564_v60  ;;  %v5468_v50 = vld [vmem:[#allocation7 + $0x530] sm:$0xf0]  ;;  %v4876_v58 = vld [vmem:[#allocation7 + $0x88] sm:$0xf0] }
 0x268   :  { %v5471_v34 = vor.u32 %v5995_v33, %v5468_v50  ;;  %v5918_v60 = vld [vmem:[#allocation7 + $0x2b4] sm:$0xf]  ;;  %v5068_v44 = vld [vmem:[#allocation7 + $0x208] sm:$0xf0]  ;;  %v5522_v50 = vld [vmem:[#allocation7 + $0x580] sm:$0xf] }
 0x269   :  { %3583 = vmatpush.bf16.msra.mxu0 %v4923_v4  ;;  %3513 = vmatpush.bf16.msra.mxu3 %v5491_v42  ;;  %v5395_v4 = vor.u32 %v5980_v53, %v5394_v52  ;;  %v6013_v42 = vld [vmem:[#allocation7 + $0x5ac] sm:$0xf]  ;;  %v4903_v52 = vor.u32 %v5852_v45, %v4900_v46  ;;  %v5282_v53 = vld [vmem:[#allocation7 + $0x3a0] sm:$0xf]  ;;  %v5966_v48 = vld [vmem:[#allocation7 + $0x434] sm:$0xf] }
 0x26a   :  { %3545 = vmatpush.bf16.msrb.mxu1 %v5015_v8  ;;  %3555 = vmatpush.bf16.msrb.mxu2 %v5303_v9  ;;  %v5540_v8 = vld [vmem:[#allocation7 + $0x5c0] sm:$0xf0]  ;;  %v5379_v9 = vor.u32 %v5975_v63, %v5378_v62  ;;  %v5258_v63 = vld [vmem:[#allocation7 + $0x370] sm:$0xf] }
 0x26b   :  { %v5543_v22 = vor.u32 %v6013_v42, %v5540_v8  ;;  %v5912_v42 = vld [vmem:[#allocation7 + $0x284] sm:$0xf]  ;;  %v5140_v8 = vld [vmem:[#allocation7 + $0x298] sm:$0xf0] }
 0x26c   :  { %3462 = vmatmul.bf16.vlgmr.msrb.gmra.mxu3 %v6350_v3 }
 0x26d   :  { %3584 = vmatpush.bf16.msra.mxu0 %v4899_v15  ;;  %3514 = vmatpush.bf16.msra.mxu3 %v5467_v25  ;;  %v5897_v15 = vld [vmem:[#allocation7 + $0x204] sm:$0xf0]  ;;  %v5516_v25 = vld [vmem:[#allocation7 + $0x590] sm:$0xf0] }
 0x26e   :  { %3594 = vmatpush.bf16.msra.mxu1 %v5187_v17  ;;  %3556 = vmatpush.bf16.msrb.mxu2 %v5279_v26  ;;  %v5354_v17 = vld [vmem:[#allocation7 + $0x430] sm:$0xf]  ;;  %v5067_v23 = vor.u32 %v5897_v15, %v5066_v14  ;;  %v5519_v7 = vor.u32 %v6007_v24, %v5516_v25  ;;  %v5259_v14 = vor.u32 %v5945_v5, %v5258_v63  ;;  %v5906_v24 = vld [vmem:[#allocation7 + $0x254] sm:$0xf]  ;;  %v5116_v25 = vld [vmem:[#allocation7 + $0x268] sm:$0xf0] }
 0x26f   :  { %3546 = vmatmul.bf16.vlgmr.msrb.gmra.mxu1 %v6338_v1  ;;  %v5355_v26 = vor.u32 %v5969_v18, %v5354_v17  ;;  %v5234_v17 = vld [vmem:[#allocation7 + $0x340] sm:$0xf]  ;;  %v5143_v18 = vor.u32 %v5912_v42, %v5140_v8  ;;  %v5119_v59 = vor.u32 %v5906_v24, %v5116_v25  ;;  %v5308_v63 = vld [vmem:[#allocation7 + $0x3e8] sm:$0xf0]  ;;  %v5948_v42 = vld [vmem:[#allocation7 + $0x3a4] sm:$0xf] }
 0x270   :  { %v5474_v5 = vld [vmem:[#allocation7 + $0x520] sm:$0xf]  ;;  %v5284_v8 = vld [vmem:[#allocation7 + $0x3b8] sm:$0xf0]  ;;  %v5936_v24 = vld [vmem:[#allocation7 + $0x344] sm:$0xf] }
 0x271   :  { %3585 = vmatpush.bf16.msra.mxu0 %v4875_v29  ;;  %3515 = vmatpush.bf16.msra.mxu3 %v5443_v10  ;;  %v5891_v29 = vld [vmem:[#allocation7 + $0x1d4] sm:$0xf0]  ;;  %v5492_v10 = vld [vmem:[#allocation7 + $0x560] sm:$0xf0]  ;;  %v5236_v25 = vld [vmem:[#allocation7 + $0x358] sm:$0xf0] }
 0x272   :  { %3595 = vmatpush.bf16.msra.mxu1 %v5163_v30  ;;  %3557 = vmatpush.bf16.msrb.mxu2 %v5255_v39  ;;  %v5330_v30 = vld [vmem:[#allocation7 + $0x400] sm:$0xf]  ;;  %v5043_v36 = vor.u32 %v5891_v29, %v5042_v28  ;;  %v5495_v47 = vor.u32 %v6001_v37, %v5492_v10  ;;  %v5235_v28 = vor.u32 %v5939_v20, %v5234_v17  ;;  %v5092_v10 = vld [vmem:[#allocation7 + $0x238] sm:$0xf0]  ;;  %v5942_v17 = vld [vmem:[#allocation7 + $0x374] sm:$0xf] }
 0x273   :  { %v5331_v39 = vor.u32 %v5963_v31, %v5330_v30  ;;  %v5570_v30 = vld [vmem:[#allocation7 + $0x5e0] sm:$0xf]  ;;  %v6023_v31 = vld [vmem:[#allocation7 + $0x5f4] sm:$0xf0] }
 0x275   :  { %3586 = vmatpush.bf16.msra.mxu0 %v4851_v12  ;;  %3516 = vmatpush.bf16.msra.mxu3 %v5419_v49  ;;  %v5885_v12 = vld [vmem:[#allocation7 + $0x1a4] sm:$0xf0] }
 0x276   :  { %3596 = vmatpush.bf16.msra.mxu1 %v5139_v40  ;;  %3558 = vmatpush.bf16.msrb.mxu2 %v5231_v51  ;;  %v5306_v40 = vld [vmem:[#allocation7 + $0x3d0] sm:$0xf]  ;;  %v5019_v49 = vor.u32 %v5885_v12, %v5018_v41  ;;  %v5571_v41 = vor.u32 %v6023_v31, %v5570_v30  ;;  %v6020_v30 = vld [vmem:[#allocation7 + $0x5e4] sm:$0xf]  ;;  %v5572_v31 = vld [vmem:[#allocation7 + $0x5f8] sm:$0xf0] }
 0x277   :  { %v5307_v51 = vor.u32 %v5957_v43, %v5306_v40  ;;  %v5546_v40 = vld [vmem:[#allocation7 + $0x5b0] sm:$0xf]  ;;  %v6017_v43 = vld [vmem:[#allocation7 + $0x5c4] sm:$0xf0] }
 0x278   :  { %v5547_v33 = vor.u32 %v6017_v43, %v5546_v40  ;;  %v6002_v40 = vld [vmem:[#allocation7 + $0x554] sm:$0xf]  ;;  %v5500_v43 = vld [vmem:[#allocation7 + $0x568] sm:$0xf0] }
 0x279   :  { %3587 = vmatpush.bf16.msra.mxu0 %v4827_v56  ;;  %3517 = vmatpush.bf16.msra.mxu3 %v5395_v4  ;;  %v5951_v56 = vld [vmem:[#allocation7 + $0x3b4] sm:$0xf0] }
 0x27a   :  { %3597 = vmatpush.bf16.msra.mxu1 %v5115_v57  ;;  %3559 = vmatpush.bf16.msrb.mxu2 %v5207_v6  ;;  %v5846_v57 = vld [vmem:[#allocation7 + $0x74] sm:$0xf]  ;;  %v5283_v62 = vor.u32 %v5951_v56, %v5282_v53  ;;  %v5840_v6 = vld [vmem:[#allocation7 + $0x44] sm:$0xf]  ;;  %v5044_v56 = vld [vmem:[#allocation7 + $0x1d8] sm:$0xf0] }
 0x27b   :  { %v4879_v4 = vor.u32 %v5846_v57, %v4876_v58  ;;  %v5960_v57 = vld [vmem:[#allocation7 + $0x404] sm:$0xf]  ;;  %v5332_v58 = vld [vmem:[#allocation7 + $0x418] sm:$0xf0] }
 0x27c   :  { %3588 = vmatmul.bf16.vlgmr.msra.gmra.mxu0 %v6334_v19  ;;  %3518 = vmatmul.bf16.vlgmr.msra.gmra.mxu3 %v6350_v3 }
 0x27d   :  { %3636 = vmatpush.bf16.msrb.mxu0 %v4999_v16  ;;  %3566 = vmatpush.bf16.msrb.mxu3 %v5567_v35  ;;  %v5164_v16 = vld [vmem:[#allocation7 + $0x2c8] sm:$0xf0]  ;;  %v4852_v35 = vld [vmem:[#allocation7 + $0x58] sm:$0xf0] }
 0x27e   :  { %3598 = vmatpush.bf16.msra.mxu1 %v5091_v2  ;;  %3608 = vmatpush.bf16.msra.mxu2 %v5379_v9  ;;  %v5167_v0 = vor.u32 %v5918_v60, %v5164_v16  ;;  %v5447_v2 = vor.u32 %v5989_v61, %v5444_v38  ;;  %v5983_v9 = vld [vmem:[#allocation7 + $0x4bc] sm:$0xf]  ;;  %v4855_v15 = vor.u32 %v5840_v6, %v4852_v35  ;;  %v5498_v60 = vld [vmem:[#allocation7 + $0x550] sm:$0xf]  ;;  %v5882_v38 = vld [vmem:[#allocation7 + $0x194] sm:$0xf] }
 0x27f   :  { %3560 = vmatmul.bf16.vlgmr.msrb.gmra.mxu2 %v6342_v55  ;;  %v5335_v61 = vor.u32 %v5960_v57, %v5332_v58  ;;  %v5999_v6 = vld [vmem:[#allocation7 + $0x534] sm:$0xf0] }
 0x281   :  { %3637 = vmatpush.bf16.msrb.mxu0 %v4975_v13  ;;  %3567 = vmatpush.bf16.msrb.mxu3 %v5543_v22  ;;  %v5420_v13 = vld [vmem:[#allocation7 + $0x4d0] sm:$0xf0]  ;;  %v4828_v22 = vld [vmem:[#allocation7 + $0x28] sm:$0xf0] }
 0x282   :  { %3599 = vmatpush.bf16.msra.mxu1 %v5067_v23  ;;  %3609 = vmatpush.bf16.msra.mxu2 %v5355_v26  ;;  %v5423_v23 = vor.u32 %v5983_v9, %v5420_v13  ;;  %v5977_v26 = vld [vmem:[#allocation7 + $0x48c] sm:$0xf]  ;;  %v4831_v29 = vor.u32 %v5834_v21, %v4828_v22  ;;  %v5475_v9 = vor.u32 %v5999_v6, %v5474_v5  ;;  %v5450_v13 = vld [vmem:[#allocation7 + $0x4f0] sm:$0xf]  ;;  %v5426_v21 = vld [vmem:[#allocation7 + $0x4c0] sm:$0xf] }
 0x283   :  { %v5987_v22 = vld [vmem:[#allocation7 + $0x4d4] sm:$0xf0] }
 0x285   :  { %3638 = vmatpush.bf16.msrb.mxu0 %v4951_v27  ;;  %3568 = vmatpush.bf16.msrb.mxu3 %v5519_v7  ;;  %v5396_v27 = vld [vmem:[#allocation7 + $0x4a0] sm:$0xf0]  ;;  %v5933_v7 = vld [vmem:[#allocation7 + $0x324] sm:$0xf0] }
 0x286   :  { %3600 = vmatpush.bf16.msra.mxu1 %v5043_v36  ;;  %3610 = vmatpush.bf16.msra.mxu2 %v5331_v39  ;;  %v5900_v36 = vld [vmem:[#allocation7 + $0x224] sm:$0xf]  ;;  %v5399_v37 = vor.u32 %v5977_v26, %v5396_v27  ;;  %v5211_v12 = vor.u32 %v5933_v7, %v5210_v32  ;;  %v5427_v26 = vor.u32 %v5987_v22, %v5426_v21  ;;  %v5402_v27 = vld [vmem:[#allocation7 + $0x490] sm:$0xf]  ;;  %v5212_v32 = vld [vmem:[#allocation7 + $0x328] sm:$0xf0] }
 0x287   :  { %v5972_v39 = vld [vmem:[#allocation7 + $0x464] sm:$0xf]  ;;  %v5095_v45 = vor.u32 %v5900_v36, %v5092_v10  ;;  %v5575_v36 = vor.u32 %v6020_v30, %v5572_v31  ;;  %v5548_v10 = vld [vmem:[#allocation7 + $0x5c8] sm:$0xf0] }
 0x289   :  { %3639 = vmatpush.bf16.msrb.mxu0 %v4927_v11  ;;  %3569 = vmatpush.bf16.msrb.mxu3 %v5495_v47  ;;  %v5380_v11 = vld [vmem:[#allocation7 + $0x478] sm:$0xf0]  ;;  %v5894_v47 = vld [vmem:[#allocation7 + $0x1f4] sm:$0xf] }
 0x28a   :  { %3601 = vmatpush.bf16.msra.mxu1 %v5019_v49  ;;  %3611 = vmatpush.bf16.msra.mxu2 %v5307_v51  ;;  %v5383_v46 = vor.u32 %v5972_v39, %v5380_v11  ;;  %v5356_v49 = vld [vmem:[#allocation7 + $0x448] sm:$0xf0]  ;;  %v6011_v51 = vld [vmem:[#allocation7 + $0x594] sm:$0xf0]  ;;  %v6008_v11 = vld [vmem:[#allocation7 + $0x584] sm:$0xf] }
 0x28b   :  { %v5359_v53 = vor.u32 %v5966_v48, %v5356_v49  ;;  %v5990_v48 = vld [vmem:[#allocation7 + $0x4f4] sm:$0xf]  ;;  %v5452_v49 = vld [vmem:[#allocation7 + $0x508] sm:$0xf0] }
 0x28d   :  { %3640 = vmatpush.bf16.msrb.mxu0 %v4903_v52  ;;  %3570 = vmatpush.bf16.msrb.mxu3 %v5471_v34  ;;  %v5071_v52 = vor.u32 %v5894_v47, %v5068_v44  ;;  %v5523_v34 = vor.u32 %v6011_v51, %v5522_v50  ;;  %v5476_v47 = vld [vmem:[#allocation7 + $0x538] sm:$0xf0]  ;;  %v5984_v50 = vld [vmem:[#allocation7 + $0x4c4] sm:$0xf] }
 0x28e   :  { %3650 = vmatpush.bf16.msrb.mxu1 %v5191_v54  ;;  %3612 = vmatpush.bf16.msra.mxu2 %v5283_v62  ;;  %v5888_v54 = vld [vmem:[#allocation7 + $0x1c4] sm:$0xf]  ;;  %v5020_v62 = vld [vmem:[#allocation7 + $0x1a8] sm:$0xf0]  ;;  %v5428_v51 = vld [vmem:[#allocation7 + $0x4d8] sm:$0xf0] }
 0x28f   :  { %3602 = vmatmul.bf16.vlgmr.msra.gmra.mxu1 %v6338_v1  ;;  %v5047_v16 = vor.u32 %v5888_v54, %v5044_v56  ;;  %v5023_v35 = vor.u32 %v5882_v38, %v5020_v62 }
 0x291   :  { %3641 = vmatpush.bf16.msrb.mxu0 %v4879_v4  ;;  %3571 = vmatpush.bf16.msrb.mxu3 %v5447_v2  ;;  %v5954_v4 = vld [vmem:[#allocation7 + $0x3d4] sm:$0xf] }
 0x292   :  { %3651 = vmatpush.bf16.msrb.mxu1 %v5167_v0  ;;  %3613 = vmatpush.bf16.msra.mxu2 %v5259_v14  ;;  %v5311_v2 = vor.u32 %v5954_v4, %v5308_v63  ;;  %v5993_v14 = vld [vmem:[#allocation7 + $0x504] sm:$0xf0] }
 0x293   :  { %v5451_v20 = vor.u32 %v5993_v14, %v5450_v13 }
 0x295   :  { %3642 = vmatpush.bf16.msrb.mxu0 %v4855_v15  ;;  %3572 = vmatpush.bf16.msrb.mxu3 %v5423_v23  ;;  %v5287_v15 = vor.u32 %v5948_v42, %v5284_v8 }
 0x296   :  { %3652 = vmatpush.bf16.msrb.mxu1 %v5143_v18  ;;  %3614 = vmatpush.bf16.msra.mxu2 %v5235_v28  ;;  %v5260_v18 = vld [vmem:[#allocation7 + $0x388] sm:$0xf0]  ;;  %v5981_v28 = vld [vmem:[#allocation7 + $0x4a4] sm:$0xf0] }
 0x297   :  { %v5263_v23 = vor.u32 %v5942_v17, %v5260_v18  ;;  %v5403_v7 = vor.u32 %v5981_v28, %v5402_v27 }
 0x299   :  { %3643 = vmatpush.bf16.msrb.mxu0 %v4831_v29  ;;  %3573 = vmatpush.bf16.msrb.mxu3 %v5399_v37  ;;  %v5239_v29 = vor.u32 %v5936_v24, %v5236_v25  ;;  %v6014_v37 = vld [vmem:[#allocation7 + $0x5b4] sm:$0xf]  ;;  %v3365_v57 = vpop.f32.mrf.mxu0 }
 0x29a   :  { %3653 = vmatpush.bf16.msrb.mxu1 %v5119_v59  ;;  %3615 = vmatpush.bf16.msra.mxu2 %v5211_v12  ;;  %v5930_v59 = vld [vmem:[#allocation7 + $0x314] sm:$0xf]  ;;  %v5551_v39 = vor.u32 %v6014_v37, %v5548_v10 }
 0x29c   :  { %3644 = vmatmul.bf16.vlgmr.msrb.gmra.mxu0 %v6334_v19  ;;  %3574 = vmatmul.bf16.vlgmr.msrb.gmra.mxu3 %v6350_v3  ;;  %v6005_v19 = vld [vmem:[#allocation7 + $0x564] sm:$0xf0] }
 0x29d   :  { %3622 = vmatpush.bf16.msra.mxu3 %v5571_v41  ;;  %3616 = vmatmul.bf16.vlgmr.msra.gmra.mxu2 %v6342_v55  ;;  %v5499_v0 = vor.u32 %v6005_v19, %v5498_v60  ;;  %v5524_v41 = vld [vmem:[#allocation7 + $0x598] sm:$0xf0] }
 0x29e   :  { %3654 = vmatpush.bf16.msrb.mxu1 %v5095_v45  ;;  %3664 = vmatpush.bf16.msrb.mxu2 %v5383_v46  ;;  %v5527_v12 = vor.u32 %v6008_v11, %v5524_v41  ;;  %v5503_v45 = vor.u32 %v6002_v40, %v5500_v43  ;;  %v5996_v46 = vld [vmem:[#allocation7 + $0x524] sm:$0xf] }
 0x29f   :  { %v5479_v44 = vor.u32 %v5996_v46, %v5476_v47 }
 0x2a1   :  { %3623 = vmatpush.bf16.msra.mxu3 %v5547_v33  ;;  %v5455_v33 = vor.u32 %v5990_v48, %v5452_v49  ;;  %v3367_v60 = vpop.f32.mrf.mxu0 }
 0x2a2   :  { %3655 = vmatpush.bf16.msrb.mxu1 %v5071_v52  ;;  %3665 = vmatpush.bf16.msrb.mxu2 %v5359_v53  ;;  %v5431_v52 = vor.u32 %v5984_v50, %v5428_v51  ;;  %v5978_v53 = vld [vmem:[#allocation7 + $0x494] sm:$0xf] }
 0x2a5   :  { %3624 = vmatpush.bf16.msra.mxu3 %v5523_v34 }
 0x2a6   :  { %3656 = vmatpush.bf16.msrb.mxu1 %v5047_v16  ;;  %3666 = vmatpush.bf16.msrb.mxu2 %v5335_v61  ;;  %v2195_v16 = vld [vmem:[%s6427_s7] sm:$0x3f]  ;;  %v2196_v61 = vstv %s2194_s15 }
 0x2a7   :  { %v2197_v4 = vmul.f32 %v2196_v61, %v2195_v16 }
 0x2a9   :  { %3625 = vmatpush.bf16.msra.mxu3 %v5499_v0  ;;  %v3379_v56 = vpop.f32.mrf.mxu1  ;;  %v3421_v42 = vpop.f32.mrf.mxu0 }
 0x2aa   :  { %3657 = vmatpush.bf16.msrb.mxu1 %v5023_v35  ;;  %3667 = vmatpush.bf16.msrb.mxu2 %v5311_v2  ;;  %v3380_v62 = vadd.f32 %v3379_v56, %v3365_v57  ;;  %v6382_v35 = vstv %s6420_s0 }
 0x2ad   :  { %3626 = vmatpush.bf16.msra.mxu3 %v5475_v9  ;;  %3658 = vmatmul.bf16.vlgmr.msrb.gmra.mxu1 %v6338_v1  ;;  %v5215_v1 = vor.u32 %v5930_v59, %v5212_v32 }
 0x2ae   :  { %3668 = vmatpush.bf16.msrb.mxu2 %v5287_v15 }
 0x2b1   :  { %3627 = vmatpush.bf16.msra.mxu3 %v5451_v20  ;;  %v3381_v34 = vpop.f32.mrf.mxu1  ;;  %v3423_v28 = vpop.f32.mrf.mxu0 }
 0x2b2   :  { %3669 = vmatpush.bf16.msrb.mxu2 %v5263_v23  ;;  %v3382_v9 = vadd.f32 %v3381_v34, %v3367_v60 }
 0x2b5   :  { %3628 = vmatpush.bf16.msra.mxu3 %v5427_v26 }
 0x2b6   :  { %3670 = vmatpush.bf16.msrb.mxu2 %v5239_v29 }
 0x2b9   :  { %3629 = vmatpush.bf16.msra.mxu3 %v5403_v7  ;;  %v3435_v6 = vpop.f32.mrf.mxu1 }
 0x2ba   :  { %3671 = vmatpush.bf16.msrb.mxu2 %v5215_v1  ;;  %v3436_v15 = vadd.f32 %v3435_v6, %v3421_v42 }
 0x2bb   :  { %v3477_v48 = vpop.f32.mrf.mxu0 }
 0x2bc   :  { %3630 = vmatmul.bf16.vlgmr.msra.gmra.mxu3 %v6350_v3 }
 0x2bd   :  { %3678 = vmatpush.bf16.msrb.mxu3 %v5575_v36  ;;  %3672 = vmatmul.bf16.vlgmr.msrb.gmra.mxu2 %v6342_v55  ;;  %v5404_v55 = vld [vmem:[#allocation7 + $0x4a8] sm:$0xf0] }
 0x2be   :  { %v5407_v54 = vor.u32 %v5978_v53, %v5404_v55 }
 0x2bf   :  { %v3393_v58 = vpop.f32.mrf.mxu2 }
 0x2c0   :  { %v3394_v63 = vadd.f32 %v3393_v58, %v3380_v62 }
 0x2c1   :  { %3679 = vmatpush.bf16.msrb.mxu3 %v5551_v39  ;;  %v3437_v25 = vpop.f32.mrf.mxu1 }
 0x2c2   :  { %v3438_v30 = vadd.f32 %v3437_v25, %v3423_v28 }
 0x2c5   :  { %3680 = vmatpush.bf16.msrb.mxu3 %v5527_v12 }
 0x2c7   :  { %v3395_v19 = vpop.f32.mrf.mxu2 }
 0x2c8   :  { %v3396_v17 = vadd.f32 %v3395_v19, %v3382_v9 }
 0x2c9   :  { %3681 = vmatpush.bf16.msrb.mxu3 %v5503_v45  ;;  %v3491_v46 = vpop.f32.mrf.mxu1 }
 0x2ca   :  { %v3492_v57 = vadd.f32 %v3491_v46, %v3477_v48 }
 0x2cd   :  { %3682 = vmatpush.bf16.msrb.mxu3 %v5479_v44 }
 0x2cf   :  { %v3449_v8 = vpop.f32.mrf.mxu2 }
 0x2d0   :  { %v3450_v18 = vadd.f32 %v3449_v8, %v3436_v15 }
 0x2d1   :  { %3683 = vmatpush.bf16.msrb.mxu3 %v5455_v33  ;;  %v3493_v55 = vpop.f32.mrf.mxu1 }
 0x2d5   :  { %3684 = vmatpush.bf16.msrb.mxu3 %v5431_v52 }
 0x2d7   :  { %v3451_v29 = vpop.f32.mrf.mxu2 }
 0x2d8   :  { %v3452_v59 = vadd.f32 %v3451_v29, %v3438_v30 }
 0x2d9   :  { %3685 = vmatpush.bf16.msrb.mxu3 %v5407_v54  ;;  %v3479_v54 = vpop.f32.mrf.mxu0 }
 0x2dc   :  { %3686 = vmatmul.bf16.vlgmr.msrb.gmra.mxu3 %v6350_v3  ;;  %v2198_v3 = vld [vmem:[%s6428_s8] sm:$0x3f] }
 0x2dd   :  { %v6377_v0 = vadd.f32 %v2198_v3, %v2197_v4 }
 0x2df   :  { %v3407_v38 = vpop.f32.mrf.mxu3  ;;  %v3706_v14 = vperm.slane %v6377_v0, 0  ;;  %v3707_v24 = vperm.slane %v6377_v0, 1  ;;  %v3708_v4 = vperm.slane %v6377_v0, 2  ;;  %v3709_v9 = vperm.slane %v6377_v0, 3 }
 0x2e0   :  { %v3408_v5 = vadd.f32 %v3407_v38, %v3394_v63  ;;  %v3494_v38 = vadd.f32 %v3493_v55, %v3479_v54 }
 0x2e1   :  { %v3533_v16 = vpop.f32.mrf.mxu0 }
 0x2e2   :  { %v3693_v13 = vmul.f32 %v6382_v35, %v3408_v5  ;;  %v3505_v49 = vpop.f32.mrf.mxu2 }
 0x2e3   :  { %v3506_v58 = vadd.f32 %v3505_v49, %v3492_v57 }
 0x2e4   :  { %v3718_v20 = vadd.f32 %v3706_v14, %v3693_v13 }
 0x2e6   :  { %6038 = vtanh.f32 %v3718_v20 }
 0x2e7   :  { %v3409_v2 = vpop.f32.mrf.mxu3 }
 0x2e8   :  { %v3410_v21 = vadd.f32 %v3409_v2, %v3396_v17 }
 0x2e9   :  { %v3535_v17 = vpop.f32.mrf.mxu0 }
 0x2ea   :  { %v3699_v26 = vmul.f32 %v6382_v35, %v3410_v21  ;;  %v3507_v56 = vpop.f32.mrf.mxu2 }
 0x2eb   :  { %v3508_v63 = vadd.f32 %v3507_v56, %v3494_v38  ;;  %v3710_v56 = vperm.slane %v6377_v0, 4  ;;  %v3711_v38 = vperm.slane %v6377_v0, 5 }
 0x2ec   :  { %v3724_v32 = vadd.f32 %v3706_v14, %v3699_v26  ;;  %v6039_v36 = vpop.eup %6038  ;;  %v3547_v60 = vpop.f32.mrf.mxu1 }
 0x2ed   :  { %v3742_v10 = vadd.f32 1.0, %v6039_v36  ;;  %v3548_v3 = vadd.f32 %v3547_v60, %v3533_v16 }
 0x2ef   :  { %v3463_v22 = vpop.f32.mrf.mxu3  ;;  %v3754_v12 = vmul.f32 0.5, %v3742_v10 }
 0x2f0   :  { %v3464_v23 = vadd.f32 %v3463_v22, %v3450_v18 }
 0x2f2   :  { %v3694_v27 = vmul.f32 %v6382_v35, %v3464_v23 }
 0x2f4   :  { %v3719_v31 = vadd.f32 %v3707_v24, %v3694_v27  ;;  %v3549_v13 = vpop.f32.mrf.mxu1 }
 0x2f5   :  { %v3550_v20 = vadd.f32 %v3549_v13, %v3535_v17 }
 0x2f6   :  { %6040 = vtanh.f32 %v3719_v31 }
 0x2f7   :  { %v3465_v7 = vpop.f32.mrf.mxu3  ;;  %6042 = vtanh.f32 %v3724_v32 }
 0x2f8   :  { %v3466_v1 = vadd.f32 %v3465_v7, %v3452_v59 }
 0x2fa   :  { %v3700_v37 = vmul.f32 %v6382_v35, %v3466_v1 }
 0x2fc   :  { %v6041_v39 = vpop.eup %6040  ;;  %v3725_v11 = vadd.f32 %v3707_v24, %v3700_v37 }
 0x2fd   :  { %v3743_v41 = vadd.f32 1.0, %v6041_v39  ;;  %v6043_v43 = vpop.eup %6042 }
 0x2fe   :  { %6044 = vtanh.f32 %v3725_v11  ;;  %v3748_v47 = vadd.f32 1.0, %v6043_v43 }
 0x2ff   :  { %v3755_v40 = vmul.f32 0.5, %v3743_v41  ;;  %v3519_v53 = vpop.f32.mrf.mxu3 }
 0x300   :  { %v3760_v50 = vmul.f32 0.5, %v3748_v47  ;;  %v3520_v34 = vadd.f32 %v3519_v53, %v3506_v58 }
 0x301   :  { %v3766_v45 = vpack.c.bf16 %v3755_v40, %v3754_v12  ;;  %v3589_v40 = vpop.f32.mrf.mxu0 }
 0x302   :  { %v3561_v61 = vpop.f32.mrf.mxu2  ;;  %v3695_v62 = vmul.f32 %v6382_v35, %v3520_v34 }
 0x303   :  { %3772 = vst [vmem:[%s6429_s9] sm:$0xff] %v3766_v45  ;;  %v3562_v6 = vadd.f32 %v3561_v61, %v3548_v3 }
 0x304   :  { %v6045_v44 = vpop.eup %6044  ;;  %v3720_v5 = vadd.f32 %v3708_v4, %v3695_v62 }
 0x305   :  { %v3749_v33 = vadd.f32 1.0, %v6045_v44 }
 0x306   :  { %6046 = vtanh.f32 %v3720_v5 }
 0x307   :  { %v3761_v51 = vmul.f32 0.5, %v3749_v33  ;;  %v3521_v19 = vpop.f32.mrf.mxu3 }
 0x308   :  { %v3522_v2 = vadd.f32 %v3521_v19, %v3508_v63 }
 0x309   :  { %v3769_v52 = vpack.c.bf16 %v3761_v51, %v3760_v50  ;;  %v3591_v47 = vpop.f32.mrf.mxu0 }
 0x30a   :  { %v3701_v14 = vmul.f32 %v6382_v35, %v3522_v2  ;;  %v3563_v18 = vpop.f32.mrf.mxu2 }
 0x30b   :  { %3775 = vst [vmem:[%s6429_s9 + $0x18] sm:$0xff] %v3769_v52  ;;  %v3564_v23 = vadd.f32 %v3563_v18, %v3550_v20 }
 0x30c   :  { %v3726_v22 = vadd.f32 %v3708_v4, %v3701_v14  ;;  %v6047_v25 = vpop.eup %6046  ;;  %v3603_v12 = vpop.f32.mrf.mxu1 }
 0x30d   :  { %v3744_v28 = vadd.f32 1.0, %v6047_v25  ;;  %v3604_v48 = vadd.f32 %v3603_v12, %v3589_v40 }
 0x30f   :  { %v3756_v59 = vmul.f32 0.5, %v3744_v28 }
 0x314   :  { %v3605_v46 = vpop.f32.mrf.mxu1 }
 0x315   :  { %v3606_v55 = vadd.f32 %v3605_v46, %v3591_v47 }
 0x319   :  { %v3645_v52 = vpop.f32.mrf.mxu0 }
 0x31f   :  { %v3575_v42 = vpop.f32.mrf.mxu3 }
 0x320   :  { %v3576_v8 = vadd.f32 %v3575_v42, %v3562_v6  ;;  %v3617_v43 = vpop.f32.mrf.mxu2 }
 0x321   :  { %v3618_v49 = vadd.f32 %v3617_v43, %v3604_v48  ;;  %v3647_v63 = vpop.f32.mrf.mxu0 }
 0x322   :  { %v3696_v15 = vmul.f32 %v6382_v35, %v3576_v8 }
 0x324   :  { %v3721_v21 = vadd.f32 %v3709_v9, %v3696_v15 }
 0x326   :  { %6048 = vtanh.f32 %v3721_v21 }
 0x327   :  { %v3577_v24 = vpop.f32.mrf.mxu3  ;;  %6050 = vtanh.f32 %v3726_v22 }
 0x328   :  { %v3578_v26 = vadd.f32 %v3577_v24, %v3564_v23  ;;  %v3619_v44 = vpop.f32.mrf.mxu2 }
 0x329   :  { %v3620_v58 = vadd.f32 %v3619_v44, %v3606_v55 }
 0x32a   :  { %v3702_v27 = vmul.f32 %v6382_v35, %v3578_v26  ;;  %v3659_v50 = vpop.f32.mrf.mxu1 }
 0x32b   :  { %v3660_v57 = vadd.f32 %v3659_v50, %v3645_v52 }
 0x32c   :  { %v6049_v29 = vpop.eup %6048  ;;  %v3727_v30 = vadd.f32 %v3709_v9, %v3702_v27 }
 0x32d   :  { %v3745_v31 = vadd.f32 1.0, %v6049_v29  ;;  %v6051_v7 = vpop.eup %6050 }
 0x32e   :  { %6052 = vtanh.f32 %v3727_v30  ;;  %v3750_v1 = vadd.f32 1.0, %v6051_v7 }
 0x32f   :  { %v3757_v32 = vmul.f32 0.5, %v3745_v31 }
 0x330   :  { %v3762_v39 = vmul.f32 0.5, %v3750_v1 }
 0x331   :  { %v3767_v36 = vpack.c.bf16 %v3757_v32, %v3756_v59 }
 0x332   :  { %v3661_v62 = vpop.f32.mrf.mxu1 }
 0x333   :  { %3773 = vst [vmem:[%s6429_s9 + $0x8] sm:$0xff] %v3767_v36  ;;  %v3662_v6 = vadd.f32 %v3661_v62, %v3647_v63 }
 0x334   :  { %v6053_v37 = vpop.eup %6052 }
 0x335   :  { %v3751_v10 = vadd.f32 1.0, %v6053_v37 }
 0x337   :  { %v3763_v11 = vmul.f32 0.5, %v3751_v10 }
 0x339   :  { %v3770_v41 = vpack.c.bf16 %v3763_v11, %v3762_v39 }
 0x33b   :  { %3776 = vst [vmem:[%s6429_s9 + $0x20] sm:$0xff] %v3770_v41 }
 0x33f   :  { %v3631_v45 = vpop.f32.mrf.mxu3 }
 0x340   :  { %v3632_v33 = vadd.f32 %v3631_v45, %v3618_v49  ;;  %v3673_v53 = vpop.f32.mrf.mxu2 }
 0x341   :  { %v3674_v60 = vadd.f32 %v3673_v53, %v3660_v57 }
 0x342   :  { %v3697_v54 = vmul.f32 %v6382_v35, %v3632_v33 }
 0x344   :  { %v3722_v34 = vadd.f32 %v3710_v56, %v3697_v54 }
 0x346   :  { %6054 = vtanh.f32 %v3722_v34 }
 0x347   :  { %v3633_v51 = vpop.f32.mrf.mxu3 }
 0x348   :  { %v3634_v19 = vadd.f32 %v3633_v51, %v3620_v58  ;;  %v3675_v5 = vpop.f32.mrf.mxu2 }
 0x349   :  { %v3676_v8 = vadd.f32 %v3675_v5, %v3662_v6 }
 0x34a   :  { %v3703_v4 = vmul.f32 %v6382_v35, %v3634_v19 }
 0x34c   :  { %v3728_v42 = vadd.f32 %v3710_v56, %v3703_v4  ;;  %v6055_v13 = vpop.eup %6054 }
 0x34d   :  { %v3746_v0 = vadd.f32 1.0, %v6055_v13 }
 0x34f   :  { %v3758_v21 = vmul.f32 0.5, %v3746_v0 }
 0x35f   :  { %v3687_v16 = vpop.f32.mrf.mxu3 }
 0x360   :  { %v3688_v61 = vadd.f32 %v3687_v16, %v3674_v60 }
 0x362   :  { %v3698_v3 = vmul.f32 %v6382_v35, %v3688_v61 }
 0x364   :  { %v3723_v2 = vadd.f32 %v3711_v38, %v3698_v3 }
 0x366   :  { %6056 = vtanh.f32 %v3723_v2 }
 0x367   :  { %v3689_v9 = vpop.f32.mrf.mxu3  ;;  %6058 = vtanh.f32 %v3728_v42 }
 0x368   :  { %v3690_v14 = vadd.f32 %v3689_v9, %v3676_v8 }
 0x36a   :  { %v3704_v15 = vmul.f32 %v6382_v35, %v3690_v14 }
 0x36c   :  { %v6057_v17 = vpop.eup %6056  ;;  %v3729_v18 = vadd.f32 %v3711_v38, %v3704_v15 }
 0x36d   :  { %v3747_v20 = vadd.f32 1.0, %v6057_v17  ;;  %v6059_v23 = vpop.eup %6058 }
 0x36e   :  { %6060 = vtanh.f32 %v3729_v18  ;;  %v3752_v25 = vadd.f32 1.0, %v6059_v23 }
 0x36f   :  { %v3759_v22 = vmul.f32 0.5, %v3747_v20 }
 0x370   :  { %v3764_v28 = vmul.f32 0.5, %v3752_v25 }
 0x371   :  { %v3768_v24 = vpack.c.bf16 %v3759_v22, %v3758_v21 }
 0x373   :  { %3774 = vst [vmem:[%s6429_s9 + $0x10] sm:$0xff] %v3768_v24 }
 0x374   :  { %v6061_v26 = vpop.eup %6060 }
 0x375   :  { %v3753_v27 = vadd.f32 1.0, %v6061_v26 }
 0x377   :  { %v3765_v29 = vmul.f32 0.5, %v3753_v27 }
 0x379   :  { %v3771_v30 = vpack.c.bf16 %v3765_v29, %v3764_v28 }
 0x37b   :  { %3777 = vst [vmem:[%s6429_s9 + $0x28] sm:$0xff] %v3771_v30 }
 0x37c   :  { %3782 = vsyncpa [#allocation4], 1 }
 0x37d   :  { %3783 = vsyncpa [#allocation6], 1 }

</bundles_post_ra>
